<compile_context>
chip_gen: v7x
topology: tpu7x:2x2x1
jax: 0.10.0
libtpu: 0.0.40
codegen_flags: <defaults>
</compile_context>

<pallas_src>
import functools
import math

import jax
import jax.numpy as jnp
from jax import lax
from jax.experimental import pallas as pl
from jax.experimental.pallas import tpu as pltpu

LN_EPS = 1e-5           # nn.LayerNorm default
NEG_INF = -1e9
# Set False for strict numerical parity with a PyTorch reference
# (approx reciprocal has ~1e-3 relative error but is nearly free on the EUP).
APPROX_SOFTMAX_RECIP = True


# ----------------------------- kernel helpers ------------------------------ #
def _layernorm(v, g, b):
    # v: (M, D) f32 ; g, b: (1, D) f32
    mean = jnp.mean(v, axis=-1, keepdims=True)
    var = jnp.mean((v - mean) ** 2, axis=-1, keepdims=True)
    return (v - mean) * lax.rsqrt(var + LN_EPS) * g + b


def _softmax(s):
    # s: (..., S) f32 ; divide routed to the EUP reciprocal slot.
    m = jnp.max(s, axis=-1, keepdims=True)
    e = jnp.exp(s - m)
    return e * pl.reciprocal(jnp.sum(e, axis=-1, keepdims=True),
                             approx=APPROX_SOFTMAX_RECIP)


def _mha(q_flat, kv_flat, wq, wk, wv, wo, bq, bk, bv, bo, bias,
         *, bb, t, s, num_heads):
    """Multi-head attention over a batch block, samples+heads batched.

    q_flat : (Bb*T, D) bf16 (pre-normed; 1/sqrt(dh) already folded into wq/bq)
    kv_flat: (Bb*S, D) bf16
    w*     : (D, D) bf16     b* : (1, D) f32
    bias   : additive mask bias (bf16), shape (Bb, T, S) or (Bb, 1, S)
    """
    D = q_flat.shape[1]
    H = num_heads
    dh = D // H

    q = jnp.dot(q_flat, wq, preferred_element_type=jnp.float32) + bq   # (Bb*T, D)
    k = jnp.dot(kv_flat, wk, preferred_element_type=jnp.float32) + bk  # (Bb*S, D)
    v = jnp.dot(kv_flat, wv, preferred_element_type=jnp.float32) + bv  # (Bb*S, D)

    # One relayout per tensor -> (Bb*H, T/S, dh), then leading-batch matmuls.
    q3 = q.astype(jnp.bfloat16).reshape(bb, t, H, dh).transpose(0, 2, 1, 3) \
          .reshape(bb * H, t, dh)
    k3 = k.astype(jnp.bfloat16).reshape(bb, s, H, dh).transpose(0, 2, 1, 3) \
          .reshape(bb * H, s, dh)
    v3 = v.astype(jnp.bfloat16).reshape(bb, s, H, dh).transpose(0, 2, 1, 3) \
          .reshape(bb * H, s, dh)

    scores = jnp.einsum('xtd,xsd->xts', q3, k3,
                        preferred_element_type=jnp.float32)            # (Bb*H, T, S)
    # Head-invariant additive mask (leading-dim reshape + broadcast only).
    scores = scores.reshape(bb, H, t, s) + bias[:, None].astype(jnp.float32)
    p = _softmax(scores).reshape(bb * H, t, s)                         # f32
    o = jnp.einsum('xts,xsd->xtd', p.astype(jnp.bfloat16), v3,
                   preferred_element_type=jnp.float32)                 # (Bb*H, T, dh)
    o = o.reshape(bb, H, t, dh).transpose(0, 2, 1, 3).reshape(bb * t, D)
    return jnp.dot(o.astype(jnp.bfloat16), wo,
                   preferred_element_type=jnp.float32) + bo            # (Bb*T, D)


# ------------------------------ Pallas kernel ------------------------------ #
def decoder_stack_kernel(x_ref, enc_ref, sbias_ref, tbias_ref,
                         attn_w_ref, attn_b_ref, ln_w_ref, ln_b_ref,
                         w1_ref, b1_ref, w2_ref, b2_ref,
                         out_ref, acc_ref, *, num_heads):
    layer = pl.program_id(1)
    bb, t_len, _ = tbias_ref.shape
    s_len = sbias_ref.shape[2]

    # Layer 0: load the input into the f32 resident accumulator (the residual
    # stream stays in f32 VMEM across the whole layer axis; cast only at the
    # final writeback -> no per-layer bf16 rounding of the residual stream).
    @pl.when(layer == 0)
    def _():
        acc_ref[...] = x_ref[...].astype(jnp.float32)

    x = acc_ref[...]                       # (Bb*T, D) f32 residual stream
    enc = enc_ref[...]                     # (Bb*S, D) bf16
    sbias = sbias_ref[...]                 # (Bb, 1, S) bf16 additive bias
    tbias = tbias_ref[...]                 # (Bb, T, T) bf16 additive bias

    def aw(i):                             # (D, D) bf16
        return attn_w_ref[0, i]

    ab_all = attn_b_ref[0]                 # (8, D) f32
    lnw = ln_w_ref[0]                      # (3, D) f32
    lnb = ln_b_ref[0]                      # (3, D) f32

    def ab(i):
        return ab_all[i:i + 1, :]

    def lw(i):
        return lnw[i:i + 1, :]

    def lb(i):
        return lnb[i:i + 1, :]

    # --- sublayer 1: masked self-attention (pre-norm residual) -------------
    # TODO(synk): dropout omitted (eval-mode identity)
    xn = _layernorm(x, lw(0), lb(0)).astype(jnp.bfloat16)
    x = x + _mha(xn, xn,
                 aw(0), aw(1), aw(2), aw(3), ab(0), ab(1), ab(2), ab(3),
                 tbias, bb=bb, t=t_len, s=t_len, num_heads=num_heads)

    # --- sublayer 2: cross-attention over the encoder output ---------------
    xn = _layernorm(x, lw(1), lb(1)).astype(jnp.bfloat16)
    x = x + _mha(xn, enc,
                 aw(4), aw(5), aw(6), aw(7), ab(4), ab(5), ab(6), ab(7),
                 sbias, bb=bb, t=t_len, s=s_len, num_heads=num_heads)

    # --- sublayer 3: position-wise feed-forward -----------------------------
    xn = _layernorm(x, lw(2), lb(2))
    h = jnp.dot(xn.astype(jnp.bfloat16), w1_ref[0],
                preferred_element_type=jnp.float32) + b1_ref[0]
    h = jnp.maximum(h, 0.0)
    x = x + jnp.dot(h.astype(jnp.bfloat16), w2_ref[0],
                    preferred_element_type=jnp.float32) + b2_ref[0]

    acc_ref[...] = x

    # Single HBM writeback per batch block, cast once to the caller's dtype.
    @pl.when(layer == pl.num_programs(1) - 1)
    def _():
        out_ref[...] = x.astype(out_ref.dtype)


# ------------------------------ python wrapper ----------------------------- #
def _pad_axis(a, axis, mult, value=0.0):
    pad = (-a.shape[axis]) % mult
    if pad == 0:
        return a
    widths = [(0, 0)] * a.ndim
    widths[axis] = (0, pad)
    return jnp.pad(a, widths, constant_values=value)


def _pick_vmem_limit():
    # ~96 MiB on 128 MiB parts (v5e/v6e), ~48 MiB on v7x (64 MiB VMEM).
    try:
        cap = int(pltpu.get_tpu_info().vmem_capacity_bytes)
        return int(min(100 * 1024 * 1024, (cap * 3) // 4))
    except Exception:
        return 64 * 1024 * 1024


def _pick_batch_block(B, T, S, D, H, budget_bytes=6 * 1024 * 1024):
    # Rough per-sample bytes of the block-resident tensors (f32 residual +
    # q/k/v temporaries, f32 scores for all heads, bf16 enc + mask biases).
    per_sample = (16 * T * D + 10 * S * D
                  + 4 * H * T * max(T, S) + 2 * T * T + 2 * S)
    bb = max(1, min(B, budget_bytes // max(per_sample, 1)))
    while B % bb:
        bb -= 1
    return bb


def decoder_forward(x, encoder_output, src_mask, tgt_mask, params, num_heads,
                    batch_block=None):
    """Mirrors Decoder.forward: the whole layer stack fused in one pallas_call."""
    B, T0, D = x.shape
    S0 = encoder_output.shape[1]
    L = params["attn_w"].shape[0]
    d_ff = params["w1"].shape[2]
    H = num_heads

    # ---- host-side prep (one-time, cheap) ----------------------------------
    # Sublane-align the sequence dims so the flattened (Bb*T, D)/(Bb*S, D)
    # blocks are always layout-legal; padded keys get a -1e9 bias.
    x_p = _pad_axis(x, 1, 8)
    enc_p = _pad_axis(encoder_output.astype(jnp.bfloat16), 1, 16)
    T, S = x_p.shape[1], enc_p.shape[1]

    # Head-invariant additive mask biases, shipped as bf16 (halves DMA bytes).
    # (General arbitrary masks are supported; a purely-causal tgt mask could be
    #  generated in-kernel via iota instead to drop the (B,T,T) traffic.)
    src_bias = jnp.where(src_mask == 0.0, NEG_INF, 0.0).astype(jnp.bfloat16)   # (B,1,S0)
    src_bias = _pad_axis(src_bias, 2, 16, value=NEG_INF)                       # mask padded keys
    tgt_bias = jnp.where(tgt_mask == 0.0, NEG_INF, 0.0).astype(jnp.bfloat16)   # (B,T0,T0)
    tgt_bias = _pad_axis(tgt_bias, 2, 8, value=NEG_INF)                        # mask padded keys
    tgt_bias = _pad_axis(tgt_bias, 1, 8, value=0.0)                            # pad query rows

    Bb = batch_block or _pick_batch_block(B, T, S, D, H)
    assert B % Bb == 0, "batch block must divide the batch size"

    # Flatten batch*seq host-side (free) so the kernel's projections see a fat
    # (Bb*T, D) MXU M dimension and no in-kernel flatten/relayout is needed.
    x_flat = x_p.reshape(B * T, D)
    enc_flat = enc_p.reshape(B * S, D)

    kernel = functools.partial(decoder_stack_kernel, num_heads=num_heads)
    # NOTE(v7x): for very large D/d_ff consider a third grid axis over
    # sublayers so only one sublayer's weights are double-buffered at a time.
    out_flat = pl.pallas_call(
        kernel,
        out_shape=jax.ShapeDtypeStruct((B * T, D), x.dtype),
        grid=(B // Bb, L),
        in_specs=[
            pl.BlockSpec((Bb * T, D), lambda b, l: (b, 0)),         # x (resident over l)
            pl.BlockSpec((Bb * S, D), lambda b, l: (b, 0)),         # encoder output (bf16)
            pl.BlockSpec((Bb, 1, S), lambda b, l: (b, 0, 0)),       # src additive bias
            pl.BlockSpec((Bb, T, T), lambda b, l: (b, 0, 0)),       # tgt additive bias
            pl.BlockSpec((1, 8, D, D), lambda b, l: (l, 0, 0, 0)),  # attn weights (self+cross)
            pl.BlockSpec((1, 8, D), lambda b, l: (l, 0, 0)),        # attn biases
            pl.BlockSpec((1, 3, D), lambda b, l: (l, 0, 0)),        # layernorm gammas
            pl.BlockSpec((1, 3, D), lambda b, l: (l, 0, 0)),        # layernorm betas
            pl.BlockSpec((1, D, d_ff), lambda b, l: (l, 0, 0)),     # ffn w1
            pl.BlockSpec((1, 1, d_ff), lambda b, l: (l, 0, 0)),     # ffn b1
            pl.BlockSpec((1, d_ff, D), lambda b, l: (l, 0, 0)),     # ffn w2
            pl.BlockSpec((1, 1, D), lambda b, l: (l, 0, 0)),        # ffn b2
        ],
        out_specs=pl.BlockSpec((Bb * T, D), lambda b, l: (b, 0)),   # constant over l
        scratch_shapes=[pltpu.VMEM((Bb * T, D), jnp.float32)],      # f32 residual stream
        compiler_params=pltpu.CompilerParams(
            dimension_semantics=("parallel", "arbitrary"),
            vmem_limit_bytes=_pick_vmem_limit(),
        ),
    )(x_flat, enc_flat, src_bias, tgt_bias,
      params["attn_w"], params["attn_b"], params["ln_w"], params["ln_b"],
      params["w1"], params["b1"], params["w2"], params["b2"])

    return out_flat.reshape(B, T, D)[:, :T0]


def init_decoder_params(key, num_layers, d_model, num_heads, d_ff):
    """Per-layer weights stacked with a leading num_layers axis.

    attn_w layout: [Wq, Wk, Wv, Wo] self-attention, then [Wq, Wk, Wv, Wo]
    cross-attention. Matmul weights are stored bf16 (halves HBM/DMA bytes);
    biases / LayerNorm params stay f32. The attention score scale 1/sqrt(dh)
    is folded into the query projections (weights AND biases) here, once,
    so the kernel never multiplies q by the scale at runtime.
    """
    ks = jax.random.split(key, 6)
    scale = 0.1
    attn_w = jax.random.normal(ks[0], (num_layers, 8, d_model, d_model),
                               jnp.float32) * scale
    attn_b = jax.random.normal(ks[1], (num_layers, 8, d_model), jnp.float32) * scale
    qs = 1.0 / math.sqrt(d_model // num_heads)
    attn_w = attn_w.at[:, 0].multiply(qs).at[:, 4].multiply(qs)
    attn_b = attn_b.at[:, 0].multiply(qs).at[:, 4].multiply(qs)
    attn_w = attn_w.astype(jnp.bfloat16)
    ln_w = jnp.ones((num_layers, 3, d_model), jnp.float32)
    ln_b = jnp.zeros((num_layers, 3, d_model), jnp.float32)
    w1 = (jax.random.normal(ks[2], (num_layers, d_model, d_ff),
                            jnp.float32) * scale).astype(jnp.bfloat16)
    b1 = jax.random.normal(ks[3], (num_layers, 1, d_ff), jnp.float32) * scale
    w2 = (jax.random.normal(ks[4], (num_layers, d_ff, d_model),
                            jnp.float32) * scale).astype(jnp.bfloat16)
    b2 = jax.random.normal(ks[5], (num_layers, 1, d_model), jnp.float32) * scale
    return dict(attn_w=attn_w, attn_b=attn_b, ln_w=ln_w, ln_b=ln_b,
                w1=w1, b1=b1, w2=w2, b2=b2)


if __name__ == "__main__":
    num_layers, d_model, num_heads, d_ff = 2, 32, 4, 64
    B, T_tgt, S_src = 2, 8, 10

    key = jax.random.PRNGKey(0)
    kx, kenc, kp = jax.random.split(key, 3)

    x = jax.random.normal(kx, (B, T_tgt, d_model), jnp.float32)
    encoder_output = jax.random.normal(kenc, (B, S_src, d_model), jnp.float32)
    # causal target mask, full source mask (1 = attend, 0 = block)
    tgt_mask = jnp.broadcast_to(
        jnp.tril(jnp.ones((T_tgt, T_tgt), jnp.float32)), (B, T_tgt, T_tgt))
    src_mask = jnp.ones((B, 1, S_src), jnp.float32)

    params = init_decoder_params(kp, num_layers, d_model, num_heads, d_ff)

    out = decoder_forward(x, encoder_output, src_mask, tgt_mask, params, num_heads)
    out = jax.block_until_ready(out)
    assert out.shape == (B, T_tgt, d_model)
    assert bool(jnp.all(jnp.isfinite(out)))
    print("KERNEL_OK")
</pallas_src>

<mosaic_0001>
module attributes {stable_mosaic.version = 11 : i64} {
  func.func @decoder_stack_kernel(%arg0: i32, %arg1: i32, %arg2: memref<16x32xf32, #tpu.memory_space<vmem>>, %arg3: memref<32x32xbf16, #tpu.memory_space<vmem>>, %arg4: memref<2x1x16xbf16, #tpu.memory_space<vmem>>, %arg5: memref<2x8x8xbf16, #tpu.memory_space<vmem>>, %arg6: memref<1x8x32x32xbf16, #tpu.memory_space<vmem>>, %arg7: memref<1x8x32xf32, #tpu.memory_space<vmem>>, %arg8: memref<1x3x32xf32, #tpu.memory_space<vmem>>, %arg9: memref<1x3x32xf32, #tpu.memory_space<vmem>>, %arg10: memref<1x32x64xbf16, #tpu.memory_space<vmem>>, %arg11: memref<1x1x64xf32, #tpu.memory_space<vmem>>, %arg12: memref<1x64x32xbf16, #tpu.memory_space<vmem>>, %arg13: memref<1x1x32xf32, #tpu.memory_space<vmem>>, %arg14: memref<16x32xf32, #tpu.memory_space<vmem>>, %arg15: memref<16x32xf32, #tpu.memory_space<vmem>>) attributes {dimension_semantics = [#tpu.dimension_semantics<parallel>, #tpu.dimension_semantics<arbitrary>], iteration_bounds = array<i64: 1, 2>, scalar_prefetch = 0 : i64, scratch_operands = 1 : i64, tpu.core_type = #tpu.core_type<tc>, window_params = [{transform_indices = @transform_0, window_bounds = array<i64: 16, 32>}, {transform_indices = @transform_1, window_bounds = array<i64: 32, 32>}, {transform_indices = @transform_2, window_bounds = array<i64: 2, 1, 16>}, {transform_indices = @transform_3, window_bounds = array<i64: 2, 8, 8>}, {transform_indices = @transform_4, window_bounds = array<i64: 1, 8, 32, 32>}, {transform_indices = @transform_5, window_bounds = array<i64: 1, 8, 32>}, {transform_indices = @transform_6, window_bounds = array<i64: 1, 3, 32>}, {transform_indices = @transform_7, window_bounds = array<i64: 1, 3, 32>}, {transform_indices = @transform_8, window_bounds = array<i64: 1, 32, 64>}, {transform_indices = @transform_9, window_bounds = array<i64: 1, 1, 64>}, {transform_indices = @transform_10, window_bounds = array<i64: 1, 64, 32>}, {transform_indices = @transform_11, window_bounds = array<i64: 1, 1, 32>}, {transform_indices = @transform_12, window_bounds = array<i64: 16, 32>}]} {
    %c0_i32 = arith.constant 0 : i32
    %0 = arith.cmpi eq, %arg1, %c0_i32 : i32
    %1 = arith.extui %0 : i1 to i32
    %c0_i32_0 = arith.constant 0 : i32
    %2 = arith.cmpi ne, %1, %c0_i32_0 : i32
    scf.if %2 {
      %c0_92 = arith.constant 0 : index
      %c0_93 = arith.constant 0 : index
      %230 = vector.load %arg2[%c0_92, %c0_93] : memref<16x32xf32, #tpu.memory_space<vmem>>, vector<16x32xf32>
      %c0_94 = arith.constant 0 : index
      %c0_95 = arith.constant 0 : index
      %231 = vector.load %arg15[%c0_94, %c0_95] : memref<16x32xf32, #tpu.memory_space<vmem>>, vector<16x32xf32>
      tpu.vector_store %arg15[%c0_94, %c0_95], %230 {strides = array<i32>} : memref<16x32xf32, #tpu.memory_space<vmem>>, vector<16x32xf32>,
    } else {
    }
    %c0 = arith.constant 0 : index
    %c0_1 = arith.constant 0 : index
    %3 = vector.load %arg15[%c0, %c0_1] : memref<16x32xf32, #tpu.memory_space<vmem>>, vector<16x32xf32>
    %c0_2 = arith.constant 0 : index
    %c0_3 = arith.constant 0 : index
    %4 = vector.load %arg3[%c0_2, %c0_3] : memref<32x32xbf16, #tpu.memory_space<vmem>>, vector<32x32xbf16>
    %c0_4 = arith.constant 0 : index
    %c0_5 = arith.constant 0 : index
    %c0_6 = arith.constant 0 : index
    %5 = vector.load %arg4[%c0_4, %c0_5, %c0_6] : memref<2x1x16xbf16, #tpu.memory_space<vmem>>, vector<2x1x16xbf16>
    %c0_7 = arith.constant 0 : index
    %c0_8 = arith.constant 0 : index
    %c0_9 = arith.constant 0 : index
    %6 = vector.load %arg5[%c0_7, %c0_8, %c0_9] : memref<2x8x8xbf16, #tpu.memory_space<vmem>>, vector<2x8x8xbf16>
    %c0_10 = arith.constant 0 : index
    %c0_11 = arith.constant 0 : index
    %c0_12 = arith.constant 0 : index
    %7 = vector.load %arg7[%c0_10, %c0_11, %c0_12] : memref<1x8x32xf32, #tpu.memory_space<vmem>>, vector<1x8x32xf32>
    %8 = vector.shape_cast %7 : vector<1x8x32xf32> to vector<8x32xf32>
    %c0_13 = arith.constant 0 : index
    %c0_14 = arith.constant 0 : index
    %c0_15 = arith.constant 0 : index
    %9 = vector.load %arg8[%c0_13, %c0_14, %c0_15] : memref<1x3x32xf32, #tpu.memory_space<vmem>>, vector<1x3x32xf32>
    %10 = vector.shape_cast %9 : vector<1x3x32xf32> to vector<3x32xf32>
    %c0_16 = arith.constant 0 : index
    %c0_17 = arith.constant 0 : index
    %c0_18 = arith.constant 0 : index
    %11 = vector.load %arg9[%c0_16, %c0_17, %c0_18] : memref<1x3x32xf32, #tpu.memory_space<vmem>>, vector<1x3x32xf32>
    %12 = vector.shape_cast %11 : vector<1x3x32xf32> to vector<3x32xf32>
    %13 = vector.extract_strided_slice %10 {offsets = [0, 0], sizes = [1, 32], strides = [1, 1]} : vector<3x32xf32> to vector<1x32xf32>
    %14 = vector.extract_strided_slice %12 {offsets = [0, 0], sizes = [1, 32], strides = [1, 1]} : vector<3x32xf32> to vector<1x32xf32>
    %cst = arith.constant dense<0.000000e+00> : vector<16xf32>
    %15 = vector.multi_reduction <add>, %3, %cst [1] : vector<16x32xf32> to vector<16xf32>
    %16 = vector.shape_cast %15 : vector<16xf32> to vector<16x1xf32>
    %cst_19 = arith.constant 3.200000e+01 : f32
    %17 = vector.broadcast %cst_19 : f32 to vector<16x1xf32>
    %18 = arith.divf %16, %17 : vector<16x1xf32>
    %19 = vector.broadcast %18 : vector<16x1xf32> to vector<16x32xf32>
    %20 = arith.subf %3, %19 : vector<16x32xf32>
    %21 = arith.mulf %20, %20 : vector<16x32xf32>
    %cst_20 = arith.constant dense<0.000000e+00> : vector<16xf32>
    %22 = vector.multi_reduction <add>, %21, %cst_20 [1] : vector<16x32xf32> to vector<16xf32>
    %23 = vector.shape_cast %22 : vector<16xf32> to vector<16x1xf32>
    %cst_21 = arith.constant 3.200000e+01 : f32
    %24 = vector.broadcast %cst_21 : f32 to vector<16x1xf32>
    %25 = arith.divf %23, %24 : vector<16x1xf32>
    %26 = vector.broadcast %18 : vector<16x1xf32> to vector<16x32xf32>
    %27 = arith.subf %3, %26 : vector<16x32xf32>
    %cst_22 = arith.constant 9.99999974E-6 : f32
    %28 = vector.broadcast %cst_22 : f32 to vector<16x1xf32>
    %29 = arith.addf %25, %28 : vector<16x1xf32>
    %30 = math.rsqrt %29 : vector<16x1xf32>
    %31 = vector.broadcast %30 : vector<16x1xf32> to vector<16x32xf32>
    %32 = arith.mulf %27, %31 : vector<16x32xf32>
    %33 = vector.broadcast %13 : vector<1x32xf32> to vector<16x32xf32>
    %34 = arith.mulf %32, %33 : vector<16x32xf32>
    %35 = vector.broadcast %14 : vector<1x32xf32> to vector<16x32xf32>
    %36 = arith.addf %34, %35 : vector<16x32xf32>
    %37 = arith.truncf %36 : vector<16x32xf32> to vector<16x32xbf16>
    %c0_23 = arith.constant 0 : index
    %c0_24 = arith.constant 0 : index
    %c0_25 = arith.constant 0 : index
    %c0_26 = arith.constant 0 : index
    %38 = vector.load %arg6[%c0_23, %c0_24, %c0_25, %c0_26] : memref<1x8x32x32xbf16, #tpu.memory_space<vmem>>, vector<1x1x32x32xbf16>
    %39 = vector.shape_cast %38 : vector<1x1x32x32xbf16> to vector<32x32xbf16>
    %c0_27 = arith.constant 0 : index
    %c1 = arith.constant 1 : index
    %c0_28 = arith.constant 0 : index
    %c0_29 = arith.constant 0 : index
    %40 = vector.load %arg6[%c0_27, %c1, %c0_28, %c0_29] : memref<1x8x32x32xbf16, #tpu.memory_space<vmem>>, vector<1x1x32x32xbf16>
    %41 = vector.shape_cast %40 : vector<1x1x32x32xbf16> to vector<32x32xbf16>
    %c0_30 = arith.constant 0 : index
    %c2 = arith.constant 2 : index
    %c0_31 = arith.constant 0 : index
    %c0_32 = arith.constant 0 : index
    %42 = vector.load %arg6[%c0_30, %c2, %c0_31, %c0_32] : memref<1x8x32x32xbf16, #tpu.memory_space<vmem>>, vector<1x1x32x32xbf16>
    %43 = vector.shape_cast %42 : vector<1x1x32x32xbf16> to vector<32x32xbf16>
    %c0_33 = arith.constant 0 : index
    %c3 = arith.constant 3 : index
    %c0_34 = arith.constant 0 : index
    %c0_35 = arith.constant 0 : index
    %44 = vector.load %arg6[%c0_33, %c3, %c0_34, %c0_35] : memref<1x8x32x32xbf16, #tpu.memory_space<vmem>>, vector<1x1x32x32xbf16>
    %45 = vector.shape_cast %44 : vector<1x1x32x32xbf16> to vector<32x32xbf16>
    %46 = vector.extract_strided_slice %8 {offsets = [0, 0], sizes = [1, 32], strides = [1, 1]} : vector<8x32xf32> to vector<1x32xf32>
    %47 = vector.extract_strided_slice %8 {offsets = [1, 0], sizes = [1, 32], strides = [1, 1]} : vector<8x32xf32> to vector<1x32xf32>
    %48 = vector.extract_strided_slice %8 {offsets = [2, 0], sizes = [1, 32], strides = [1, 1]} : vector<8x32xf32> to vector<1x32xf32>
    %49 = vector.extract_strided_slice %8 {offsets = [3, 0], sizes = [1, 32], strides = [1, 1]} : vector<8x32xf32> to vector<1x32xf32>
    %cst_36 = arith.constant dense<0.000000e+00> : vector<16x32xf32>
    %50 = tpu.matmul %37, %39, %cst_36 {dimension_numbers = #tpu.dot_dimension_numbers<[1], [0], [0], [1], [0, 0, 1, 1], [], []>} : vector<16x32xbf16>, vector<32x32xbf16>, vector<16x32xf32> -> vector<16x32xf32>
    %51 = vector.broadcast %46 : vector<1x32xf32> to vector<16x32xf32>
    %52 = arith.addf %50, %51 : vector<16x32xf32>
    %cst_37 = arith.constant dense<0.000000e+00> : vector<16x32xf32>
    %53 = tpu.matmul %37, %41, %cst_37 {dimension_numbers = #tpu.dot_dimension_numbers<[1], [0], [0], [1], [0, 0, 1, 1], [], []>} : vector<16x32xbf16>, vector<32x32xbf16>, vector<16x32xf32> -> vector<16x32xf32>
    %54 = vector.broadcast %47 : vector<1x32xf32> to vector<16x32xf32>
    %55 = arith.addf %53, %54 : vector<16x32xf32>
    %cst_38 = arith.constant dense<0.000000e+00> : vector<16x32xf32>
    %56 = tpu.matmul %37, %43, %cst_38 {dimension_numbers = #tpu.dot_dimension_numbers<[1], [0], [0], [1], [0, 0, 1, 1], [], []>} : vector<16x32xbf16>, vector<32x32xbf16>, vector<16x32xf32> -> vector<16x32xf32>
    %57 = vector.broadcast %48 : vector<1x32xf32> to vector<16x32xf32>
    %58 = arith.addf %56, %57 : vector<16x32xf32>
    %59 = arith.truncf %52 : vector<16x32xf32> to vector<16x32xbf16>
    %60 = vector.shape_cast %59 : vector<16x32xbf16> to vector<2x8x4x8xbf16>
    %61 = tpu.transpose %60, [0, 2, 1, 3] : vector<2x8x4x8xbf16> -> vector<2x4x8x8xbf16>
    %62 = vector.shape_cast %61 : vector<2x4x8x8xbf16> to vector<8x8x8xbf16>
    %63 = arith.truncf %55 : vector<16x32xf32> to vector<16x32xbf16>
    %64 = vector.shape_cast %63 : vector<16x32xbf16> to vector<2x8x4x8xbf16>
    %65 = tpu.transpose %64, [0, 2, 1, 3] : vector<2x8x4x8xbf16> -> vector<2x4x8x8xbf16>
    %66 = vector.shape_cast %65 : vector<2x4x8x8xbf16> to vector<8x8x8xbf16>
    %67 = arith.truncf %58 : vector<16x32xf32> to vector<16x32xbf16>
    %68 = vector.shape_cast %67 : vector<16x32xbf16> to vector<2x8x4x8xbf16>
    %69 = tpu.transpose %68, [0, 2, 1, 3] : vector<2x8x4x8xbf16> -> vector<2x4x8x8xbf16>
    %70 = vector.shape_cast %69 : vector<2x4x8x8xbf16> to vector<8x8x8xbf16>
    "tpu.trace_start"() <{level = 10 : i32, message = "xtd,xsd->xts"}> : () -> ()
    %cst_39 = arith.constant dense<0.000000e+00> : vector<8x8x8xf32>
    %71 = tpu.matmul %62, %66, %cst_39 {dimension_numbers = #tpu.dot_dimension_numbers<[2], [2], [1], [1], [0, 0, 0, 1, 1, 1], [0], [0]>} : vector<8x8x8xbf16>, vector<8x8x8xbf16>, vector<8x8x8xf32> -> vector<8x8x8xf32>
    "tpu.trace_stop"() : () -> ()
    %72 = vector.shape_cast %71 : vector<8x8x8xf32> to vector<2x4x8x8xf32>
    %73 = vector.shape_cast %6 : vector<2x8x8xbf16> to vector<2x1x8x8xbf16>
    %74 = arith.extf %73 : vector<2x1x8x8xbf16> to vector<2x1x8x8xf32>
    %75 = vector.broadcast %74 : vector<2x1x8x8xf32> to vector<2x4x8x8xf32>
    %76 = arith.addf %72, %75 : vector<2x4x8x8xf32>
    %cst_40 = arith.constant dense<0xFF800000> : vector<2x4x8xf32>
    %77 = vector.multi_reduction <maximumf>, %76, %cst_40 [3] : vector<2x4x8x8xf32> to vector<2x4x8xf32>
    %78 = vector.shape_cast %77 : vector<2x4x8xf32> to vector<2x4x8x1xf32>
    %79 = vector.broadcast %78 : vector<2x4x8x1xf32> to vector<2x4x8x8xf32>
    %80 = arith.subf %76, %79 : vector<2x4x8x8xf32>
    %81 = math.exp %80 : vector<2x4x8x8xf32>
    %cst_41 = arith.constant dense<0.000000e+00> : vector<2x4x8xf32>
    %82 = vector.multi_reduction <add>, %81, %cst_41 [3] : vector<2x4x8x8xf32> to vector<2x4x8xf32>
    %83 = vector.shape_cast %82 : vector<2x4x8xf32> to vector<2x4x8x1xf32>
    %84 = tpu.reciprocal %83 {approx = true} : vector<2x4x8x1xf32> -> vector<2x4x8x1xf32>
    %85 = vector.broadcast %84 : vector<2x4x8x1xf32> to vector<2x4x8x8xf32>
    %86 = arith.mulf %81, %85 : vector<2x4x8x8xf32>
    %87 = vector.shape_cast %86 : vector<2x4x8x8xf32> to vector<8x8x8xf32>
    %88 = arith.truncf %87 : vector<8x8x8xf32> to vector<8x8x8xbf16>
    "tpu.trace_start"() <{level = 10 : i32, message = "xts,xsd->xtd"}> : () -> ()
    %cst_42 = arith.constant dense<0.000000e+00> : vector<8x8x8xf32>
    %89 = tpu.matmul %88, %70, %cst_42 {dimension_numbers = #tpu.dot_dimension_numbers<[2], [1], [1], [2], [0, 0, 0, 1, 1, 2], [0], [0]>} : vector<8x8x8xbf16>, vector<8x8x8xbf16>, vector<8x8x8xf32> -> vector<8x8x8xf32>
    "tpu.trace_stop"() : () -> ()
    %90 = vector.shape_cast %89 : vector<8x8x8xf32> to vector<2x4x8x8xf32>
    %91 = tpu.transpose %90, [0, 2, 1, 3] : vector<2x4x8x8xf32> -> vector<2x8x4x8xf32>
    %92 = vector.shape_cast %91 : vector<2x8x4x8xf32> to vector<16x32xf32>
    %93 = arith.truncf %92 : vector<16x32xf32> to vector<16x32xbf16>
    %cst_43 = arith.constant dense<0.000000e+00> : vector<16x32xf32>
    %94 = tpu.matmul %93, %45, %cst_43 {dimension_numbers = #tpu.dot_dimension_numbers<[1], [0], [0], [1], [0, 0, 1, 1], [], []>} : vector<16x32xbf16>, vector<32x32xbf16>, vector<16x32xf32> -> vector<16x32xf32>
    %95 = vector.broadcast %49 : vector<1x32xf32> to vector<16x32xf32>
    %96 = arith.addf %94, %95 : vector<16x32xf32>
    %97 = arith.addf %3, %96 : vector<16x32xf32>
    %98 = vector.extract_strided_slice %10 {offsets = [1, 0], sizes = [1, 32], strides = [1, 1]} : vector<3x32xf32> to vector<1x32xf32>
    %99 = vector.extract_strided_slice %12 {offsets = [1, 0], sizes = [1, 32], strides = [1, 1]} : vector<3x32xf32> to vector<1x32xf32>
    %cst_44 = arith.constant dense<0.000000e+00> : vector<16xf32>
    %100 = vector.multi_reduction <add>, %97, %cst_44 [1] : vector<16x32xf32> to vector<16xf32>
    %101 = vector.shape_cast %100 : vector<16xf32> to vector<16x1xf32>
    %cst_45 = arith.constant 3.200000e+01 : f32
    %102 = vector.broadcast %cst_45 : f32 to vector<16x1xf32>
    %103 = arith.divf %101, %102 : vector<16x1xf32>
    %104 = vector.broadcast %103 : vector<16x1xf32> to vector<16x32xf32>
    %105 = arith.subf %97, %104 : vector<16x32xf32>
    %106 = arith.mulf %105, %105 : vector<16x32xf32>
    %cst_46 = arith.constant dense<0.000000e+00> : vector<16xf32>
    %107 = vector.multi_reduction <add>, %106, %cst_46 [1] : vector<16x32xf32> to vector<16xf32>
    %108 = vector.shape_cast %107 : vector<16xf32> to vector<16x1xf32>
    %cst_47 = arith.constant 3.200000e+01 : f32
    %109 = vector.broadcast %cst_47 : f32 to vector<16x1xf32>
    %110 = arith.divf %108, %109 : vector<16x1xf32>
    %111 = vector.broadcast %103 : vector<16x1xf32> to vector<16x32xf32>
    %112 = arith.subf %97, %111 : vector<16x32xf32>
    %cst_48 = arith.constant 9.99999974E-6 : f32
    %113 = vector.broadcast %cst_48 : f32 to vector<16x1xf32>
    %114 = arith.addf %110, %113 : vector<16x1xf32>
    %115 = math.rsqrt %114 : vector<16x1xf32>
    %116 = vector.broadcast %115 : vector<16x1xf32> to vector<16x32xf32>
    %117 = arith.mulf %112, %116 : vector<16x32xf32>
    %118 = vector.broadcast %98 : vector<1x32xf32> to vector<16x32xf32>
    %119 = arith.mulf %117, %118 : vector<16x32xf32>
    %120 = vector.broadcast %99 : vector<1x32xf32> to vector<16x32xf32>
    %121 = arith.addf %119, %120 : vector<16x32xf32>
    %122 = arith.truncf %121 : vector<16x32xf32> to vector<16x32xbf16>
    %c0_49 = arith.constant 0 : index
    %c4 = arith.constant 4 : index
    %c0_50 = arith.constant 0 : index
    %c0_51 = arith.constant 0 : index
    %123 = vector.load %arg6[%c0_49, %c4, %c0_50, %c0_51] : memref<1x8x32x32xbf16, #tpu.memory_space<vmem>>, vector<1x1x32x32xbf16>
    %124 = vector.shape_cast %123 : vector<1x1x32x32xbf16> to vector<32x32xbf16>
    %c0_52 = arith.constant 0 : index
    %c5 = arith.constant 5 : index
    %c0_53 = arith.constant 0 : index
    %c0_54 = arith.constant 0 : index
    %125 = vector.load %arg6[%c0_52, %c5, %c0_53, %c0_54] : memref<1x8x32x32xbf16, #tpu.memory_space<vmem>>, vector<1x1x32x32xbf16>
    %126 = vector.shape_cast %125 : vector<1x1x32x32xbf16> to vector<32x32xbf16>
    %c0_55 = arith.constant 0 : index
    %c6 = arith.constant 6 : index
    %c0_56 = arith.constant 0 : index
    %c0_57 = arith.constant 0 : index
    %127 = vector.load %arg6[%c0_55, %c6, %c0_56, %c0_57] : memref<1x8x32x32xbf16, #tpu.memory_space<vmem>>, vector<1x1x32x32xbf16>
    %128 = vector.shape_cast %127 : vector<1x1x32x32xbf16> to vector<32x32xbf16>
    %c0_58 = arith.constant 0 : index
    %c7 = arith.constant 7 : index
    %c0_59 = arith.constant 0 : index
    %c0_60 = arith.constant 0 : index
    %129 = vector.load %arg6[%c0_58, %c7, %c0_59, %c0_60] : memref<1x8x32x32xbf16, #tpu.memory_space<vmem>>, vector<1x1x32x32xbf16>
    %130 = vector.shape_cast %129 : vector<1x1x32x32xbf16> to vector<32x32xbf16>
    %131 = vector.extract_strided_slice %8 {offsets = [4, 0], sizes = [1, 32], strides = [1, 1]} : vector<8x32xf32> to vector<1x32xf32>
    %132 = vector.extract_strided_slice %8 {offsets = [5, 0], sizes = [1, 32], strides = [1, 1]} : vector<8x32xf32> to vector<1x32xf32>
    %133 = vector.extract_strided_slice %8 {offsets = [6, 0], sizes = [1, 32], strides = [1, 1]} : vector<8x32xf32> to vector<1x32xf32>
    %134 = vector.extract_strided_slice %8 {offsets = [7, 0], sizes = [1, 32], strides = [1, 1]} : vector<8x32xf32> to vector<1x32xf32>
    %cst_61 = arith.constant dense<0.000000e+00> : vector<16x32xf32>
    %135 = tpu.matmul %122, %124, %cst_61 {dimension_numbers = #tpu.dot_dimension_numbers<[1], [0], [0], [1], [0, 0, 1, 1], [], []>} : vector<16x32xbf16>, vector<32x32xbf16>, vector<16x32xf32> -> vector<16x32xf32>
    %136 = vector.broadcast %131 : vector<1x32xf32> to vector<16x32xf32>
    %137 = arith.addf %135, %136 : vector<16x32xf32>
    %cst_62 = arith.constant dense<0.000000e+00> : vector<32x32xf32>
    %138 = tpu.matmul %4, %126, %cst_62 {dimension_numbers = #tpu.dot_dimension_numbers<[1], [0], [0], [1], [0, 0, 1, 1], [], []>} : vector<32x32xbf16>, vector<32x32xbf16>, vector<32x32xf32> -> vector<32x32xf32>
    %139 = vector.broadcast %132 : vector<1x32xf32> to vector<32x32xf32>
    %140 = arith.addf %138, %139 : vector<32x32xf32>
    %cst_63 = arith.constant dense<0.000000e+00> : vector<32x32xf32>
    %141 = tpu.matmul %4, %128, %cst_63 {dimension_numbers = #tpu.dot_dimension_numbers<[1], [0], [0], [1], [0, 0, 1, 1], [], []>} : vector<32x32xbf16>, vector<32x32xbf16>, vector<32x32xf32> -> vector<32x32xf32>
    %142 = vector.broadcast %133 : vector<1x32xf32> to vector<32x32xf32>
    %143 = arith.addf %141, %142 : vector<32x32xf32>
    %144 = arith.truncf %137 : vector<16x32xf32> to vector<16x32xbf16>
    %145 = vector.shape_cast %144 : vector<16x32xbf16> to vector<2x8x4x8xbf16>
    %146 = tpu.transpose %145, [0, 2, 1, 3] : vector<2x8x4x8xbf16> -> vector<2x4x8x8xbf16>
    %147 = vector.shape_cast %146 : vector<2x4x8x8xbf16> to vector<8x8x8xbf16>
    %148 = arith.truncf %140 : vector<32x32xf32> to vector<32x32xbf16>
    %149 = vector.shape_cast %148 : vector<32x32xbf16> to vector<2x16x4x8xbf16>
    %150 = tpu.transpose %149, [0, 2, 1, 3] : vector<2x16x4x8xbf16> -> vector<2x4x16x8xbf16>
    %151 = vector.shape_cast %150 : vector<2x4x16x8xbf16> to vector<8x16x8xbf16>
    %152 = arith.truncf %143 : vector<32x32xf32> to vector<32x32xbf16>
    %153 = vector.shape_cast %152 : vector<32x32xbf16> to vector<2x16x4x8xbf16>
    %154 = tpu.transpose %153, [0, 2, 1, 3] : vector<2x16x4x8xbf16> -> vector<2x4x16x8xbf16>
    %155 = vector.shape_cast %154 : vector<2x4x16x8xbf16> to vector<8x16x8xbf16>
    "tpu.trace_start"() <{level = 10 : i32, message = "xtd,xsd->xts"}> : () -> ()
    %cst_64 = arith.constant dense<0.000000e+00> : vector<8x8x16xf32>
    %156 = tpu.matmul %147, %151, %cst_64 {dimension_numbers = #tpu.dot_dimension_numbers<[2], [2], [1], [1], [0, 0, 0, 1, 1, 1], [0], [0]>} : vector<8x8x8xbf16>, vector<8x16x8xbf16>, vector<8x8x16xf32> -> vector<8x8x16xf32>
    "tpu.trace_stop"() : () -> ()
    %157 = vector.shape_cast %156 : vector<8x8x16xf32> to vector<2x4x8x16xf32>
    %158 = vector.shape_cast %5 : vector<2x1x16xbf16> to vector<2x1x1x16xbf16>
    %159 = arith.extf %158 : vector<2x1x1x16xbf16> to vector<2x1x1x16xf32>
    %160 = vector.broadcast %159 : vector<2x1x1x16xf32> to vector<2x4x8x16xf32>
    %161 = arith.addf %157, %160 : vector<2x4x8x16xf32>
    %cst_65 = arith.constant dense<0xFF800000> : vector<2x4x8xf32>
    %162 = vector.multi_reduction <maximumf>, %161, %cst_65 [3] : vector<2x4x8x16xf32> to vector<2x4x8xf32>
    %163 = vector.shape_cast %162 : vector<2x4x8xf32> to vector<2x4x8x1xf32>
    %164 = vector.broadcast %163 : vector<2x4x8x1xf32> to vector<2x4x8x16xf32>
    %165 = arith.subf %161, %164 : vector<2x4x8x16xf32>
    %166 = math.exp %165 : vector<2x4x8x16xf32>
    %cst_66 = arith.constant dense<0.000000e+00> : vector<2x4x8xf32>
    %167 = vector.multi_reduction <add>, %166, %cst_66 [3] : vector<2x4x8x16xf32> to vector<2x4x8xf32>
    %168 = vector.shape_cast %167 : vector<2x4x8xf32> to vector<2x4x8x1xf32>
    %169 = tpu.reciprocal %168 {approx = true} : vector<2x4x8x1xf32> -> vector<2x4x8x1xf32>
    %170 = vector.broadcast %169 : vector<2x4x8x1xf32> to vector<2x4x8x16xf32>
    %171 = arith.mulf %166, %170 : vector<2x4x8x16xf32>
    %172 = vector.shape_cast %171 : vector<2x4x8x16xf32> to vector<8x8x16xf32>
    %173 = arith.truncf %172 : vector<8x8x16xf32> to vector<8x8x16xbf16>
    "tpu.trace_start"() <{level = 10 : i32, message = "xts,xsd->xtd"}> : () -> ()
    %cst_67 = arith.constant dense<0.000000e+00> : vector<8x8x8xf32>
    %174 = tpu.matmul %173, %155, %cst_67 {dimension_numbers = #tpu.dot_dimension_numbers<[2], [1], [1], [2], [0, 0, 0, 1, 1, 2], [0], [0]>} : vector<8x8x16xbf16>, vector<8x16x8xbf16>, vector<8x8x8xf32> -> vector<8x8x8xf32>
    "tpu.trace_stop"() : () -> ()
    %175 = vector.shape_cast %174 : vector<8x8x8xf32> to vector<2x4x8x8xf32>
    %176 = tpu.transpose %175, [0, 2, 1, 3] : vector<2x4x8x8xf32> -> vector<2x8x4x8xf32>
    %177 = vector.shape_cast %176 : vector<2x8x4x8xf32> to vector<16x32xf32>
    %178 = arith.truncf %177 : vector<16x32xf32> to vector<16x32xbf16>
    %cst_68 = arith.constant dense<0.000000e+00> : vector<16x32xf32>
    %179 = tpu.matmul %178, %130, %cst_68 {dimension_numbers = #tpu.dot_dimension_numbers<[1], [0], [0], [1], [0, 0, 1, 1], [], []>} : vector<16x32xbf16>, vector<32x32xbf16>, vector<16x32xf32> -> vector<16x32xf32>
    %180 = vector.broadcast %134 : vector<1x32xf32> to vector<16x32xf32>
    %181 = arith.addf %179, %180 : vector<16x32xf32>
    %182 = arith.addf %97, %181 : vector<16x32xf32>
    %183 = vector.extract_strided_slice %10 {offsets = [2, 0], sizes = [1, 32], strides = [1, 1]} : vector<3x32xf32> to vector<1x32xf32>
    %184 = vector.extract_strided_slice %12 {offsets = [2, 0], sizes = [1, 32], strides = [1, 1]} : vector<3x32xf32> to vector<1x32xf32>
    %cst_69 = arith.constant dense<0.000000e+00> : vector<16xf32>
    %185 = vector.multi_reduction <add>, %182, %cst_69 [1] : vector<16x32xf32> to vector<16xf32>
    %186 = vector.shape_cast %185 : vector<16xf32> to vector<16x1xf32>
    %cst_70 = arith.constant 3.200000e+01 : f32
    %187 = vector.broadcast %cst_70 : f32 to vector<16x1xf32>
    %188 = arith.divf %186, %187 : vector<16x1xf32>
    %189 = vector.broadcast %188 : vector<16x1xf32> to vector<16x32xf32>
    %190 = arith.subf %182, %189 : vector<16x32xf32>
    %191 = arith.mulf %190, %190 : vector<16x32xf32>
    %cst_71 = arith.constant dense<0.000000e+00> : vector<16xf32>
    %192 = vector.multi_reduction <add>, %191, %cst_71 [1] : vector<16x32xf32> to vector<16xf32>
    %193 = vector.shape_cast %192 : vector<16xf32> to vector<16x1xf32>
    %cst_72 = arith.constant 3.200000e+01 : f32
    %194 = vector.broadcast %cst_72 : f32 to vector<16x1xf32>
    %195 = arith.divf %193, %194 : vector<16x1xf32>
    %196 = vector.broadcast %188 : vector<16x1xf32> to vector<16x32xf32>
    %197 = arith.subf %182, %196 : vector<16x32xf32>
    %cst_73 = arith.constant 9.99999974E-6 : f32
    %198 = vector.broadcast %cst_73 : f32 to vector<16x1xf32>
    %199 = arith.addf %195, %198 : vector<16x1xf32>
    %200 = math.rsqrt %199 : vector<16x1xf32>
    %201 = vector.broadcast %200 : vector<16x1xf32> to vector<16x32xf32>
    %202 = arith.mulf %197, %201 : vector<16x32xf32>
    %203 = vector.broadcast %183 : vector<1x32xf32> to vector<16x32xf32>
    %204 = arith.mulf %202, %203 : vector<16x32xf32>
    %205 = vector.broadcast %184 : vector<1x32xf32> to vector<16x32xf32>
    %206 = arith.addf %204, %205 : vector<16x32xf32>
    %207 = arith.truncf %206 : vector<16x32xf32> to vector<16x32xbf16>
    %c0_74 = arith.constant 0 : index
    %c0_75 = arith.constant 0 : index
    %c0_76 = arith.constant 0 : index
    %208 = vector.load %arg10[%c0_74, %c0_75, %c0_76] : memref<1x32x64xbf16, #tpu.memory_space<vmem>>, vector<1x32x64xbf16>
    %209 = vector.shape_cast %208 : vector<1x32x64xbf16> to vector<32x64xbf16>
    %cst_77 = arith.constant dense<0.000000e+00> : vector<16x64xf32>
    %210 = tpu.matmul %207, %209, %cst_77 {dimension_numbers = #tpu.dot_dimension_numbers<[1], [0], [0], [1], [0, 0, 1, 1], [], []>} : vector<16x32xbf16>, vector<32x64xbf16>, vector<16x64xf32> -> vector<16x64xf32>
    %c0_78 = arith.constant 0 : index
    %c0_79 = arith.constant 0 : index
    %c0_80 = arith.constant 0 : index
    %211 = vector.load %arg11[%c0_78, %c0_79, %c0_80] : memref<1x1x64xf32, #tpu.memory_space<vmem>>, vector<1x1x64xf32>
    %212 = vector.shape_cast %211 : vector<1x1x64xf32> to vector<1x64xf32>
    %213 = vector.broadcast %212 : vector<1x64xf32> to vector<16x64xf32>
    %214 = arith.addf %210, %213 : vector<16x64xf32>
    %cst_81 = arith.constant 0.000000e+00 : f32
    %215 = vector.broadcast %cst_81 : f32 to vector<16x64xf32>
    %216 = arith.maximumf %214, %215 : vector<16x64xf32>
    %217 = arith.truncf %216 : vector<16x64xf32> to vector<16x64xbf16>
    %c0_82 = arith.constant 0 : index
    %c0_83 = arith.constant 0 : index
    %c0_84 = arith.constant 0 : index
    %218 = vector.load %arg12[%c0_82, %c0_83, %c0_84] : memref<1x64x32xbf16, #tpu.memory_space<vmem>>, vector<1x64x32xbf16>
    %219 = vector.shape_cast %218 : vector<1x64x32xbf16> to vector<64x32xbf16>
    %cst_85 = arith.constant dense<0.000000e+00> : vector<16x32xf32>
    %220 = tpu.matmul %217, %219, %cst_85 {dimension_numbers = #tpu.dot_dimension_numbers<[1], [0], [0], [1], [0, 0, 1, 1], [], []>} : vector<16x64xbf16>, vector<64x32xbf16>, vector<16x32xf32> -> vector<16x32xf32>
    %221 = arith.addf %182, %220 : vector<16x32xf32>
    %c0_86 = arith.constant 0 : index
    %c0_87 = arith.constant 0 : index
    %c0_88 = arith.constant 0 : index
    %222 = vector.load %arg13[%c0_86, %c0_87, %c0_88] : memref<1x1x32xf32, #tpu.memory_space<vmem>>, vector<1x1x32xf32>
    %223 = vector.shape_cast %222 : vector<1x1x32xf32> to vector<1x32xf32>
    %224 = vector.broadcast %223 : vector<1x32xf32> to vector<16x32xf32>
    %225 = arith.addf %221, %224 : vector<16x32xf32>
    %c0_89 = arith.constant 0 : index
    %c0_90 = arith.constant 0 : index
    %226 = vector.load %arg15[%c0_89, %c0_90] : memref<16x32xf32, #tpu.memory_space<vmem>>, vector<16x32xf32>
    tpu.vector_store %arg15[%c0_89, %c0_90], %225 {strides = array<i32>} : memref<16x32xf32, #tpu.memory_space<vmem>>, vector<16x32xf32>,
    %c1_i32 = arith.constant 1 : i32
    %227 = arith.cmpi eq, %arg1, %c1_i32 : i32
    %228 = arith.extui %227 : i1 to i32
    %c0_i32_91 = arith.constant 0 : i32
    %229 = arith.cmpi ne, %228, %c0_i32_91 : i32
    scf.if %229 {
      %c0_92 = arith.constant 0 : index
      %c0_93 = arith.constant 0 : index
      %230 = vector.load %arg14[%c0_92, %c0_93] : memref<16x32xf32, #tpu.memory_space<vmem>>, vector<16x32xf32>
      tpu.vector_store %arg14[%c0_92, %c0_93], %225 {strides = array<i32>} : memref<16x32xf32, #tpu.memory_space<vmem>>, vector<16x32xf32>,
    } else {
    }
    return
  }
  func.func @transform_0(%arg0: i32, %arg1: i32) -> (i32, i32) {
    %c0_i32 = arith.constant 0 : i32
    %c0_i32_0 = arith.constant 0 : i32
    return %arg0, %c0_i32 : i32, i32
  }
  func.func @transform_1(%arg0: i32, %arg1: i32) -> (i32, i32) {
    %c0_i32 = arith.constant 0 : i32
    %c0_i32_0 = arith.constant 0 : i32
    return %arg0, %c0_i32 : i32, i32
  }
  func.func @transform_2(%arg0: i32, %arg1: i32) -> (i32, i32, i32) {
    %c0_i32 = arith.constant 0 : i32
    %c0_i32_0 = arith.constant 0 : i32
    %c0_i32_1 = arith.constant 0 : i32
    return %arg0, %c0_i32, %c0_i32_0 : i32, i32, i32
  }
  func.func @transform_3(%arg0: i32, %arg1: i32) -> (i32, i32, i32) {
    %c0_i32 = arith.constant 0 : i32
    %c0_i32_0 = arith.constant 0 : i32
    %c0_i32_1 = arith.constant 0 : i32
    return %arg0, %c0_i32, %c0_i32_0 : i32, i32, i32
  }
  func.func @transform_4(%arg0: i32, %arg1: i32) -> (i32, i32, i32, i32) {
    %c0_i32 = arith.constant 0 : i32
    %c0_i32_0 = arith.constant 0 : i32
    %c0_i32_1 = arith.constant 0 : i32
    %c0_i32_2 = arith.constant 0 : i32
    return %arg1, %c0_i32, %c0_i32_0, %c0_i32_1 : i32, i32, i32, i32
  }
  func.func @transform_5(%arg0: i32, %arg1: i32) -> (i32, i32, i32) {
    %c0_i32 = arith.constant 0 : i32
    %c0_i32_0 = arith.constant 0 : i32
    %c0_i32_1 = arith.constant 0 : i32
    return %arg1, %c0_i32, %c0_i32_0 : i32, i32, i32
  }
  func.func @transform_6(%arg0: i32, %arg1: i32) -> (i32, i32, i32) {
    %c0_i32 = arith.constant 0 : i32
    %c0_i32_0 = arith.constant 0 : i32
    %c0_i32_1 = arith.constant 0 : i32
    return %arg1, %c0_i32, %c0_i32_0 : i32, i32, i32
  }
  func.func @transform_7(%arg0: i32, %arg1: i32) -> (i32, i32, i32) {
    %c0_i32 = arith.constant 0 : i32
    %c0_i32_0 = arith.constant 0 : i32
    %c0_i32_1 = arith.constant 0 : i32
    return %arg1, %c0_i32, %c0_i32_0 : i32, i32, i32
  }
  func.func @transform_8(%arg0: i32, %arg1: i32) -> (i32, i32, i32) {
    %c0_i32 = arith.constant 0 : i32
    %c0_i32_0 = arith.constant 0 : i32
    %c0_i32_1 = arith.constant 0 : i32
    return %arg1, %c0_i32, %c0_i32_0 : i32, i32, i32
  }
  func.func @transform_9(%arg0: i32, %arg1: i32) -> (i32, i32, i32) {
    %c0_i32 = arith.constant 0 : i32
    %c0_i32_0 = arith.constant 0 : i32
    %c0_i32_1 = arith.constant 0 : i32
    return %arg1, %c0_i32, %c0_i32_0 : i32, i32, i32
  }
  func.func @transform_10(%arg0: i32, %arg1: i32) -> (i32, i32, i32) {
    %c0_i32 = arith.constant 0 : i32
    %c0_i32_0 = arith.constant 0 : i32
    %c0_i32_1 = arith.constant 0 : i32
    return %arg1, %c0_i32, %c0_i32_0 : i32, i32, i32
  }
  func.func @transform_11(%arg0: i32, %arg1: i32) -> (i32, i32, i32) {
    %c0_i32 = arith.constant 0 : i32
    %c0_i32_0 = arith.constant 0 : i32
    %c0_i32_1 = arith.constant 0 : i32
    return %arg1, %c0_i32, %c0_i32_0 : i32, i32, i32
  }
  func.func @transform_12(%arg0: i32, %arg1: i32) -> (i32, i32) {
    %c0_i32 = arith.constant 0 : i32
    %c0_i32_0 = arith.constant 0 : i32
    return %arg0, %c0_i32 : i32, i32
  }
}

</mosaic_0001>

<bundles_post_ra>
// kernel: tpu_custom_call.1
= control target key start
LH: loop header
LB: loop body
LE: loop exit
PB: predicated region body
PF: predicated region fallthrough
CT: control target
= control target key end

     0   :  { %s9194_s0 = inlined_call_operand.hbm [shape: f32[16,32], index: 0, kind: input, shape index: {}]   ;;  %s9195_s1 = inlined_call_operand.hbm [shape: bf16[32,32], index: 1, kind: input, shape index: {}]   ;;  %s9196_s2 = inlined_call_operand.hbm [shape: bf16[2,1,16], index: 2, kind: input, shape index: {}]   ;;  %s9197_s3 = inlined_call_operand.hbm [shape: bf16[2,8,8], index: 3, kind: input, shape index: {}]   ;;  %s9198_s4 = inlined_call_operand.hbm [shape: bf16[2,8,32,32], index: 4, kind: input, shape index: {}]   ;;  %s9199_s5 = inlined_call_operand.hbm [shape: f32[2,8,32], index: 5, kind: input, shape index: {}]   ;;  %s9200_s6 = inlined_call_operand.hbm [shape: f32[2,3,32], index: 6, kind: input, shape index: {}]   ;;  %s9201_s7 = inlined_call_operand.hbm [shape: f32[2,3,32], index: 7, kind: input, shape index: {}]   ;;  %s9202_s8 = inlined_call_operand.hbm [shape: bf16[2,32,64], index: 8, kind: input, shape index: {}]   ;;  %s9203_s9 = inlined_call_operand.hbm [shape: f32[2,1,64], index: 9, kind: input, shape index: {}]   ;;  %s9204_s10 = inlined_call_operand.hbm [shape: bf16[2,64,32], index: 10, kind: input, shape index: {}]   ;;  %s9205_s11 = inlined_call_operand.hbm [shape: f32[2,1,32], index: 11, kind: input, shape index: {}]   ;;  %s9206_s12 = inlined_call_operand.hbm [shape: f32[16,32], index: 12, kind: output, shape index: {}]  }
   0x1   :  { %9234 = sst [smem:[#allocation33_spill]] %s9194_s0 }
   0x2   :  { %9235 = sst [smem:[#allocation34_spill]] %s9195_s1 }
   0x3   :  { %9236 = sst [smem:[#allocation35_spill]] %s9198_s4 }
   0x4   :  { %9237 = sst [smem:[#allocation36_spill]] %s9199_s5 }
   0x5   :  { %9238 = sst [smem:[#allocation37_spill]] %s9200_s6 }
   0x6   :  { %9239 = sst [smem:[#allocation38_spill]] %s9201_s7 }
   0x7   :  { %9240 = sst [smem:[#allocation39_spill]] %s9202_s8 }
   0x8   :  { %9241 = sst [smem:[#allocation40_spill]] %s9203_s9 }
   0x9   :  { %9242 = sst [smem:[#allocation41_spill]] %s9204_s10 }
   0xa   :  { %9243 = sst [smem:[#allocation42_spill]] %s9206_s12 }
   0xb   :  { %17 = vsyncpa [#allocation4], 0 }
   0xc   :  { %18 = vsyncpa [#allocation7], 0 }
   0xd   :  { %19 = vsyncpa [#allocation10], 0 }
   0xe   :  { %20 = vsyncpa [#allocation5], 0  ;;  %s7752_s21 = smov 0   ;;  %s7754_s22 = smov 0  }
   0xf   :  { %s7756_s23 = smov 0   ;;  %s7758_s24 = smov 0  }
  0x10   :  { %s7760_s25 = smov 0   ;;  %s7762_s26 = smov 0  }
  0x11 LB: > { %9244 = sst [smem:[#allocation25_spill]] %s7638_s22  ;;  %s7781_s27 = sadd.s32 4294967295, %s7654_s26   ;;  %s7654_s26 = sphi %s7762_s26, %s26_s26   ;;  %s7650_s25 = sphi %s7760_s25, %s9304_s25   ;;  %s7646_s24 = sphi %s7758_s24, %s9303_s24   ;;  %s7642_s23 = sphi %s7756_s23, %s9301_s23   ;;  %s7638_s22 = sphi %s7754_s22, %s9300_s22   ;;  %s7634_s21 = sphi %s7752_s21, %s9299_s21  }
  0x12   : > { %9245 = sst [smem:[#allocation26_spill]] %s7642_s23  ;;  %s35_s28 = sadd.s32 1, %s7650_s25 }
  0x13   : > { %9246 = sst [smem:[#allocation27_spill]] %s7646_s24  ;;  %p36_p0 = scmp.ge.s32.totalorder %s35_s28, 2 }
  0x14   : > { %9247 = sst [smem:[#allocation28_spill]] %s7781_s27  ;;  %s149_s29 = sadd.s32 1, %s7642_s23 }
  0x15   : > { %p156_p1 = scmp.ne.s32.totalorder %s7642_s23, %s7638_s22  ;;  %p157_p2 = scmp.eq.s32.totalorder %s7654_s26, 0 }
  0x16   : > { %s9306_s28 = smov (%p36_p0, %s35_s28), 0  ;;  %p162_p4 = scmp.ne.s32.totalorder %s7638_s22, %s7634_s21 }
  0x17   : > { %9248 = sst [smem:[#allocation29_spill]] %s9306_s28  ;;  %p7790_p3 = por %p157_p2, %p156_p1 }
  0x18   : > { %s146_s13 = ssub.s32 %s7650_s25, %s9306_s28  ;;  %p9209_p5 = scmp.eq.s32.totalorder %s7781_s27, 0 }
  0x19   : > { %s9249_s30 = scalar_select %p7790_p3, 1, 0 }
  0x1a   : > { %p147_p6 = scmp.eq.s32.totalorder %s146_s13, 0  ;;  %p6357_p7 = scmp.ge.s32.totalorder %s7654_s26, 1 }
  0x1b   : > { %p7801_p8 = por %p9209_p5, %p162_p4  ;;  %p381_p9 = scmp.lt.s32.totalorder %s7654_s26, 3 }
  0x1c   : > { %s7807_s15 = scalar_select %p147_p6, %s7642_s23, %s149_s29  }
  0x1d   : > { %s9250_s14 = scalar_select %p7801_p8, 1, 0 }
  0x1e   : > { %9252 = sst [smem:[#allocation31_spill]] %s7807_s15  ;;  %p7809_p10 = pnand %p6357_p7, %p381_p9 }
  0x1f   : > { %9251 = sst [smem:[#allocation30_spill]] %s9250_s14  ;;  %s7656_s17 = smov [#allocation3]  }
  0x20   : > { %s9253_s16 = scalar_select %p7809_p10, 1, 0 }
  0x21   : > { %p6952_p11 = pneg %p7809_p10  ;;  %s396_s18 = sshll.u32 %s7656_s17, 4  ;;  %s397_s18 = int_to_ptr.vmem [resolvable:$true] %s396_s18 }
  0x22   : > { %9254 = sst [smem:[#allocation32_spill]] %s9253_s16  ;;  %s9256_s0 = sld [smem:[#allocation33_spill]] }
  0x23   : > { %p7817_p12 = pnand %p6952_p11, %p9209_p5 }
  0x25   : > { %s9255_s19 = scalar_select %p7817_p12, 1, 0 }
  0x26   : > { %p7830_p1 = pneg %p7817_p12 }
  0x28   : > { %s7210_s29 = scalar_lea.hbm %s9256_s0, 256 }
  0x29   : > { %p7211_p0 = scmp.ne.s32.totalorder %s9256_s0, %s7210_s29  ;;  %p7217_p6 = scmp.lt.u32.totalorder %s7210_s29, %s9256_s0 }
  0x2a   : > { %s9257_s15 = scalar_select %p7830_p1, 1, 0 }
  0x2b   : > { %p7213_p2 = pnand %p7830_p1, %p7211_p0 }
  0x2d   : > { %p7214_p4 = pneg %p7213_p2 }
  0x2f   : > { %p7219_p7 = pnand %p7217_p6, %p7214_p4 }
  0x31   : > { %7222 = shalt.err (!%p7219_p7)
}
  0x32   : > { %s7223_s20 = scalar_lea.vmem %s397_s18, 256  ;;  %p7231_p13 = scmp.lt.s32.totalorder %s397_s18, %s397_s18 }
  0x33   : > { %p7224_p9 = scmp.ne.s32.totalorder %s397_s18, %s7223_s20  ;;  %p7232_p8 = scmp.lt.s32.totalorder %s7223_s20, %s7223_s20 }
  0x35   : > { %p7226_p11 = pnand %p7224_p9, %p7830_p1  ;;  %p7233_p10 = por %p7232_p8, %p7231_p13 }
  0x37   : > { %p7227_p5 = pneg %p7226_p11 }
  0x39   : > { %p7234_p3 = pnand %p7233_p10, %p7227_p5 }
  0x3b   : > { %7237 = shalt.err (!%p7234_p3)
}
  0x3c   : > { %s7657_s28 = smov 128   ;;  %s7658_s12 = smov 8  }
  0x3d   : > { %6955 = dma.hbm_to_vmem [thread:$0]  (!%p7817_p12), %s9256_s0, 256, %s397_s18, [#allocation4], %s7657_s28, %s7657_s28, %s7658_s12  }
  0x3e   : > { %p9258_p0 = scmp.ne.s32.totalorder %s9249_s30, 0  ;;  %p9259_p2 = scmp.lt.s32.totalorder %s7654_s26, 2 }
  0x3f   : > { %s458_s17 = sand.u32 1, %s7654_s26   ;;  %s7856_s20 = sand.u32 1, %s7642_s23  }
  0x40   : > { %p7850_p4 = pnand %p9259_p2, %p9258_p0  ;;  %s6363_s24 = sshll.u32 %s7856_s20, 7 }
  0x41   : > { %s6535_s14 = sshll.u32 %s7650_s25, 11  ;;  %s9261_s4 = sld [smem:[#allocation35_spill]] }
  0x42   : > { %s9260_s13 = scalar_select %p7850_p4, 1, 0 }
  0x43   : > { %s462_s30 = scalar_lea.vmem [#allocation11], %s6363_s24  ;;  %s6366_s28 = sshll.u32 %s7856_s20, 3 }
  0x44   : > { %s469_s18 = sshll.u32 %s462_s30, 4  ;;  %s7868_s12 = scalar_lea.sflag [#allocation4], %s458_s17  ;;  %s7865_s18 = int_to_ptr.vmem [resolvable:$true] %s469_s18 }
  0x45   : > { %p7874_p5 = pneg %p7850_p4 }
  0x47   : > { %s7863_s16 = scalar_lea.hbm %s9261_s4, %s6535_s14  ;;  %s7243_s24 = scalar_lea.hbm %s9261_s4, 4096 }
  0x48   : > { %s7238_s21 = scalar_lea.hbm %s7863_s16, 2048  ;;  %p7244_p13 = scmp.lt.u32.totalorder %s7863_s16, %s9261_s4 }
  0x49   : > { %p7239_p3 = scmp.ne.s32.totalorder %s7863_s16, %s7238_s21  ;;  %p7245_p6 = scmp.lt.u32.totalorder %s7243_s24, %s7238_s21 }
  0x4a   : > { %s9262_s29 = scalar_select %p7874_p5, 1, 0 }
  0x4b   : > { %p7241_p8 = pnand %p7874_p5, %p7239_p3  ;;  %p7246_p7 = por %p7245_p6, %p7244_p13 }
  0x4c   : > { %p7247_p9 = scmp.lt.u32.totalorder %s7238_s21, %s7863_s16 }
  0x4d   : > { %p7242_p10 = pneg %p7241_p8 }
  0x4e   : > { %p7248_p11 = por %p7247_p9, %p7246_p7 }
  0x50   : > { %p7249_p0 = pnand %p7248_p11, %p7242_p10 }
  0x52   : > { %7252 = shalt.err (!%p7249_p0)
}
  0x53   : > { %s7253_s17 = scalar_lea.vmem %s7865_s18, 2048  ;;  %s7659_s22 = smov [#allocation11]  }
  0x54   : > { %p7254_p2 = scmp.ne.s32.totalorder %s7865_s18, %s7253_s17  ;;  %s7258_s27 = sshll.u32 %s7659_s22, 4  ;;  %s7259_s27 = int_to_ptr.vmem [resolvable:$false] %s7258_s27 }
  0x55   : > { %s7260_s14 = scalar_lea.vmem %s7259_s27, 4096  ;;  %p7261_p12 = scmp.lt.s32.totalorder %s7865_s18, %s7259_s27 }
  0x56   : > { %p7256_p3 = pnand %p7254_p2, %p7874_p5  ;;  %p7262_p1 = scmp.lt.s32.totalorder %s7260_s14, %s7253_s17 }
  0x58   : > { %p7257_p8 = pneg %p7256_p3  ;;  %p7263_p13 = por %p7262_p1, %p7261_p12 }
  0x5a   : > { %p7264_p6 = pnand %p7263_p13, %p7257_p8 }
  0x5c   : > { %7267 = shalt.err (!%p7264_p6)
}
  0x5d   : > { %s9224_s21 = smov 64   ;;  %s9228_s24 = smov 4  }
  0x5e   : > { %6968 = dma.hbm_to_vmem [thread:$0]  (!%p7850_p4), %s7863_s16, 2048, %s7865_s18, %s7868_s12, %s9224_s21, %s9224_s21, %s9228_s24  }
  0x5f   : > { %s6367_s30 = sshll.u32 %s7650_s25, 7  ;;  %s9263_s5 = sld [smem:[#allocation36_spill]] }
  0x60   : > { %s483_s14 = scalar_lea.vmem [#allocation12], %s6366_s28  ;;  %s6368_s4 = sshll.u32 %s7856_s20, 2 }
  0x61   : > { %s490_s0 = sshll.u32 %s483_s14, 4  ;;  %s491_s0 = int_to_ptr.vmem [resolvable:$true] %s490_s0 }
  0x65   : > { %s7905_s27 = scalar_lea.hbm %s9263_s5, %s6367_s30  ;;  %s7273_s17 = scalar_lea.hbm %s9263_s5, 256 }
  0x66   : > { %s7268_s23 = scalar_lea.hbm %s7905_s27, 128  ;;  %p7274_p7 = scmp.lt.u32.totalorder %s7905_s27, %s9263_s5 }
  0x67   : > { %p7269_p12 = scmp.ne.s32.totalorder %s7905_s27, %s7268_s23  ;;  %p7275_p9 = scmp.lt.u32.totalorder %s7273_s17, %s7268_s23 }
  0x68   : > { %p7277_p0 = scmp.lt.u32.totalorder %s7268_s23, %s7905_s27 }
  0x69   : > { %p7271_p1 = pnand %p7269_p12, %p7874_p5  ;;  %p7276_p11 = por %p7275_p9, %p7274_p7 }
  0x6b   : > { %p7272_p10 = pneg %p7271_p1  ;;  %p7278_p2 = por %p7277_p0, %p7276_p11 }
  0x6d   : > { %p7279_p3 = pnand %p7278_p2, %p7272_p10 }
  0x6f   : > { %7282 = shalt.err (!%p7279_p3)
}
  0x70   : > { %s7283_s28 = scalar_lea.vmem %s491_s0, 128  ;;  %s7662_s14 = smov [#allocation12]  }
  0x71   : > { %p7284_p8 = scmp.ne.s32.totalorder %s491_s0, %s7283_s28  ;;  %s7288_s21 = sshll.u32 %s7662_s14, 4  ;;  %s7289_s21 = int_to_ptr.vmem [resolvable:$false] %s7288_s21 }
  0x72   : > { %s7290_s16 = scalar_lea.vmem %s7289_s21, 256  ;;  %p7291_p12 = scmp.lt.s32.totalorder %s491_s0, %s7289_s21 }
  0x73   : > { %p7286_p13 = pnand %p7284_p8, %p7874_p5  ;;  %p7292_p1 = scmp.lt.s32.totalorder %s7290_s16, %s7283_s28 }
  0x75   : > { %p7287_p6 = pneg %p7286_p13  ;;  %p7293_p4 = por %p7292_p1, %p7291_p12 }
  0x77   : > { %p7294_p7 = pnand %p7293_p4, %p7287_p6 }
  0x79   : > { %7297 = shalt.err (!%p7294_p7)
}
  0x7a   : > { %p9264_p9 = scmp.ne.s32.totalorder %s9260_s13, 0  ;;  %s6369_s23 = sshll.u32 %s7650_s25, 6 }
  0x7b   : > { %s9265_s6 = sld [smem:[#allocation37_spill]]  ;;  %s501_s21 = scalar_lea.vmem [#allocation13], %s6368_s4 }
  0x7c   : > { %6971 = dma.hbm_to_vmem [thread:$0]  (!%p9264_p9), %s7905_s27, 128, %s491_s0, %s7868_s12  }
  0x7d   : > { %s508_s22 = sshll.u32 %s501_s21, 4  ;;  %s509_s22 = int_to_ptr.vmem [resolvable:$true] %s508_s22 }
  0x81   : > { %s7934_s30 = scalar_lea.hbm %s9265_s6, %s6369_s23  ;;  %s7303_s14 = scalar_lea.hbm %s9265_s6, 128 }
  0x82   : > { %s7298_s28 = scalar_lea.hbm %s7934_s30, 64  ;;  %p7304_p0 = scmp.lt.u32.totalorder %s7934_s30, %s9265_s6 }
  0x83   : > { %p7299_p4 = scmp.ne.s32.totalorder %s7934_s30, %s7298_s28  ;;  %p7305_p2 = scmp.lt.u32.totalorder %s7303_s14, %s7298_s28 }
  0x84   : > { %p7307_p8 = scmp.lt.u32.totalorder %s7298_s28, %s7934_s30 }
  0x85   : > { %p7301_p10 = pnand %p7299_p4, %p7874_p5  ;;  %p7306_p3 = por %p7305_p2, %p7304_p0 }
  0x87   : > { %p7302_p11 = pneg %p7301_p10  ;;  %p7308_p13 = por %p7307_p8, %p7306_p3 }
  0x89   : > { %p7309_p6 = pnand %p7308_p13, %p7302_p11 }
  0x8b   : > { %7312 = shalt.err (!%p7309_p6)
}
  0x8c   : > { %s7313_s17 = scalar_lea.vmem %s509_s22, 64  ;;  %s7663_s21 = smov [#allocation13]  }
  0x8d   : > { %p7314_p12 = scmp.ne.s32.totalorder %s509_s22, %s7313_s17  ;;  %s7318_s24 = sshll.u32 %s7663_s21, 4  ;;  %s7319_s24 = int_to_ptr.vmem [resolvable:$false] %s7318_s24 }
  0x8e   : > { %s7320_s0 = scalar_lea.vmem %s7319_s24, 128  ;;  %p7321_p4 = scmp.lt.s32.totalorder %s509_s22, %s7319_s24 }
  0x8f   : > { %p7316_p1 = pnand %p7314_p12, %p7874_p5  ;;  %p7322_p10 = scmp.lt.s32.totalorder %s7320_s0, %s7313_s17 }
  0x91   : > { %p7317_p7 = pneg %p7316_p1  ;;  %p7323_p9 = por %p7322_p10, %p7321_p4 }
  0x93   : > { %p7324_p0 = pnand %p7323_p9, %p7317_p7 }
  0x95   : > { %7327 = shalt.err (!%p7324_p0)
}
  0x96   : > { %p9266_p2 = scmp.ne.s32.totalorder %s9260_s13, 0  ;;  %s9267_s7 = sld [smem:[#allocation38_spill]] }
  0x97   : > { %s519_s24 = scalar_lea.vmem [#allocation14], %s6368_s4  ;;  %s6372_s18 = sshll.u32 %s7856_s20, 4 }
  0x98   : > { %6974 = dma.hbm_to_vmem [thread:$0]  (!%p9266_p2), %s7934_s30, 64, %s509_s22, %s7868_s12  }
  0x99   : > { %s526_s16 = sshll.u32 %s519_s24, 4  ;;  %s527_s16 = int_to_ptr.vmem [resolvable:$true] %s526_s16 }
  0x9c   : > { %s7961_s14 = scalar_lea.hbm %s9267_s7, %s6369_s23  ;;  %s7333_s21 = scalar_lea.hbm %s9267_s7, 128 }
  0x9d   : > { %s7328_s17 = scalar_lea.hbm %s7961_s14, 64  ;;  %p7334_p8 = scmp.lt.u32.totalorder %s7961_s14, %s9267_s7 }
  0x9e   : > { %p7329_p9 = scmp.ne.s32.totalorder %s7961_s14, %s7328_s17  ;;  %p7335_p13 = scmp.lt.u32.totalorder %s7333_s21, %s7328_s17 }
  0x9f   : > { %p7337_p12 = scmp.lt.u32.totalorder %s7328_s17, %s7961_s14 }
  0xa0   : > { %p7331_p11 = pnand %p7329_p9, %p7874_p5  ;;  %p7336_p6 = por %p7335_p13, %p7334_p8 }
  0xa2   : > { %p7332_p3 = pneg %p7331_p11  ;;  %p7338_p1 = por %p7337_p12, %p7336_p6 }
  0xa4   : > { %p7339_p7 = pnand %p7338_p1, %p7332_p3 }
  0xa6   : > { %7342 = shalt.err (!%p7339_p7)
}
  0xa7   : > { %s7343_s4 = scalar_lea.vmem %s527_s16, 64  ;;  %s7664_s28 = smov [#allocation14]  }
  0xa8   : > { %p7344_p4 = scmp.ne.s32.totalorder %s527_s16, %s7343_s4  ;;  %s7348_s27 = sshll.u32 %s7664_s28, 4  ;;  %s7349_s27 = int_to_ptr.vmem [resolvable:$false] %s7348_s27 }
  0xa9   : > { %s7350_s24 = scalar_lea.vmem %s7349_s27, 128  ;;  %p7351_p9 = scmp.lt.s32.totalorder %s527_s16, %s7349_s27 }
  0xaa   : > { %p7346_p10 = pnand %p7344_p4, %p7874_p5  ;;  %p7352_p11 = scmp.lt.s32.totalorder %s7350_s24, %s7343_s4 }
  0xac   : > { %p7347_p0 = pneg %p7346_p10  ;;  %p7353_p2 = por %p7352_p11, %p7351_p9 }
  0xae   : > { %p7354_p8 = pnand %p7353_p2, %p7347_p0 }
  0xb0   : > { %7357 = shalt.err (!%p7354_p8)
}
  0xb1   : > { %p9268_p13 = scmp.ne.s32.totalorder %s9260_s13, 0  ;;  %s6536_s17 = sshll.u32 %s7650_s25, 8 }
  0xb2   : > { %s9269_s8 = sld [smem:[#allocation39_spill]]  ;;  %s537_s23 = scalar_lea.vmem [#allocation15], %s6372_s18 }
  0xb3   : > { %6977 = dma.hbm_to_vmem [thread:$0]  (!%p9268_p13), %s7961_s14, 64, %s527_s16, %s7868_s12  }
  0xb4   : > { %s544_s0 = sshll.u32 %s537_s23, 4  ;;  %s7992_s0 = int_to_ptr.vmem [resolvable:$true] %s544_s0 }
  0xb8   : > { %s7988_s21 = scalar_lea.hbm %s9269_s8, %s6536_s17  ;;  %s7363_s28 = scalar_lea.hbm %s9269_s8, 512 }
  0xb9   : > { %s7358_s4 = scalar_lea.hbm %s7988_s21, 256  ;;  %p7364_p12 = scmp.lt.u32.totalorder %s7988_s21, %s9269_s8 }
  0xba   : > { %p7359_p2 = scmp.ne.s32.totalorder %s7988_s21, %s7358_s4  ;;  %p7365_p1 = scmp.lt.u32.totalorder %s7363_s28, %s7358_s4 }
  0xbb   : > { %p7367_p4 = scmp.lt.u32.totalorder %s7358_s4, %s7988_s21 }
  0xbc   : > { %p7361_p3 = pnand %p7359_p2, %p7874_p5  ;;  %p7366_p7 = por %p7365_p1, %p7364_p12 }
  0xbe   : > { %p7362_p6 = pneg %p7361_p3  ;;  %p7368_p10 = por %p7367_p4, %p7366_p7 }
  0xc0   : > { %p7369_p0 = pnand %p7368_p10, %p7362_p6 }
  0xc2   : > { %7372 = shalt.err (!%p7369_p0)
}
  0xc3   : > { %s7373_s18 = scalar_lea.vmem %s7992_s0, 256  ;;  %s7665_s17 = smov [#allocation15]  }
  0xc4   : > { %p7374_p9 = scmp.ne.s32.totalorder %s7992_s0, %s7373_s18  ;;  %s7378_s30 = sshll.u32 %s7665_s17, 4  ;;  %s7379_s30 = int_to_ptr.vmem [resolvable:$false] %s7378_s30 }
  0xc5   : > { %s7380_s22 = scalar_lea.vmem %s7379_s30, 512  ;;  %p7381_p2 = scmp.lt.s32.totalorder %s7992_s0, %s7379_s30 }
  0xc6   : > { %p7376_p11 = pnand %p7374_p9, %p7874_p5  ;;  %p7382_p3 = scmp.lt.s32.totalorder %s7380_s22, %s7373_s18 }
  0xc8   : > { %p7377_p8 = pneg %p7376_p11  ;;  %p7383_p12 = por %p7382_p3, %p7381_p2 }
  0xca   : > { %p7384_p1 = pnand %p7383_p12, %p7377_p8 }
  0xcc   : > { %7387 = shalt.err (!%p7384_p1)
}
  0xcd   : > { %s9270_s23 = smov 4   ;;  %s9271_s4 = smov 64  }
  0xce   : > { %6980 = dma.hbm_to_vmem [thread:$0]  (!%p9268_p13), %s7988_s21, 256, %s7992_s0, %s7868_s12, %s9271_s4, %s9271_s4, %s9270_s23  }
  0xcf   : > { %s9231_s14 = sshll.u32 %s7650_s25, 4  ;;  %s557_s16 = scalar_lea.vmem [#allocation16], %s7856_s20 }
  0xd0   : > { %s564_s28 = sshll.u32 %s557_s16, 4  ;;  %s9272_s9 = sld [smem:[#allocation40_spill]]  ;;  %s565_s28 = int_to_ptr.vmem [resolvable:$true] %s564_s28 }
  0xd6   : > { %s562_s18 = scalar_lea.hbm %s9272_s9, %s9231_s14  ;;  %s7393_s5 = scalar_lea.hbm %s9272_s9, 32 }
  0xd7   : > { %s7388_s17 = scalar_lea.hbm %s562_s18, 16  ;;  %p7394_p10 = scmp.lt.u32.totalorder %s562_s18, %s9272_s9 }
  0xd8   : > { %p7389_p6 = scmp.ne.s32.totalorder %s562_s18, %s7388_s17  ;;  %p7395_p0 = scmp.lt.u32.totalorder %s7393_s5, %s7388_s17 }
  0xd9   : > { %p7397_p11 = scmp.lt.u32.totalorder %s7388_s17, %s562_s18 }
  0xda   : > { %p7391_p7 = pnand %p7389_p6, %p7874_p5  ;;  %p7396_p9 = por %p7395_p0, %p7394_p10 }
  0xdc   : > { %p7392_p4 = pneg %p7391_p7  ;;  %p7398_p8 = por %p7397_p11, %p7396_p9 }
  0xde   : > { %p7399_p2 = pnand %p7398_p8, %p7392_p4 }
  0xe0   : > { %7402 = shalt.err (!%p7399_p2)
}
  0xe1   : > { %s7403_s0 = scalar_lea.vmem %s565_s28, 16  ;;  %s7666_s16 = smov [#allocation16]  }
  0xe2   : > { %p7404_p3 = scmp.ne.s32.totalorder %s565_s28, %s7403_s0  ;;  %s7408_s27 = sshll.u32 %s7666_s16, 4  ;;  %s7409_s27 = int_to_ptr.vmem [resolvable:$false] %s7408_s27 }
  0xe3   : > { %s7410_s24 = scalar_lea.vmem %s7409_s27, 32  ;;  %p7411_p6 = scmp.lt.s32.totalorder %s565_s28, %s7409_s27 }
  0xe4   : > { %p7406_p12 = pnand %p7404_p3, %p7874_p5  ;;  %p7412_p7 = scmp.lt.s32.totalorder %s7410_s24, %s7403_s0 }
  0xe6   : > { %p7407_p1 = pneg %p7406_p12  ;;  %p7413_p13 = por %p7412_p7, %p7411_p6 }
  0xe8   : > { %p7414_p0 = pnand %p7413_p13, %p7407_p1 }
  0xea   : > { %7417 = shalt.err (!%p7414_p0)
}
  0xeb   : > { %p9273_p10 = scmp.ne.s32.totalorder %s9260_s13, 0  ;;  %s6376_s5 = sshll.u32 %s7856_s20, 5 }
  0xec   : > { %s7667_s6 = smov [#allocation6]   ;;  %s6537_s30 = sshll.u32 %s7650_s25, 9 }
  0xed   : > { %6983 = dma.hbm_to_vmem [thread:$0]  (!%p9273_p10), %s562_s18, 16, %s565_s28, %s7868_s12  }
  0xee   : > { %s412_s17 = sshll.u32 %s7667_s6, 4  ;;  %s9274_s1 = sld [smem:[#allocation34_spill]]  ;;  %s413_s17 = int_to_ptr.vmem [resolvable:$true] %s412_s17 }
  0xef   : > { %p9275_p4 = scmp.ne.s32.totalorder %s9257_s15, 0 }
  0xf4   : > { %s7418_s16 = scalar_lea.hbm %s9274_s1, 256 }
  0xf5   : > { %p7419_p13 = scmp.ne.s32.totalorder %s9274_s1, %s7418_s16  ;;  %p7425_p8 = scmp.lt.u32.totalorder %s7418_s16, %s9274_s1 }
  0xf7   : > { %p7421_p9 = pnand %p7419_p13, %p9275_p4 }
  0xf9   : > { %p7422_p11 = pneg %p7421_p9 }
  0xfb   : > { %p7427_p2 = pnand %p7425_p8, %p7422_p11 }
  0xfd   : > { %7430 = shalt.err (!%p7427_p2)
}
  0xfe   : > { %s7431_s28 = scalar_lea.vmem %s413_s17, 256  ;;  %p7439_p6 = scmp.lt.s32.totalorder %s413_s17, %s413_s17 }
  0xff   : > { %p7432_p3 = scmp.ne.s32.totalorder %s413_s17, %s7431_s28  ;;  %p7440_p7 = scmp.lt.s32.totalorder %s7431_s28, %s7431_s28 }
 0x101   : > { %p7434_p12 = pnand %p7432_p3, %p9275_p4  ;;  %p7441_p0 = por %p7440_p7, %p7439_p6 }
 0x103   : > { %p7435_p1 = pneg %p7434_p12 }
 0x105   : > { %p7442_p10 = pnand %p7441_p0, %p7435_p1 }
 0x107   : > { %7445 = shalt.err (!%p7442_p10)
}
 0x108   : > { %p9276_p13 = scmp.ne.s32.totalorder %s9255_s19, 0  ;;  %s9277_s10 = sld [smem:[#allocation41_spill]] }
 0x109   : > { %s575_s16 = scalar_lea.vmem [#allocation17], %s6376_s5 }
 0x10a   : > { %6958 = dma.hbm_to_vmem [thread:$0]  (!%p9276_p13), %s9274_s1, 256, %s413_s17, [#allocation7], %s9271_s4, %s9271_s4, %s9270_s23  }
 0x10b   : > { %s582_s0 = sshll.u32 %s575_s16, 4  ;;  %s8067_s0 = int_to_ptr.vmem [resolvable:$true] %s582_s0 }
 0x10e   : > { %s8065_s21 = scalar_lea.hbm %s9277_s10, %s6537_s30  ;;  %s7451_s28 = scalar_lea.hbm %s9277_s10, 1024 }
 0x10f   : > { %s7446_s27 = scalar_lea.hbm %s8065_s21, 512  ;;  %p7452_p8 = scmp.lt.u32.totalorder %s8065_s21, %s9277_s10 }
 0x110   : > { %p7447_p10 = scmp.ne.s32.totalorder %s8065_s21, %s7446_s27  ;;  %p7453_p2 = scmp.lt.u32.totalorder %s7451_s28, %s7446_s27 }
 0x111   : > { %p7455_p12 = scmp.lt.u32.totalorder %s7446_s27, %s8065_s21 }
 0x112   : > { %p7449_p9 = pnand %p7447_p10, %p7874_p5  ;;  %p7454_p3 = por %p7453_p2, %p7452_p8 }
 0x114   : > { %p7450_p11 = pneg %p7449_p9  ;;  %p7456_p1 = por %p7455_p12, %p7454_p3 }
 0x116   : > { %p7457_p6 = pnand %p7456_p1, %p7450_p11 }
 0x118   : > { %7460 = shalt.err (!%p7457_p6)
}
 0x119   : > { %s7461_s5 = scalar_lea.vmem %s8067_s0, 512  ;;  %s7668_s18 = smov [#allocation17]  }
 0x11a   : > { %p7462_p7 = scmp.ne.s32.totalorder %s8067_s0, %s7461_s5  ;;  %s7466_s6 = sshll.u32 %s7668_s18, 4  ;;  %s7467_s6 = int_to_ptr.vmem [resolvable:$false] %s7466_s6 }
 0x11b   : > { %s7468_s22 = scalar_lea.vmem %s7467_s6, 1024  ;;  %p7469_p9 = scmp.lt.s32.totalorder %s8067_s0, %s7467_s6 }
 0x11c   : > { %p7464_p0 = pnand %p7462_p7, %p7874_p5  ;;  %p7470_p13 = scmp.lt.s32.totalorder %s7468_s22, %s7461_s5 }
 0x11e   : > { %p7465_p10 = pneg %p7464_p0  ;;  %p7471_p8 = por %p7470_p13, %p7469_p9 }
 0x120   : > { %p7472_p2 = pnand %p7471_p8, %p7465_p10 }
 0x122   : > { %7475 = shalt.err (!%p7472_p2)
}
 0x123   : > { %p9278_p11 = scmp.ne.s32.totalorder %s9260_s13, 0  ;;  %s7669_s16 = smov [#allocation8]  }
 0x124   : > { %s428_s27 = sshll.u32 %s7669_s16, 4  ;;  %s7476_s28 = scalar_lea.hbm %s9196_s2, 32  ;;  %s429_s27 = int_to_ptr.vmem [resolvable:$true] %s428_s27 }
 0x125   : > { %6986 = dma.hbm_to_vmem [thread:$0]  (!%p9278_p11), %s8065_s21, 512, %s8067_s0, %s7868_s12, %s9271_s4, %s9271_s4, %s9270_s23  }
 0x126   : > { %p7477_p13 = scmp.ne.s32.totalorder %s9196_s2, %s7476_s28  ;;  %p7483_p1 = scmp.lt.u32.totalorder %s7476_s28, %s9196_s2 }
 0x128   : > { %p7479_p3 = pnand %p7477_p13, %p9275_p4 }
 0x12a   : > { %p7480_p12 = pneg %p7479_p3 }
 0x12c   : > { %p7485_p6 = pnand %p7483_p1, %p7480_p12 }
 0x12e   : > { %7488 = shalt.err (!%p7485_p6)
}
 0x12f   : > { %s7489_s21 = scalar_lea.vmem %s429_s27, 32  ;;  %p7497_p9 = scmp.lt.s32.totalorder %s429_s27, %s429_s27 }
 0x130   : > { %p7490_p7 = scmp.ne.s32.totalorder %s429_s27, %s7489_s21  ;;  %p7498_p8 = scmp.lt.s32.totalorder %s7489_s21, %s7489_s21 }
 0x132   : > { %p7492_p0 = pnand %p7490_p7, %p9275_p4  ;;  %p7499_p2 = por %p7498_p8, %p7497_p9 }
 0x134   : > { %p7493_p10 = pneg %p7492_p0 }
 0x136   : > { %p7500_p11 = pnand %p7499_p2, %p7493_p10 }
 0x138   : > { %7503 = shalt.err (!%p7500_p11)
}
 0x139   : > { %s7670_s0 = smov 16   ;;  %s7671_s6 = smov 1  }
 0x13a   : > { %p9279_p13 = scmp.ne.s32.totalorder %s9255_s19, 0  ;;  %s7672_s24 = smov [#allocation9]  }
 0x13b   : > { %s444_s17 = sshll.u32 %s7672_s24, 4  ;;  %s9280_s28 = sshll.u32 %s7650_s25, 4  ;;  %s445_s17 = int_to_ptr.vmem [resolvable:$true] %s444_s17 }
 0x13c   : > { %6961 = dma.hbm_to_vmem [thread:$0]  (!%p9279_p13), %s9196_s2, 32, %s429_s27, [#allocation7], %s7670_s0, %s7670_s0, %s7671_s6  }
 0x13d   : > { %s8117_s5 = scalar_lea.hbm %s9205_s11, %s9280_s28  ;;  %s595_s18 = scalar_lea.vmem [#allocation18], %s7856_s20 }
 0x13e   : > { %s602_s21 = sshll.u32 %s595_s18, 4  ;;  %s7504_s8 = scalar_lea.hbm %s9197_s3, 128  ;;  %s603_s21 = int_to_ptr.vmem [resolvable:$true] %s602_s21 }
 0x13f   : > { %p7505_p11 = scmp.ne.s32.totalorder %s9197_s3, %s7504_s8  ;;  %p7511_p1 = scmp.lt.u32.totalorder %s7504_s8, %s9197_s3 }
 0x141   : > { %p7507_p3 = pnand %p7505_p11, %p9275_p4 }
 0x143   : > { %p7508_p12 = pneg %p7507_p3 }
 0x145   : > { %p7513_p6 = pnand %p7511_p1, %p7508_p12 }
 0x147   : > { %7516 = shalt.err (!%p7513_p6)
}
 0x148   : > { %s7517_s6 = scalar_lea.vmem %s445_s17, 128  ;;  %p7525_p9 = scmp.lt.s32.totalorder %s445_s17, %s445_s17 }
 0x149   : > { %p7518_p7 = scmp.ne.s32.totalorder %s445_s17, %s7517_s6  ;;  %p7526_p8 = scmp.lt.s32.totalorder %s7517_s6, %s7517_s6 }
 0x14b   : > { %p7520_p0 = pnand %p7518_p7, %p9275_p4  ;;  %p7527_p2 = por %p7526_p8, %p7525_p9 }
 0x14d   : > { %p7521_p10 = pneg %p7520_p0 }
 0x14f   : > { %p7528_p5 = pnand %p7527_p2, %p7521_p10 }
 0x151   : > { %7531 = shalt.err (!%p7528_p5)
}
 0x152   : > { %6964 = dma.hbm_to_vmem [thread:$0]  (!%p9279_p13), %s9197_s3, 128, %s445_s17, [#allocation10], %s9271_s4, %s9271_s4, %s9270_s23  }
 0x153   : > { %s7532_s8 = scalar_lea.hbm %s8117_s5, 16  ;;  %p9281_p11 = scmp.ne.s32.totalorder %s9262_s29, 0 }
 0x154   : > { %p7533_p4 = scmp.ne.s32.totalorder %s8117_s5, %s7532_s8  ;;  %s7537_s15 = scalar_lea.hbm %s9205_s11, 32 }
 0x155   : > { %p7538_p12 = scmp.lt.u32.totalorder %s8117_s5, %s9205_s11  ;;  %p7539_p1 = scmp.lt.u32.totalorder %s7537_s15, %s7532_s8 }
 0x156   : > { %p7535_p3 = pnand %p7533_p4, %p9281_p11  ;;  %p7541_p7 = scmp.lt.u32.totalorder %s7532_s8, %s8117_s5 }
 0x157   : > { %p7540_p6 = por %p7539_p1, %p7538_p12 }
 0x158   : > { %p7536_p5 = pneg %p7535_p3 }
 0x159   : > { %p7542_p0 = por %p7541_p7, %p7540_p6 }
 0x15b   : > { %p7543_p10 = pnand %p7542_p0, %p7536_p5 }
 0x15d   : > { %7546 = shalt.err (!%p7543_p10)
}
 0x15e   : > { %s7547_s23 = scalar_lea.vmem %s603_s21, 16  ;;  %s7673_s4 = smov [#allocation18]  }
 0x15f   : > { %p7548_p13 = scmp.ne.s32.totalorder %s603_s21, %s7547_s23  ;;  %s7552_s22 = sshll.u32 %s7673_s4, 4  ;;  %s7553_s22 = int_to_ptr.vmem [resolvable:$false] %s7552_s22 }
 0x160   : > { %s7554_s16 = scalar_lea.vmem %s7553_s22, 32  ;;  %p7555_p2 = scmp.lt.s32.totalorder %s603_s21, %s7553_s22 }
 0x161   : > { %p7550_p9 = pnand %p7548_p13, %p9281_p11  ;;  %p7556_p4 = scmp.lt.s32.totalorder %s7554_s16, %s7547_s23 }
 0x163   : > { %p7551_p8 = pneg %p7550_p9  ;;  %p7557_p3 = por %p7556_p4, %p7555_p2 }
 0x165   : > { %p7558_p1 = pnand %p7557_p3, %p7551_p8 }
 0x167   : > { %7561 = shalt.err (!%p7558_p1)
}
 0x168   : > { %p9282_p12 = scmp.ne.s32.totalorder %s9260_s13, 0  ;;  %s9283_s24 = sld [smem:[#allocation32_spill]] }
 0x16a   : > { %6989 = dma.hbm_to_vmem [thread:$0]  (!%p9282_p12), %s8117_s5, 16, %s603_s21, %s7868_s12  }
 0x16e   : > { %p9284_p5 = scmp.ne.s32.totalorder %s9283_s24, 0 }
 0x16f   : > { %s9285_s29 = sld [smem:[#allocation28_spill]] (!%p9284_p5) }
 0x170   : > { %611 = sbr.rel (%p9284_p5) target bundleno = 4958 (0x135e), region = 68 }
 0x175   : > { %p9286_p11 = scmp.eq.s32.totalorder (!%p9284_p5), %s9285_s29, 0 }
 0x177   : > { %7613 = dma.done.wait (%p9286_p11), [#allocation4], 256   ;;  %p9287_p6 = pmov %p9286_p11 }
 0x179   : > { %7615 = vsyncadd (%p9287_p6), [#allocation4], 4294967040  ;;  %p9288_p7 = pmov %p9287_p6 }
 0x17a   : > { %p9289_p0 = pmov %p9287_p6 }
 0x17b   : > { %7617 = dma.done.wait (%p9288_p7), [#allocation7], 288  }
 0x17c   : > { %7619 = vsyncadd (%p9289_p0), [#allocation7], 4294967008  ;;  %p9290_p10 = pmov %p9289_p0 }
 0x17d   : > { %p9291_p13 = pmov %p9289_p0 }
 0x17e   : > { %7621 = dma.done.wait (%p9290_p10), [#allocation10], 128  }
 0x17f   : > { %7623 = vsyncadd (%p9291_p13), [#allocation10], 4294967168  ;;  %s9292_s13 = sld [smem:[#allocation25_spill]]  ;;  %s9293_s12 = sld [smem:[#allocation30_spill]] }
 0x180   : > { %s629_s17 = sand.u32 1, %s9285_s29  }
 0x181   : > { %s630_s30 = scalar_lea.sflag [#allocation4], %s629_s17 }
 0x185   : > { %s8175_s28 = sand.u32 1, %s9292_s13   ;;  %p9294_p9 = scmp.ne.s32.totalorder %s9293_s12, 0 }
 0x186   : > { %s6385_s14 = sshll.u32 %s8175_s28, 7 }
 0x187   : > { %s8178_s5 = scalar_lea.vmem [#allocation11], %s6385_s14 }
 0x188   : > { %7625 = dma.done.wait (%p9294_p9), %s630_s30, 3104  }
 0x189   : > { %7627 = vsyncadd (%p9294_p9), %s630_s30, 4294964192  ;;  %s6386_s18 = sshll.u32 %s8175_s28, 3  ;;  %s6387_s21 = sshll.u32 %s8175_s28, 2 }
 0x18a   : > { %s6389_s27 = sshll.u32 %s8175_s28, 4  ;;  %s6390_s0 = sshll.u32 %s8175_s28, 5 }
 0x18b   : > { %s8188_s6 = scalar_lea.vmem [#allocation12], %s6386_s18  ;;  %s8190_s1 = scalar_lea.vmem [#allocation13], %s6387_s21 }
 0x18c   : > { %s8192_s7 = scalar_lea.vmem [#allocation14], %s6387_s21  ;;  %s8194_s8 = scalar_lea.vmem [#allocation15], %s6389_s27 }
 0x18d   : > { %s677_s9 = scalar_lea.vmem [#allocation16], %s8175_s28  ;;  %s8197_s10 = scalar_lea.vmem [#allocation17], %s6390_s0 }
 0x18e   : > { %s694_s15 = scalar_lea.vmem [#allocation18], %s8175_s28  ;;  %s9295_s19 = sld [smem:[#allocation27_spill]] }
 0x194   : > { %p6391_p8 = scmp.ne.s32.totalorder %s9295_s19, 0 }
 0x195   : > { %v773_v0 = vld [vmem:[#allocation3] sm:$0xff] (!%p6391_p8)  ;;  %vm775_vm0 = vcmask (!%p6391_p8), 261120   ;;  %v774_v1 = vld [vmem:[#allocation3 + $0x8] sm:$0xff] (!%p6391_p8) }
 0x196   : > { %772 = sbr.rel (%p6391_p8) target bundleno = 413 (0x19d), region = 120  ;;  %776 = vst.msk [vmem:[#allocation2] sm:$0xff] (!%p6391_p8), %vm775_vm0, %v773_v0  ;;  %777 = vst.msk [vmem:[#allocation2 + $0x8] sm:$0xff] (!%p6391_p8), %vm775_vm0, %v774_v1 }
 0x19d PF: > { %v778_v2 = vld [vmem:[#allocation2] sm:$0xff]  ;;  %vm791_vm1 = vcmask 261120   ;;  %v779_v3 = vld [vmem:[#allocation2 + $0x8] sm:$0xff]  ;;  %v7674_v18 = vmov 0.0   ;;  %v7105_v20 = vld [vmem:[%s8178_s5 + $0x18] sm:$0xff]   ;;  %vm7675_vm2 = vmmov 0   ;;  %v819_v25 = vlaneseq }
 0x19e   : > { %v792_v4 = vsel %vm791_vm1, %v778_v2, 0.0  ;;  %v795_v5 = vsel %vm791_vm1, %v779_v3, 0.0  ;;  %v7102_v16 = vld [vmem:[%s8178_s5] sm:$0xff]   ;;  %v7103_v17 = vld [vmem:[%s8178_s5 + $0x10] sm:$0xff]   ;;  %6640 = vmatprep.subr.bf16.mxu0 %v7674_v18  ;;  %6648 = vmatprep.subr.bf16.mxu1 %v7674_v18  ;;  %v7104_v19 = vld [vmem:[%s8178_s5 + $0x8] sm:$0xff]   ;;  %s7676_s20 = smov 112  }
 0x19f   : > { %793 = vadd.xlane.f32.xlu0 %v792_v4  ;;  %6641 = vmatpush3.bf16.msra.mxu0 %v7102_v16  ;;  %v8219_v28 = vshrl.u32 %v819_v25, 7  ;;  %v789_v30 = vld [vmem:[%s8190_s1] sm:$0x7]  ;;  %v790_v34 = vld [vmem:[%s8192_s7] sm:$0x7]  ;;  %v7106_v42 = vld [vmem:[%s8178_s5 + $0x20] sm:$0xff]  }
 0x1a0   : > { %6649 = vmatpush3.bf16.msra.mxu1 %v7103_v17  ;;  %6642 = vmatprep.subr.bf16.mxu0 %v7674_v18  ;;  %v7107_v44 = vld [vmem:[%s8178_s5 + $0x28] sm:$0xff]   ;;  %s7677_s23 = smov 120   ;;  %s7678_s4 = smov 104   ;;  %vm1871_vm3 = vcmask 64512   ;;  %vm2349_vm4 = vcmask 1043456   ;;  %vm3013_vm5 = vcmask 130048  }
 0x1a1   : > { %6650 = vmatprep.subr.bf16.mxu1 %v7674_v18  ;;  %6644 = vmatprep.mubr.msk.bf16.mxu0 %vm7675_vm2, %v7674_v18  ;;  %v8222_v29 = vsub.s32 0, %v8219_v28  ;;  %v8242_v45 = vsub.s32 1, %v8219_v28  ;;  %v788_v46 = vld [vmem:[%s8188_s6] sm:$0xff]  ;;  %v8248_v55 = vsub.s32 2, %v8219_v28  ;;  %s7682_s22 = smov 16   ;;  %s7683_s16 = smov 8  }
 0x1a2   : > { %6652 = vmatprep.mubr.msk.bf16.mxu1 %vm7675_vm2, %v7674_v18  ;;  %s7684_s24 = smov 24   ;;  %vm3016_vm6 = vcmask 195584   ;;  %vm6039_vm7 = vcmask 523264   ;;  %s9296_s29 = sld [smem:[#allocation27_spill]] }
 0x1a3   : > { %796 = vadd.xlane.f32.xlu0 %v795_v5  ;;  %6643 = vmatpush3.bf16.msra.mxu0 %v7104_v19  ;;  %v822_v33 = vrot.slane %v789_v30, %v8222_v29  ;;  %v828_v38 = vrot.slane %v790_v34, %v8222_v29  ;;  %v854_v47 = vrot.slane %v788_v46, %v8222_v29 }
 0x1a4   : > { %6651 = vmatpush3.bf16.msra.mxu1 %v7105_v20  ;;  %6656 = vmatprep.subr.bf16.mxu0 %v7674_v18  ;;  %v914_v48 = vrot.slane %v788_v46, %v8242_v45  ;;  %v971_v0 = vrot.slane %v788_v46, %v8248_v55 }
 0x1a5   : > { %6664 = vmatprep.subr.bf16.mxu1 %v7674_v18 }
 0x1a8   : > { %p6530_p2 = scmp.ne.s32.totalorder %s9296_s29, 1 }
 0x22c   : > { %v794_v6 = vpop.xlane.xlu0 %793 }
 0x22d   : > { %v799_v7 = vmul.f32 0.03125, %v794_v6 }
 0x22f   : > { %v801_v8 = vsub.f32 %v778_v2, %v799_v7 }
 0x230   : > { %v797_v9 = vpop.xlane.xlu0 %796 }
 0x231   : > { %v800_v10 = vmul.f32 0.03125, %v797_v9  ;;  %v803_v11 = vmul.f32 %v801_v8, %v801_v8 }
 0x233   : > { %v802_v12 = vsub.f32 %v779_v3, %v800_v10  ;;  %v805_v13 = vsel %vm791_vm1, %v803_v11, 0.0  ;;  %v7680_v11 = vmov 1934713408  }
 0x234   : > { %806 = vadd.xlane.f32.xlu1 %v805_v13 }
 0x235   : > { %v804_v14 = vmul.f32 %v802_v12, %v802_v12 }
 0x237   : > { %v808_v15 = vsel %vm791_vm1, %v804_v14, 0.0  ;;  %v7681_v14 = vmov 0  }
 0x238   : > { %809 = vadd.xlane.f32.xlu1 %v808_v15  ;;  %v8266_v15 = vpack.i.b16 %v7681_v14, %v7681_v14 }
 0x2c1   : > { %v807_v21 = vpop.xlane.xlu1 %806 }
 0x2c2   : > { %v811_v22 = vmul.f32 0.03125, %v807_v21 }
 0x2c4   : > { %v813_v23 = vadd.f32 1e-05, %v811_v22 }
 0x2c5   : > { %v810_v24 = vpop.xlane.xlu1 %809 }
 0x2c6   : > { %7126 = vrsqrt.f32 %v813_v23  ;;  %v812_v26 = vmul.f32 0.03125, %v810_v24 }
 0x2c8   : > { %v814_v27 = vadd.f32 1e-05, %v812_v26 }
 0x2ca   : > { %7128 = vrsqrt.f32 %v814_v27 }
 0x2d0   : > { %v7127_v31 = vpop.eup %7126 }
 0x2d1   : > { %v817_v32 = vmul.f32 %v7127_v31, %v801_v8  ;;  %v7679_v8 = vmov 1983009808  }
 0x2d2   : > { %v1057_v9 = vunpack.c.l.s4 %v7679_v8 }
 0x2d3   : > { %v823_v37 = vmul.f32 %v822_v33, %v817_v32 }
 0x2d4   : > { %v7129_v35 = vpop.eup %7128  ;;  %v1058_v10 = vunpack.c.0.s8 %v1057_v9 }
 0x2d5   : > { %v818_v36 = vmul.f32 %v7129_v35, %v802_v12  ;;  %v829_v40 = vadd.f32 %v828_v38, %v823_v37  ;;  %v1088_v12 = vunpack.c.l.s4 %v7680_v11 }
 0x2d6   : > { %v8269_v20 = vsub.s32 %v1058_v10, %v8219_v28 }
 0x2d7   : > { %v824_v39 = vmul.f32 %v822_v33, %v818_v36  ;;  %v1089_v21 = vunpack.c.0.s8 %v1088_v12 }
 0x2d9   : > { %v830_v41 = vadd.f32 %v828_v38, %v824_v39  ;;  %v8273_v31 = vsub.s32 %v1089_v21, %v8219_v28 }
 0x2db   : > { %v831_v43 = vpack.c.bf16 %v830_v41, %v829_v40 }
 0x2dd   : > { %6645 = vmatmul.mubr.msk.bf16.vlgmr.msra.gmra.mrb[0].mxu0 %vm791_vm1, %v831_v43  ;;  %6653 = vmatmul.mubr.msk.bf16.vlgmr.msra.gmra.mrb[0].mxu1 %vm791_vm1, %v831_v43 }
 0x2de   : > { %6657 = vmatpush3.bf16.msra.mxu0 %v7106_v42  ;;  %6660 = vmatprep.mubr.msk.bf16.mxu0 %vm7675_vm2, %v7674_v18 }
 0x2df   : > { %6658 = vmatprep.subr.bf16.mxu0 %v7674_v18  ;;  %6666 = vmatprep.mubr.msk.bf16.mxu1 %vm7675_vm2, %v7674_v18 }
 0x2e2   : > { %6659 = vmatpush3.bf16.msra.mxu0 %v7107_v44 }
 0x2e3   : > { %6670 = vmatprep.subr.bf16.mxu0 %v7674_v18 }
 0x2e5   : > { %6661 = vmatmul.mubr.msk.bf16.vlgmr.msra.gmra.mrb[4].mxu0 %vm791_vm1, %v831_v43 }
 0x2e6   : > { %6672 = vmatprep.mubr.msk.bf16.mxu0 %vm7675_vm2, %v7674_v18 }
 0x3b0   : > { %v904_v49 = vpop.f32.mrb[0].mxu0  ;;  %v961_v50 = vpop.f32.mrb[0].mxu1 }
 0x3b1   : > { %v6646_v51 = vpop.f32.mrb[1].mxu0  ;;  %v6654_v52 = vpop.f32.mrb[1].mxu1  ;;  %v905_v56 = vadd.f32 %v904_v49, %v854_v47  ;;  %v962_v57 = vadd.f32 %v961_v50, %v914_v48 }
 0x3b2   : > { %v907_v53 = vpop.f32.mrb[2].mxu0  ;;  %v964_v54 = vpop.f32.mrb[2].mxu1 }
 0x3b3   : > { %v908_v58 = vadd.f32 %v907_v53, %v854_v47  ;;  %v965_v59 = vadd.f32 %v964_v54, %v914_v48  ;;  %v6647_v60 = vpop.f32.mrb[3].mxu0  ;;  %v6655_v61 = vpop.f32.mrb[3].mxu1 }
 0x3b5   : > { %v8250_v62 = vpack.c.bf16 %v908_v58, %v905_v56  ;;  %v1311_v63 = vpack.c.bf16 %v965_v59, %v962_v57 }
 0x3b7   : > { %1315 = vrot.lane.b32.xlu1 %v1311_v63, %s7676_s20  ;;  %1313 = vrot.lane.b32.xlu0 %v1311_v63, %s7677_s23  ;;  %v1323_v22 = vshrl.u32 %v1311_v63, 16  ;;  %v1037_v8 = vshrl.u32 %v8250_v62, 16 }
 0x3b8   : > { %v1018_v1 = vpop.f32.mrb[4].mxu0 }
 0x3b9   : > { %v6662_v2 = vpop.f32.mrb[5].mxu0  ;;  %v1019_v4 = vadd.f32 %v1018_v1, %v971_v0 }
 0x3ba   : > { %v1021_v3 = vpop.f32.mrb[6].mxu0 }
 0x3bb   : > { %v1022_v5 = vadd.f32 %v1021_v3, %v971_v0  ;;  %1317 = vrot.lane.b32.xlu1 %v1311_v63, %s7678_s4  ;;  %1029 = vrot.lane.b32.xlu0 %v8250_v62, %s7676_s20  ;;  %v6663_v6 = vpop.f32.mrb[7].mxu0 }
 0x3bd   : > { %v8258_v7 = vpack.c.bf16 %v1022_v5, %v1019_v4 }
 0x3bf   : > { %1027 = vrot.lane.b32.xlu1 %v8250_v62, %s7677_s23 }
 0x3c3   : > { %1031 = vrot.lane.b32.xlu1 %v8250_v62, %s7678_s4 }
 0x429   : > { %v1316_v13 = vpop.permute.xlu1 %1315  ;;  %v1314_v16 = vpop.permute.xlu0 %1313 }
 0x42a   : > { %v1321_v17 = vpack.i.b16 %v1314_v16, %v1311_v63  ;;  %v1324_v19 = vshrl.u32 %v1314_v16, 16  ;;  %v1331_v27 = vshrl.u32 %v1316_v13, 16 }
 0x42c   : > { %v1335_v23 = vcombine.high %v1321_v17, %v8266_v15  ;;  %v1325_v25 = vpack.i.b16 %v1324_v19, %v1323_v22  ;;  %v1342_v32 = vrot.slane %v1321_v17, %v8269_v20 }
 0x42d   : > { %v1318_v24 = vpop.permute.xlu1 %1317  ;;  %v1030_v63 = vpop.permute.xlu0 %1029 }
 0x42e   : > { %v1329_v26 = vpack.i.b16 %v1318_v24, %v1316_v13  ;;  %v1332_v30 = vshrl.u32 %v1318_v24, 16  ;;  %v1349_v35 = vrot.slane %v1335_v23, %v8269_v20  ;;  %v1401_v37 = vcombine.high %v1325_v25, %v8266_v15 }
 0x42f   : > { %v1408_v41 = vrot.slane %v1325_v25, %v8269_v20  ;;  %v1045_v12 = vshrl.u32 %v1030_v63, 16 }
 0x430   : > { %v1350_v33 = vcombine.high %v1329_v26, %v8266_v15  ;;  %v1357_v34 = vrot.slane %v1329_v26, %v8269_v20  ;;  %v1333_v36 = vpack.i.b16 %v1332_v30, %v1331_v27  ;;  %v1415_v53 = vrot.slane %v1401_v37, %v8269_v20 }
 0x431   : > { %v1028_v44 = vpop.permute.xlu1 %1027 }
 0x432   : > { %v1364_v38 = vrot.slane %v1350_v33, %v8269_v20  ;;  %v1365_v39 = vcombine.low %v1342_v32, %v1357_v34  ;;  %v1366_v40 = vcombine.high %v1342_v32, %v1357_v34  ;;  %v1416_v42 = vcombine.high %v1333_v36, %v8266_v15 }
 0x433   : > { %v1423_v43 = vrot.slane %v1333_v36, %v8269_v20  ;;  %v1038_v0 = vshrl.u32 %v1028_v44, 16  ;;  %v1035_v6 = vpack.i.b16 %v1028_v44, %v8250_v62 }
 0x434   : > { %v1373_v46 = vrot.slane %v1365_v39, %v8273_v31  ;;  %v1380_v47 = vrot.slane %v1366_v40, %v8273_v31  ;;  %v1381_v48 = vcombine.low %v1349_v35, %v1364_v38  ;;  %v1382_v49 = vcombine.high %v1349_v35, %v1364_v38 }
 0x435   : > { %v1430_v50 = vrot.slane %v1416_v42, %v8269_v20  ;;  %v1431_v51 = vcombine.low %v1408_v41, %v1423_v43  ;;  %v1432_v52 = vcombine.high %v1408_v41, %v1423_v43  ;;  %v1032_v5 = vpop.permute.xlu1 %1031  ;;  %v1039_v17 = vpack.i.b16 %v1038_v0, %v1037_v8 }
 0x436   : > { %v1467_v54 = vcombine.low %v1373_v46, %v1380_v47  ;;  %v6417_v56 = vcombine.high %v1373_v46, %v1380_v47  ;;  %v8291_v59 = vrot.slane %v1381_v48, %v8273_v31  ;;  %v8294_v60 = vrot.slane %v1382_v49, %v8273_v31 }
 0x437   : > { %v1439_v57 = vrot.slane %v1431_v51, %v8273_v31  ;;  %v1446_v58 = vrot.slane %v1432_v52, %v8273_v31  ;;  %v1447_v61 = vcombine.low %v1415_v53, %v1430_v50  ;;  %v1448_v9 = vcombine.high %v1415_v53, %v1430_v50 }
 0x438   : > { %v1474_v1 = vrot.slane %v1467_v54, %v8269_v20  ;;  %v1482_v2 = vrot.slane %v6417_v56, %v8269_v20  ;;  %v1517_v13 = vcombine.low %v8291_v59, %v8294_v60  ;;  %v6419_v16 = vcombine.high %v8291_v59, %v8294_v60 }
 0x439   : > { %v1492_v3 = vcombine.low %v1439_v57, %v1446_v58  ;;  %v6418_v4 = vcombine.high %v1439_v57, %v1446_v58  ;;  %v1043_v19 = vpack.i.b16 %v1032_v5, %v1030_v63  ;;  %v1455_v21 = vrot.slane %v1447_v61, %v8273_v31 }
 0x43a   : > { %v1046_v22 = vshrl.u32 %v1032_v5, 16  ;;  %v1483_v23 = vcombine.low %v1474_v1, %v1482_v2  ;;  %v1055_v24 = vcombine.high %v1035_v6, %v8266_v15  ;;  %v1062_v25 = vrot.slane %v1035_v6, %v8269_v20 }
 0x43b   : > { %v1499_v10 = vrot.slane %v1492_v3, %v8269_v20  ;;  %v1507_v11 = vrot.slane %v6418_v4, %v8269_v20  ;;  %v1070_v26 = vcombine.high %v1043_v19, %v8266_v15  ;;  %v1077_v27 = vrot.slane %v1043_v19, %v8269_v20 }
 0x43c   : > { %v1462_v30 = vrot.slane %v1448_v9, %v8273_v31  ;;  %v1047_v32 = vpack.i.b16 %v1046_v22, %v1045_v12  ;;  %v1490_v33 = vrot.slane %v1483_v23, %v8273_v31  ;;  %v1121_v35 = vcombine.high %v1039_v17, %v8266_v15 }
 0x43d   : > { %v1508_v62 = vcombine.low %v1499_v10, %v1507_v11  ;;  %v1128_v36 = vrot.slane %v1039_v17, %v8269_v20  ;;  %v1085_v37 = vcombine.low %v1062_v25, %v1077_v27  ;;  %v1086_v38 = vcombine.high %v1062_v25, %v1077_v27 }
 0x43e   : > { %v1084_v39 = vrot.slane %v1070_v26, %v8269_v20  ;;  %v1136_v40 = vcombine.high %v1047_v32, %v8266_v15  ;;  %v1143_v41 = vrot.slane %v1047_v32, %v8269_v20  ;;  %v8320_v43 = vrot.slane %v1517_v13, %v8269_v20 }
 0x43f   : > { %v1515_v34 = vrot.slane %v1508_v62, %v8273_v31  ;;  %v1069_v44 = vrot.slane %v1055_v24, %v8269_v20  ;;  %v1093_v46 = vrot.slane %v1085_v37, %v8273_v31  ;;  %v1100_v47 = vrot.slane %v1086_v38, %v8273_v31 }
 0x440   : > { %v1150_v48 = vrot.slane %v1136_v40, %v8269_v20  ;;  %v1151_v49 = vcombine.low %v1128_v36, %v1143_v41  ;;  %v1152_v50 = vcombine.high %v1128_v36, %v1143_v41  ;;  %v1542_v52 = vcombine.low %v1455_v21, %v1462_v30 }
 0x441   : > { %v1569_v42 = vpack.i.b16 %v1515_v34, %v1490_v33  ;;  %v1135_v53 = vrot.slane %v1121_v35, %v8269_v20  ;;  %v1187_v54 = vcombine.low %v1093_v46, %v1100_v47  ;;  %v6413_v56 = vcombine.high %v1093_v46, %v1100_v47 }
 0x442   : > { %v6420_v57 = vcombine.high %v1455_v21, %v1462_v30  ;;  %v1101_v58 = vcombine.low %v1069_v44, %v1084_v39  ;;  %v1159_v59 = vrot.slane %v1151_v49, %v8273_v31  ;;  %v1166_v60 = vrot.slane %v1152_v50, %v8273_v31 }
 0x443   : > { %v1876_v51 = vsel %vm1871_vm3, %v1569_v42, 0  ;;  %v1167_v61 = vcombine.low %v1135_v53, %v1150_v48  ;;  %v1168_v63 = vcombine.high %v1135_v53, %v1150_v48  ;;  %v1194_v0 = vrot.slane %v1187_v54, %v8269_v20 }
 0x444   : > { %6665 = vmatpush3.bf16.xpose.msra.mxu1 %v1876_v51  ;;  %v1202_v1 = vrot.slane %v6413_v56, %v8269_v20  ;;  %v1532_v2 = vrot.slane %v6419_v16, %v8269_v20  ;;  %v1102_v3 = vcombine.high %v1069_v44, %v1084_v39  ;;  %v1212_v4 = vcombine.low %v1159_v59, %v1166_v60 }
 0x445   : > { %6676 = vmatprep.subr.bf16.mxu1 %v7674_v18  ;;  %v6414_v5 = vcombine.high %v1159_v59, %v1166_v60  ;;  %v1570_v8 = vshrl.u32 %v1490_v33, 16  ;;  %v1571_v9 = vshrl.u32 %v1515_v34, 16  ;;  %v1549_v10 = vrot.slane %v1542_v52, %v8269_v20 }
 0x446   : > { %v1203_v6 = vcombine.low %v1194_v0, %v1202_v1  ;;  %v1109_v11 = vrot.slane %v1101_v58, %v8273_v31  ;;  %v1219_v12 = vrot.slane %v1212_v4, %v8269_v20  ;;  %v1557_v17 = vrot.slane %v6420_v57, %v8269_v20 }
 0x447   : > { %v1227_v13 = vrot.slane %v6414_v5, %v8269_v20  ;;  %v1175_v19 = vrot.slane %v1167_v61, %v8273_v31  ;;  %v1182_v16 = vrot.slane %v1168_v63, %v8273_v31  ;;  %v1572_v21 = vpack.i.b16 %v1571_v9, %v1570_v8 }
 0x448   : > { %v1491_v22 = vcombine.high %v1490_v33, %v7681_v14  ;;  %v1116_v23 = vrot.slane %v1102_v3, %v8273_v31  ;;  %v1210_v62 = vrot.slane %v1203_v6, %v8273_v31  ;;  %v1516_v25 = vcombine.high %v1515_v34, %v7681_v14 }
 0x449   : > { %v1228_v24 = vcombine.low %v1219_v12, %v1227_v13  ;;  %v1922_v26 = vsel %vm1871_vm3, %v1572_v21, 0  ;;  %v1533_v35 = vcombine.low %v8320_v43, %v1532_v2  ;;  %v1262_v36 = vcombine.low %v1175_v19, %v1182_v16 }
 0x44a   : > { %6671 = vmatpush3.bf16.xpose.msra.mxu0 %v1922_v26  ;;  %v1575_v30 = vpack.i.b16 %v1516_v25, %v1491_v22  ;;  %v1577_v32 = vshrl.u32 %v1516_v25, 16  ;;  %v6416_v37 = vcombine.high %v1175_v19, %v1182_v16  ;;  %v1576_v33 = vshrl.u32 %v1491_v22, 16 }
 0x44b   : > { %v1235_v27 = vrot.slane %v1228_v24, %v8273_v31  ;;  %6682 = vmatprep.subr.bf16.mxu0 %v7674_v18  ;;  %v1558_v38 = vcombine.low %v1549_v10, %v1557_v17  ;;  %v1237_v39 = vcombine.low %v1109_v11, %v1116_v23  ;;  %v1290_v41 = vshrl.u32 %v1210_v62, 16 }
 0x44c   : > { %v6415_v34 = vcombine.high %v1109_v11, %v1116_v23  ;;  %v1578_v44 = vpack.i.b16 %v1577_v32, %v1576_v33  ;;  %v1968_v47 = vsel %vm1871_vm3, %v1575_v30, 0  ;;  %v1540_v43 = vrot.slane %v1533_v35, %v8273_v31  ;;  %v6539_v35 = vld [vmem:[#allocation9] sm:$0xff]  }
 0x44d   : > { %v1289_v40 = vpack.i.b16 %v1235_v27, %v1210_v62  ;;  %v1291_v42 = vshrl.u32 %v1235_v27, 16  ;;  %v1565_v46 = vrot.slane %v1558_v38, %v8273_v31  ;;  %v1269_v49 = vrot.slane %v1262_v36, %v8269_v20 }
 0x44e   : > { %v1277_v50 = vrot.slane %v6416_v37, %v8269_v20  ;;  %v1236_v51 = vcombine.high %v1235_v27, %v7681_v14  ;;  %v1244_v52 = vrot.slane %v1237_v39, %v8269_v20  ;;  %v1252_v53 = vrot.slane %v6415_v34, %v8269_v20 }
 0x44f   : > { %6667 = vmatmul.mubr.msk.bf16.vlgmr.msra.gmra.mrb[4].mxu1 %vm1871_vm3, %v1289_v40  ;;  %v1292_v48 = vpack.i.b16 %v1291_v42, %v1290_v41  ;;  %v2014_v54 = vsel %vm1871_vm3, %v1578_v44, 0  ;;  %v1211_v56 = vcombine.high %v1210_v62, %v7681_v14  ;;  %v1583_v57 = vshrl.u32 %v1565_v46, 16 }
 0x450   : > { %6677 = vmatpush3.bf16.xpose.msra.mxu1 %v1968_v47  ;;  %6678 = vmatprep.mubr.msk.bf16.mxu1 %vm7675_vm2, %v7674_v18  ;;  %v1581_v58 = vpack.i.b16 %v1565_v46, %v1540_v43  ;;  %v1278_v59 = vcombine.low %v1269_v49, %v1277_v50  ;;  %v1297_v60 = vshrl.u32 %v1236_v51, 16  ;;  %v1582_v61 = vshrl.u32 %v1540_v43, 16 }
 0x451   : > { %6688 = vmatprep.subr.bf16.mxu1 %v7674_v18  ;;  %6673 = vmatmul.mubr.msk.bf16.vlgmr.msra.gmra.mrb[8].mxu0 %vm1871_vm3, %v1292_v48  ;;  %v1295_v63 = vpack.i.b16 %v1236_v51, %v1211_v56  ;;  %v1253_v0 = vcombine.low %v1244_v52, %v1252_v53  ;;  %v1296_v1 = vshrl.u32 %v1211_v56, 16  ;;  %v1566_v3 = vcombine.high %v1565_v46, %v7681_v14 }
 0x452   : > { %6683 = vmatpush3.bf16.xpose.msra.mxu0 %v2014_v54  ;;  %6684 = vmatprep.mubr.msk.bf16.mxu0 %vm7675_vm2, %v7674_v18  ;;  %v1584_v2 = vpack.i.b16 %v1583_v57, %v1582_v61  ;;  %v2060_v4 = vsel %vm1871_vm3, %v1581_v58, 0  ;;  %v1285_v6 = vrot.slane %v1278_v59, %v8273_v31  ;;  %v1541_v8 = vcombine.high %v1540_v43, %v7681_v14 }
 0x453   : > { %6694 = vmatprep.subr.bf16.mxu0 %v7674_v18  ;;  %v1298_v5 = vpack.i.b16 %v1297_v60, %v1296_v1  ;;  %v1260_v10 = vrot.slane %v1253_v0, %v8273_v31  ;;  %v1589_v11 = vshrl.u32 %v1566_v3, 16  ;;  %v6540_v36 = vunpack.c.l.bf16 %v6539_v35 }
 0x454   : > { %v2106_v9 = vsel %vm1871_vm3, %v1584_v2, 0  ;;  %v1587_v12 = vpack.i.b16 %v1566_v3, %v1541_v8  ;;  %v1303_v13 = vshrl.u32 %v1285_v6, 16  ;;  %v1588_v17 = vshrl.u32 %v1541_v8, 16 }
 0x455   : > { %v1301_v19 = vpack.i.b16 %v1285_v6, %v1260_v10  ;;  %v1302_v16 = vshrl.u32 %v1260_v10, 16  ;;  %v1286_v62 = vcombine.high %v1285_v6, %v7681_v14  ;;  %v1261_v25 = vcombine.high %v1260_v10, %v7681_v14 }
 0x456   : > { %v1590_v21 = vpack.i.b16 %v1589_v11, %v1588_v17  ;;  %v2152_v22 = vsel %vm1871_vm3, %v1587_v12, 0  ;;  %v6541_v59 = vunpack.c.h.bf16 %v6539_v35 }
 0x457   : > { %6679 = vmatmul.mubr.msk.bf16.vlgmr.msra.gmra.mrb[8].mxu1 %vm1871_vm3, %v1295_v63  ;;  %v1304_v23 = vpack.i.b16 %v1303_v13, %v1302_v16  ;;  %v1309_v26 = vshrl.u32 %v1286_v62, 16  ;;  %v1307_v27 = vpack.i.b16 %v1286_v62, %v1261_v25  ;;  %v1308_v30 = vshrl.u32 %v1261_v25, 16 }
 0x458   : > { %6689 = vmatpush3.bf16.xpose.msra.mxu1 %v2060_v4  ;;  %6690 = vmatprep.mubr.msk.bf16.mxu1 %vm7675_vm2, %v7674_v18  ;;  %v2198_v24 = vsel %vm1871_vm3, %v1590_v21, 0 }
 0x459   : > { %6700 = vmatprep.subr.bf16.mxu1 %v7674_v18  ;;  %6685 = vmatmul.mubr.msk.bf16.vlgmr.msra.gmra.mrb[12].mxu0 %vm1871_vm3, %v1298_v5  ;;  %v1310_v32 = vpack.i.b16 %v1309_v26, %v1308_v30 }
 0x45a   : > { %6695 = vmatpush3.bf16.xpose.msra.mxu0 %v2106_v9  ;;  %6696 = vmatprep.mubr.msk.bf16.mxu0 %vm7675_vm2, %v7674_v18 }
 0x45b   : > { %6706 = vmatprep.subr.bf16.mxu0 %v7674_v18 }
 0x45f   : > { %6691 = vmatmul.mubr.msk.bf16.vlgmr.msra.gmra.mrb[12].mxu1 %vm1871_vm3, %v1301_v19 }
 0x460   : > { %6701 = vmatpush3.bf16.xpose.msra.mxu1 %v2152_v22  ;;  %6702 = vmatprep.mubr.msk.bf16.mxu1 %vm7675_vm2, %v7674_v18 }
 0x461   : > { %6712 = vmatprep.subr.bf16.mxu1 %v7674_v18  ;;  %6697 = vmatmul.mubr.msk.bf16.vlgmr.msra.gmra.mrb[16].mxu0 %vm1871_vm3, %v1304_v23 }
 0x462   : > { %6707 = vmatpush3.bf16.xpose.msra.mxu0 %v2198_v24  ;;  %6708 = vmatprep.mubr.msk.bf16.mxu0 %vm7675_vm2, %v7674_v18 }
 0x463   : > { %6718 = vmatprep.subr.bf16.mxu0 %v7674_v18 }
 0x467   : > { %6703 = vmatmul.mubr.msk.bf16.vlgmr.msra.gmra.mrb[16].mxu1 %vm1871_vm3, %v1307_v27 }
 0x468   : > { %6714 = vmatprep.mubr.msk.bf16.mxu1 %vm7675_vm2, %v7674_v18 }
 0x469   : > { %6709 = vmatmul.mubr.msk.bf16.vlgmr.msra.gmra.mrb[20].mxu0 %vm1871_vm3, %v1310_v32 }
 0x46a   : > { %6720 = vmatprep.mubr.msk.bf16.mxu0 %vm7675_vm2, %v7674_v18 }
 0x522   : > { %v1912_v37 = vpop.f32.mrb[4].mxu1 }
 0x523   : > { %v2242_v33 = vadd.f32 %v6540_v36, %v1912_v37  ;;  %v6668_v38 = vpop.f32.mrb[5].mxu1 }
 0x524   : > { %v1915_v39 = vpop.f32.mrb[6].mxu1  ;;  %v1958_v40 = vpop.f32.mrb[8].mxu0 }
 0x525   : > { %v6669_v41 = vpop.f32.mrb[7].mxu1  ;;  %v2250_v42 = vsel %vm1871_vm3, %v2242_v33, -inf  ;;  %v2243_v34 = vadd.f32 %v6540_v36, %v1958_v40  ;;  %v6674_v44 = vpop.f32.mrb[9].mxu0 }
 0x526   : > { %2251 = vmax.xlane.f32.xlu0 %v2250_v42  ;;  %v1961_v46 = vpop.f32.mrb[10].mxu0 }
 0x527   : > { %v6675_v47 = vpop.f32.mrb[11].mxu0  ;;  %v2253_v48 = vsel %vm1871_vm3, %v2243_v34, -inf }
 0x528   : > { %2254 = vmax.xlane.f32.xlu1 %v2253_v48 }
 0x52a   : > { %v2004_v43 = vpop.f32.mrb[8].mxu1 }
 0x52b   : > { %v8401_v49 = vadd.f32 %v6540_v36, %v2004_v43  ;;  %v6680_v50 = vpop.f32.mrb[9].mxu1 }
 0x52c   : > { %v2007_v51 = vpop.f32.mrb[10].mxu1  ;;  %v2050_v52 = vpop.f32.mrb[12].mxu0 }
 0x52d   : > { %v6681_v53 = vpop.f32.mrb[11].mxu1  ;;  %v2256_v54 = vsel %vm1871_vm3, %v8401_v49, -inf  ;;  %v2245_v56 = vadd.f32 %v6540_v36, %v2050_v52  ;;  %v6686_v57 = vpop.f32.mrb[13].mxu0 }
 0x52e   : > { %2257 = vmax.xlane.f32.xlu0 %v2256_v54  ;;  %v2053_v58 = vpop.f32.mrb[14].mxu0 }
 0x52f   : > { %v6687_v60 = vpop.f32.mrb[15].mxu0  ;;  %v2259_v61 = vsel %vm1871_vm3, %v2245_v56, -inf }
 0x532   : > { %v2096_v63 = vpop.f32.mrb[12].mxu1  ;;  %2260 = vmax.xlane.f32.xlu0 %v2259_v61 }
 0x533   : > { %v2246_v0 = vadd.f32 %v6541_v59, %v2096_v63  ;;  %v6692_v1 = vpop.f32.mrb[13].mxu1 }
 0x534   : > { %v2099_v2 = vpop.f32.mrb[14].mxu1  ;;  %v2142_v3 = vpop.f32.mrb[16].mxu0 }
 0x535   : > { %v6693_v4 = vpop.f32.mrb[15].mxu1  ;;  %v2262_v5 = vsel %vm1871_vm3, %v2246_v0, -inf  ;;  %v2247_v6 = vadd.f32 %v6541_v59, %v2142_v3  ;;  %v6698_v8 = vpop.f32.mrb[17].mxu0 }
 0x536   : > { %2263 = vmax.xlane.f32.xlu0 %v2262_v5  ;;  %v2145_v9 = vpop.f32.mrb[18].mxu0 }
 0x537   : > { %v6699_v10 = vpop.f32.mrb[19].mxu0  ;;  %v2265_v11 = vsel %vm1871_vm3, %v2247_v6, -inf }
 0x538   : > { %2266 = vmax.xlane.f32.xlu1 %v2265_v11 }
 0x53a   : > { %v2188_v12 = vpop.f32.mrb[16].mxu1 }
 0x53b   : > { %v2248_v13 = vadd.f32 %v6541_v59, %v2188_v12  ;;  %v6704_v17 = vpop.f32.mrb[17].mxu1 }
 0x53c   : > { %v2191_v19 = vpop.f32.mrb[18].mxu1  ;;  %v2234_v16 = vpop.f32.mrb[20].mxu0 }
 0x53d   : > { %v6705_v21 = vpop.f32.mrb[19].mxu1  ;;  %v2268_v22 = vsel %vm1871_vm3, %v2248_v13, -inf  ;;  %v2249_v23 = vadd.f32 %v6541_v59, %v2234_v16  ;;  %v6710_v62 = vpop.f32.mrb[21].mxu0  ;;  %v1603_v16 = vshrl.u32 %v8258_v7, 16 }
 0x53e   : > { %2269 = vmax.xlane.f32.xlu0 %v2268_v22  ;;  %v2237_v24 = vpop.f32.mrb[22].mxu0 }
 0x53f   : > { %v6711_v25 = vpop.f32.mrb[23].mxu0  ;;  %v2271_v26 = vsel %vm1871_vm3, %v2249_v23, -inf }
 0x540   : > { %2272 = vmax.xlane.f32.xlu1 %v2271_v26 }
 0x551   : > { %1595 = vrot.lane.b32.xlu1 %v8258_v7, %s7676_s20 }
 0x5b3   : > { %v2252_v27 = vpop.xlane.xlu0 %2251 }
 0x5b4   : > { %v2274_v30 = vsub.f32 %v2242_v33, %v2252_v27 }
 0x5b5   : > { %v2255_v35 = vpop.xlane.xlu1 %2254 }
 0x5b6   : > { %v2282_v32 = vmul.f32 1.442695, %v2274_v30  ;;  %v2275_v36 = vsub.f32 %v2243_v34, %v2255_v35 }
 0x5b8   : > { %7130 = vpow2.f32 %v2282_v32  ;;  %v2284_v37 = vmul.f32 1.442695, %v2275_v36 }
 0x5ba   : > { %7132 = vpow2.f32 %v2284_v37 }
 0x5bb   : > { %v2258_v42 = vpop.xlane.xlu0 %2257 }
 0x5bc   : > { %v2276_v46 = vsub.f32 %v8401_v49, %v2258_v42 }
 0x5be   : > { %v2286_v51 = vmul.f32 1.442695, %v2276_v46 }
 0x5bf   : > { %v2261_v33 = vpop.xlane.xlu0 %2260 }
 0x5c0   : > { %v2277_v34 = vsub.f32 %v2245_v56, %v2261_v33 }
 0x5c2   : > { %v8412_v38 = vpop.eup %7130  ;;  %v2288_v47 = vmul.f32 1.442695, %v2277_v34 }
 0x5c3   : > { %v2298_v39 = vsel %vm1871_vm3, %v8412_v38, 0.0  ;;  %v2264_v44 = vpop.xlane.xlu0 %2263 }
 0x5c4   : > { %2299 = vadd.xlane.f32.xlu0 %v2298_v39  ;;  %v8416_v40 = vpop.eup %7132  ;;  %v2278_v48 = vsub.f32 %v2246_v0, %v2264_v44  ;;  %7134 = vpow2.f32 %v2288_v47 }
 0x5c5   : > { %v2301_v41 = vsel %vm1871_vm3, %v8416_v40, 0.0  ;;  %v2267_v50 = vpop.xlane.xlu1 %2266  ;;  %7136 = vpow2.f32 %v2286_v51 }
 0x5c6   : > { %2302 = vadd.xlane.f32.xlu1 %v2301_v41  ;;  %v2290_v53 = vmul.f32 1.442695, %v2278_v48  ;;  %v2279_v54 = vsub.f32 %v2247_v6, %v2267_v50 }
 0x5c8   : > { %7138 = vpow2.f32 %v2290_v53  ;;  %v2292_v59 = vmul.f32 1.442695, %v2279_v54 }
 0x5cb   : > { %v2270_v43 = vpop.xlane.xlu0 %2269 }
 0x5cc   : > { %v2280_v52 = vsub.f32 %v2248_v13, %v2270_v43 }
 0x5cd   : > { %v2273_v57 = vpop.xlane.xlu1 %2272 }
 0x5ce   : > { %v2294_v58 = vmul.f32 1.442695, %v2280_v52  ;;  %v2281_v60 = vsub.f32 %v2249_v23, %v2273_v57  ;;  %v8425_v61 = vpop.eup %7134 }
 0x5cf   : > { %v8427_v49 = vpop.eup %7136  ;;  %v2307_v63 = vsel %vm1871_vm3, %v8425_v61, 0.0 }
 0x5d0   : > { %7140 = vpow2.f32 %v2294_v58  ;;  %v2296_v56 = vmul.f32 1.442695, %v2281_v60  ;;  %v2304_v1 = vsel %vm1871_vm3, %v8427_v49, 0.0 }
 0x5d1   : > { %7142 = vpow2.f32 %v2292_v59  ;;  %v1596_v10 = vpop.permute.xlu1 %1595 }
 0x5d2   : > { %7144 = vpow2.f32 %v2296_v56  ;;  %v8431_v0 = vpop.eup %7138  ;;  %v1611_v22 = vshrl.u32 %v1596_v10, 16 }
 0x5d3   : > { %v2310_v3 = vsel %vm1871_vm3, %v8431_v0, 0.0 }
 0x5d7   : > { %1597 = vrot.lane.b32.xlu1 %v8258_v7, %s7678_s4 }
 0x5da   : > { %1593 = vrot.lane.b32.xlu0 %v8258_v7, %s7677_s23  ;;  %v8435_v2 = vpop.eup %7140 }
 0x5db   : > { %v8439_v4 = vpop.eup %7142  ;;  %v2316_v5 = vsel %vm1871_vm3, %v8435_v2, 0.0 }
 0x5dc   : > { %v2313_v6 = vsel %vm1871_vm3, %v8439_v4, 0.0  ;;  %v8445_v8 = vpop.eup %7144 }
 0x5dd   : > { %v2319_v9 = vsel %vm1871_vm3, %v8445_v8, 0.0 }
 0x5f9   : > { %2308 = vadd.xlane.f32.xlu0 %v2307_v63 }
 0x5fb   : > { %2305 = vadd.xlane.f32.xlu1 %v2304_v1 }
 0x5fd   : > { %2311 = vadd.xlane.f32.xlu0 %v2310_v3 }
 0x5ff   : > { %2317 = vadd.xlane.f32.xlu1 %v2316_v5 }
 0x601   : > { %2314 = vadd.xlane.f32.xlu0 %v2313_v6 }
 0x605   : > { %2320 = vadd.xlane.f32.xlu0 %v2319_v9 }
 0x651   : > { %v2300_v11 = vpop.xlane.xlu0 %2299 }
 0x652   : > { %7146 = vrcp.f32 %v2300_v11 }
 0x653   : > { %v2303_v12 = vpop.xlane.xlu1 %2302 }
 0x654   : > { %7148 = vrcp.f32 %v2303_v12 }
 0x655   : > { %v1594_v13 = vpop.permute.xlu0 %1593 }
 0x656   : > { %v1604_v17 = vshrl.u32 %v1594_v13, 16  ;;  %v8450_v19 = vpack.i.b16 %v1594_v13, %v8258_v7 }
 0x657   : > { %v1598_v21 = vpop.permute.xlu1 %1597 }
 0x658   : > { %v8453_v23 = vpack.i.b16 %v1598_v21, %v1596_v10  ;;  %v1612_v62 = vshrl.u32 %v1598_v21, 16  ;;  %v1605_v24 = vpack.i.b16 %v1604_v17, %v1603_v16  ;;  %v1622_v25 = vrot.slane %v8450_v19, %v8269_v20 }
 0x65a   : > { %v1613_v26 = vpack.i.b16 %v1612_v62, %v1611_v22  ;;  %v1637_v27 = vrot.slane %v8453_v23, %v8269_v20  ;;  %v1688_v35 = vrot.slane %v1605_v24, %v8269_v20  ;;  %v1681_v16 = vcombine.high %v1605_v24, %v8266_v15 }
 0x65b   : > { %v1615_v62 = vcombine.high %v8450_v19, %v8266_v15 }
 0x65c   : > { %v1645_v30 = vcombine.low %v1622_v25, %v1637_v27  ;;  %v1646_v32 = vcombine.high %v1622_v25, %v1637_v27  ;;  %v1703_v7 = vrot.slane %v1613_v26, %v8269_v20  ;;  %v7147_v54 = vpop.eup %7146  ;;  %v1696_v9 = vcombine.high %v1613_v26, %v8266_v15 }
 0x65d   : > { %v2330_v56 = vmul.f32 %v7147_v54, %v8412_v38  ;;  %v1630_v38 = vcombine.high %v8453_v23, %v8266_v15  ;;  %v1695_v23 = vrot.slane %v1681_v16, %v8269_v20 }
 0x65e   : > { %v1653_v36 = vrot.slane %v1645_v30, %v8273_v31  ;;  %v1660_v37 = vrot.slane %v1646_v32, %v8273_v31  ;;  %v1711_v39 = vcombine.low %v1688_v35, %v1703_v7  ;;  %v1712_v41 = vcombine.high %v1688_v35, %v1703_v7  ;;  %v7149_v59 = vpop.eup %7148 }
 0x65f   : > { %v2331_v6 = vmul.f32 %v7149_v59, %v8416_v40  ;;  %v2338_v22 = vpack.c.bf16 %v2330_v56, %v2330_v56  ;;  %v1710_v25 = vrot.slane %v1696_v9, %v8269_v20  ;;  %v1644_v27 = vrot.slane %v1630_v38, %v8269_v20 }
 0x660   : > { %v1747_v42 = vcombine.low %v1653_v36, %v1660_v37  ;;  %v6421_v33 = vcombine.high %v1653_v36, %v1660_v37  ;;  %v1719_v34 = vrot.slane %v1711_v39, %v8273_v31  ;;  %v1726_v44 = vrot.slane %v1712_v41, %v8273_v31 }
 0x661   : > { %v2339_v26 = vpack.c.bf16 %v2331_v6, %v2331_v6  ;;  %v1629_v30 = vrot.slane %v1615_v62, %v8269_v20  ;;  %v1727_v32 = vcombine.low %v1695_v23, %v1710_v25  ;;  %v1728_v35 = vcombine.high %v1695_v23, %v1710_v25 }
 0x662   : > { %v1754_v46 = vrot.slane %v1747_v42, %v8269_v20  ;;  %v1762_v47 = vrot.slane %v6421_v33, %v8269_v20  ;;  %v1772_v48 = vcombine.low %v1719_v34, %v1726_v44  ;;  %v6422_v43 = vcombine.high %v1719_v34, %v1726_v44 }
 0x663   : > { %v1661_v7 = vcombine.low %v1629_v30, %v1644_v27  ;;  %v1662_v36 = vcombine.high %v1629_v30, %v1644_v27  ;;  %v1735_v37 = vrot.slane %v1727_v32, %v8273_v31  ;;  %v1742_v39 = vrot.slane %v1728_v35, %v8273_v31 }
 0x664   : > { %v1763_v50 = vcombine.low %v1754_v46, %v1762_v47  ;;  %v1779_v51 = vrot.slane %v1772_v48, %v8269_v20  ;;  %v1787_v52 = vrot.slane %v6422_v43, %v8269_v20 }
 0x665   : > { %v1669_v41 = vrot.slane %v1661_v7, %v8273_v31  ;;  %v1676_v42 = vrot.slane %v1662_v36, %v8273_v31  ;;  %v1822_v33 = vcombine.low %v1735_v37, %v1742_v39  ;;  %v6424_v34 = vcombine.high %v1735_v37, %v1742_v39 }
 0x666   : > { %v1770_v53 = vrot.slane %v1763_v50, %v8273_v31  ;;  %v1788_v57 = vcombine.low %v1779_v51, %v1787_v52 }
 0x667   : > { %v1797_v44 = vcombine.low %v1669_v41, %v1676_v42  ;;  %v6423_v46 = vcombine.high %v1669_v41, %v1676_v42  ;;  %v1829_v47 = vrot.slane %v1822_v33, %v8269_v20  ;;  %v1837_v48 = vrot.slane %v6424_v34, %v8269_v20 }
 0x668   : > { %v1771_v58 = vcombine.high %v1770_v53, %v7681_v14  ;;  %v1795_v60 = vrot.slane %v1788_v57, %v8273_v31  ;;  %v1850_v1 = vshrl.u32 %v1770_v53, 16 }
 0x669   : > { %v1804_v43 = vrot.slane %v1797_v44, %v8269_v20  ;;  %v1812_v50 = vrot.slane %v6423_v46, %v8269_v20  ;;  %v1838_v52 = vcombine.low %v1829_v47, %v1837_v48 }
 0x66a   : > { %v1849_v63 = vpack.i.b16 %v1795_v60, %v1770_v53  ;;  %v1851_v3 = vshrl.u32 %v1795_v60, 16  ;;  %v1796_v5 = vcombine.high %v1795_v60, %v7681_v14  ;;  %v1856_v10 = vshrl.u32 %v1771_v58, 16 }
 0x66b   : > { %v1813_v53 = vcombine.low %v1804_v43, %v1812_v50 }
 0x66c   : > { %v2351_v11 = vsel %vm2349_vm4, %v1849_v63, 0  ;;  %v1852_v12 = vpack.i.b16 %v1851_v3, %v1850_v1  ;;  %v1855_v13 = vpack.i.b16 %v1796_v5, %v1771_v58  ;;  %v1857_v17 = vshrl.u32 %v1796_v5, 16 }
 0x66d   : > { %6713 = vmatpush3.bf16.msra.mxu1 %v2351_v11  ;;  %v1845_v58 = vrot.slane %v1838_v52, %v8273_v31  ;;  %v1820_v59 = vrot.slane %v1813_v53, %v8273_v31 }
 0x66e   : > { %v2397_v21 = vsel %vm2349_vm4, %v1852_v12, 0  ;;  %6724 = vmatprep.subr.bf16.mxu1 %v7674_v18  ;;  %v1858_v40 = vpack.i.b16 %v1857_v17, %v1856_v10  ;;  %v2443_v24 = vsel %vm2349_vm4, %v1855_v13, 0 }
 0x66f   : > { %6719 = vmatpush3.bf16.msra.mxu0 %v2397_v21  ;;  %v1863_v56 = vshrl.u32 %v1845_v58, 16  ;;  %v1862_v63 = vshrl.u32 %v1820_v59, 16  ;;  %v1846_v9 = vcombine.high %v1845_v58, %v7681_v14  ;;  %v1821_v13 = vcombine.high %v1820_v59, %v7681_v14 }
 0x670   : > { %6715 = vmatmul.mubr.msk.bf16.vlgmr.msra.gmra.mrb[20].mxu1 %vm1871_vm3, %v2338_v22  ;;  %6730 = vmatprep.subr.bf16.mxu0 %v7674_v18  ;;  %v2489_v19 = vsel %vm2349_vm4, %v1858_v40, 0  ;;  %v1861_v16 = vpack.i.b16 %v1845_v58, %v1820_v59 }
 0x671   : > { %6725 = vmatpush3.bf16.msra.mxu1 %v2443_v24  ;;  %6726 = vmatprep.mubr.msk.bf16.mxu1 %vm7675_vm2, %v7674_v18  ;;  %v1864_v6 = vpack.i.b16 %v1863_v56, %v1862_v63  ;;  %v1869_v21 = vshrl.u32 %v1846_v9, 16  ;;  %v1868_v40 = vshrl.u32 %v1821_v13, 16 }
 0x672   : > { %6721 = vmatmul.mubr.msk.bf16.vlgmr.msra.gmra.mrb[24].mxu0 %vm1871_vm3, %v2339_v26  ;;  %6736 = vmatprep.subr.bf16.mxu1 %v7674_v18 }
 0x673   : > { %6731 = vmatpush3.bf16.msra.mxu0 %v2489_v19  ;;  %6732 = vmatprep.mubr.msk.bf16.mxu0 %vm7675_vm2, %v7674_v18  ;;  %v2581_v38 = vsel %vm2349_vm4, %v1864_v6, 0  ;;  %v1870_v24 = vpack.i.b16 %v1869_v21, %v1868_v40  ;;  %v1867_v19 = vpack.i.b16 %v1846_v9, %v1821_v13 }
 0x674   : > { %6742 = vmatprep.subr.bf16.mxu0 %v7674_v18 }
 0x675   : > { %v2673_v30 = vsel %vm2349_vm4, %v1870_v24, 0 }
 0x686   : > { %v2309_v51 = vpop.xlane.xlu0 %2308 }
 0x687   : > { %7150 = vrcp.f32 %v2309_v51 }
 0x688   : > { %v2306_v54 = vpop.xlane.xlu1 %2305 }
 0x689   : > { %7152 = vrcp.f32 %v2306_v54 }
 0x68a   : > { %v2312_v57 = vpop.xlane.xlu0 %2311 }
 0x68b   : > { %7154 = vrcp.f32 %v2312_v57 }
 0x68c   : > { %v2318_v10 = vpop.xlane.xlu1 %2317 }
 0x68e   : > { %v2315_v60 = vpop.xlane.xlu0 %2314 }
 0x68f   : > { %7156 = vrcp.f32 %v2315_v60 }
 0x691   : > { %v7151_v1 = vpop.eup %7150 }
 0x692   : > { %v2333_v3 = vmul.f32 %v7151_v1, %v8425_v61  ;;  %v2321_v5 = vpop.xlane.xlu0 %2320 }
 0x693   : > { %7158 = vrcp.f32 %v2321_v5  ;;  %v7153_v11 = vpop.eup %7152 }
 0x694   : > { %v2341_v12 = vpack.c.bf16 %v2333_v3, %v2333_v3  ;;  %v2332_v17 = vmul.f32 %v7153_v11, %v8427_v49  ;;  %7160 = vrcp.f32 %v2318_v10  ;;  %v2535_v49 = vsel %vm2349_vm4, %v1861_v16, 0 }
 0x695   : > { %v7155_v22 = vpop.eup %7154 }
 0x696   : > { %6733 = vmatmul.mubr.msk.bf16.vlgmr.msra.gmra.mrb[28].mxu0 %vm1871_vm3, %v2341_v12  ;;  %v2340_v61 = vpack.c.bf16 %v2332_v17, %v2332_v17  ;;  %v2334_v26 = vmul.f32 %v7155_v22, %v8431_v0  ;;  %v2627_v0 = vsel %vm2349_vm4, %v1867_v19, 0 }
 0x697   : > { %6743 = vmatpush3.bf16.msra.mxu0 %v2581_v38  ;;  %6744 = vmatprep.mubr.msk.bf16.mxu0 %vm7675_vm2, %v7674_v18 }
 0x698   : > { %6754 = vmatprep.subr.bf16.mxu0 %v7674_v18  ;;  %6727 = vmatmul.mubr.msk.bf16.vlgmr.msra.gmra.mrb[24].mxu1 %vm1871_vm3, %v2340_v61  ;;  %v2342_v32 = vpack.c.bf16 %v2334_v26, %v2334_v26 }
 0x699   : > { %v7157_v62 = vpop.eup %7156  ;;  %6737 = vmatpush3.bf16.msra.mxu1 %v2535_v49  ;;  %6738 = vmatprep.mubr.msk.bf16.mxu1 %vm7675_vm2, %v7674_v18 }
 0x69a   : > { %v2335_v25 = vmul.f32 %v7157_v62, %v8439_v4  ;;  %6748 = vmatprep.subr.bf16.mxu1 %v7674_v18 }
 0x69c   : > { %v2343_v23 = vpack.c.bf16 %v2335_v25, %v2335_v25 }
 0x69d   : > { %v7159_v27 = vpop.eup %7158 }
 0x69e   : > { %6745 = vmatmul.mubr.msk.bf16.vlgmr.msra.gmra.mrb[32].mxu0 %vm1871_vm3, %v2343_v23  ;;  %v7161_v4 = vpop.eup %7160  ;;  %v2337_v35 = vmul.f32 %v7159_v27, %v8445_v8 }
 0x69f   : > { %6755 = vmatpush3.bf16.msra.mxu0 %v2673_v30  ;;  %6756 = vmatprep.mubr.msk.bf16.mxu0 %vm7675_vm2, %v7674_v18  ;;  %v2336_v7 = vmul.f32 %v7161_v4, %v8435_v2 }
 0x6a0   : > { %6768 = vmatprep.subr.bf16.mxu0 %v7674_v18  ;;  %6739 = vmatmul.mubr.msk.bf16.vlgmr.msra.gmra.mrb[28].mxu1 %vm1871_vm3, %v2342_v32  ;;  %v2345_v36 = vpack.c.bf16 %v2337_v35, %v2337_v35 }
 0x6a1   : > { %6749 = vmatpush3.bf16.msra.mxu1 %v2627_v0  ;;  %6750 = vmatprep.mubr.msk.bf16.mxu1 %vm7675_vm2, %v7674_v18  ;;  %v2344_v37 = vpack.c.bf16 %v2336_v7, %v2336_v7 }
 0x6a2   : > { %6760 = vmatprep.subr.bf16.mxu1 %v7674_v18 }
 0x6a6   : > { %6757 = vmatmul.mubr.msk.bf16.vlgmr.msra.gmra.mrb[36].mxu0 %vm1871_vm3, %v2345_v36 }
 0x6a7   : > { %6772 = vmatprep.mubr.msk.bf16.mxu0 %vm7675_vm2, %v7674_v18 }
 0x6a8   : > { %6751 = vmatmul.mubr.msk.bf16.vlgmr.msra.gmra.mrb[32].mxu1 %vm1871_vm3, %v2344_v37 }
 0x6a9   : > { %6764 = vmatprep.mubr.msk.bf16.mxu1 %vm7675_vm2, %v7674_v18 }
 0x743   : > { %v2387_v8 = vpop.f32.mrb[20].mxu1 }
 0x744   : > { %v6716_v39 = vpop.f32.mrb[21].mxu1 }
 0x745   : > { %v2390_v41 = vpop.f32.mrb[22].mxu1  ;;  %v2433_v42 = vpop.f32.mrb[24].mxu0 }
 0x746   : > { %v6717_v33 = vpop.f32.mrb[23].mxu1  ;;  %v6722_v2 = vpop.f32.mrb[25].mxu0 }
 0x747   : > { %v2436_v34 = vpop.f32.mrb[26].mxu0 }
 0x748   : > { %v6723_v44 = vpop.f32.mrb[27].mxu0 }
 0x769   : > { %v2525_v46 = vpop.f32.mrb[28].mxu0 }
 0x76a   : > { %v2731_v47 = vcombine.low %v2433_v42, %v2525_v46  ;;  %v2732_v48 = vcombine.high %v2433_v42, %v2525_v46  ;;  %v6734_v43 = vpop.f32.mrb[29].mxu0 }
 0x76b   : > { %v2528_v50 = vpop.f32.mrb[30].mxu0  ;;  %v2479_v51 = vpop.f32.mrb[24].mxu1 }
 0x76c   : > { %v6735_v52 = vpop.f32.mrb[31].mxu0  ;;  %v2715_v53 = vcombine.low %v2387_v8, %v2479_v51  ;;  %v2716_v54 = vcombine.high %v2387_v8, %v2479_v51  ;;  %v6728_v57 = vpop.f32.mrb[25].mxu1  ;;  %v2739_v59 = vrot.slane %v2731_v47, %v8269_v20  ;;  %v2746_v60 = vrot.slane %v2732_v48, %v8269_v20 }
 0x76d   : > { %v2482_v58 = vpop.f32.mrb[26].mxu1 }
 0x76e   : > { %v2723_v56 = vrot.slane %v2715_v53, %v8269_v20  ;;  %v2730_v63 = vrot.slane %v2716_v54, %v8269_v20  ;;  %v6729_v1 = vpop.f32.mrb[27].mxu1 }
 0x770   : > { %v2747_v3 = vcombine.low %v2723_v56, %v2739_v59  ;;  %v2748_v5 = vcombine.high %v2723_v56, %v2739_v59  ;;  %v2763_v6 = vcombine.low %v2730_v63, %v2746_v60  ;;  %v2764_v9 = vcombine.high %v2730_v63, %v2746_v60 }
 0x771   : > { %v2617_v10 = vpop.f32.mrb[32].mxu0 }
 0x772   : > { %v6746_v11 = vpop.f32.mrb[33].mxu0  ;;  %v2755_v12 = vrot.slane %v2747_v3, %v8273_v31  ;;  %v2762_v13 = vrot.slane %v2748_v5, %v8273_v31  ;;  %v2771_v17 = vrot.slane %v2763_v6, %v8273_v31  ;;  %v2778_v16 = vrot.slane %v2764_v9, %v8273_v31 }
 0x773   : > { %v2620_v38 = vpop.f32.mrb[34].mxu0  ;;  %v2571_v21 = vpop.f32.mrb[28].mxu1 }
 0x774   : > { %v6747_v61 = vpop.f32.mrb[35].mxu0  ;;  %v2851_v22 = vcombine.low %v2755_v12, %v2762_v13  ;;  %v6441_v40 = vcombine.high %v2755_v12, %v2762_v13  ;;  %v2867_v62 = vcombine.low %v2771_v17, %v2778_v16  ;;  %v6442_v49 = vcombine.high %v2771_v17, %v2778_v16  ;;  %v6740_v25 = vpop.f32.mrb[29].mxu1  ;;  %v7108_v16 = vld [vmem:[%s8178_s5 + $0x30] sm:$0xff]  }
 0x775   : > { %v2574_v24 = vpop.f32.mrb[30].mxu1  ;;  %6761 = vmatpush3.bf16.msra.mxu1 %v7108_v16  ;;  %v8615_v16 = vld [vmem:[#allocation6 + $0x8] sm:$0xff]  }
 0x776   : > { %v2858_v26 = vrot.slane %v2851_v22, %v8269_v20  ;;  %v2866_v23 = vrot.slane %v6441_v40, %v8269_v20  ;;  %v2874_v27 = vrot.slane %v2867_v62, %v8269_v20  ;;  %v2882_v19 = vrot.slane %v6442_v49, %v8269_v20  ;;  %v6741_v30 = vpop.f32.mrb[31].mxu1  ;;  %6762 = vmatprep.subr.bf16.mxu1 %v7674_v18 }
 0x778   : > { %v2884_v4 = vcombine.high %v2858_v26, %v2866_v23  ;;  %v2900_v35 = vcombine.high %v2874_v27, %v2882_v19  ;;  %v2883_v0 = vcombine.low %v2858_v26, %v2866_v23  ;;  %v2899_v7 = vcombine.low %v2874_v27, %v2882_v19  ;;  %v7109_v19 = vld [vmem:[%s8178_s5 + $0x38] sm:$0xff]  }
 0x779   : > { %v2709_v32 = vpop.f32.mrb[36].mxu0  ;;  %6763 = vmatpush3.bf16.msra.mxu1 %v7109_v19  ;;  %v7116_v19 = vld [vmem:[%s8178_s5 + $0x60] sm:$0xff]  }
 0x77a   : > { %v2799_v36 = vcombine.low %v2617_v10, %v2709_v32  ;;  %v2800_v37 = vcombine.high %v2617_v10, %v2709_v32  ;;  %v6758_v8 = vpop.f32.mrb[37].mxu0  ;;  %v2898_v41 = vrot.slane %v2884_v4, %v8273_v31  ;;  %v2914_v42 = vrot.slane %v2900_v35, %v8273_v31 }
 0x77b   : > { %v2712_v39 = vpop.f32.mrb[38].mxu0  ;;  %v8558_v33 = vrot.slane %v2883_v0, %v8273_v31  ;;  %v8561_v2 = vrot.slane %v2899_v7, %v8273_v31  ;;  %v2663_v34 = vpop.f32.mrb[32].mxu1 }
 0x77c   : > { %v6759_v44 = vpop.f32.mrb[39].mxu0  ;;  %v2783_v46 = vcombine.low %v2571_v21, %v2663_v34  ;;  %v2784_v47 = vcombine.high %v2571_v21, %v2663_v34  ;;  %v6752_v48 = vpop.f32.mrb[33].mxu1  ;;  %v2917_v43 = vcombine.low %v2898_v41, %v2914_v42  ;;  %v2918_v53 = vcombine.high %v2898_v41, %v2914_v42 }
 0x77d   : > { %v2915_v50 = vcombine.low %v8558_v33, %v8561_v2  ;;  %v2666_v51 = vpop.f32.mrb[34].mxu1  ;;  %v2916_v52 = vcombine.high %v8558_v33, %v8561_v2  ;;  %v2807_v54 = vrot.slane %v2799_v36, %v8269_v20  ;;  %v2814_v57 = vrot.slane %v2800_v37, %v8269_v20 }
 0x77e   : > { %v2791_v58 = vrot.slane %v2783_v46, %v8269_v20  ;;  %v2798_v59 = vrot.slane %v2784_v47, %v8269_v20  ;;  %v6753_v60 = vpop.f32.mrb[35].mxu1 }
 0x780   : > { %v2815_v56 = vcombine.low %v2791_v58, %v2807_v54  ;;  %v2816_v63 = vcombine.high %v2791_v58, %v2807_v54  ;;  %v2831_v1 = vcombine.low %v2798_v59, %v2814_v57  ;;  %v2832_v3 = vcombine.high %v2798_v59, %v2814_v57  ;;  %v8598_v54 = vld [vmem:[%s8188_s6] sm:$0xff] }
 0x782   : > { %v2823_v5 = vrot.slane %v2815_v56, %v8273_v31  ;;  %v2830_v6 = vrot.slane %v2816_v63, %v8273_v31  ;;  %v2839_v9 = vrot.slane %v2831_v1, %v8273_v31  ;;  %v2846_v10 = vrot.slane %v2832_v3, %v8273_v31  ;;  %v7203_v63 = vld [vmem:[#allocation2] sm:$0xff] }
 0x784   : > { %v2919_v11 = vcombine.low %v2823_v5, %v2830_v6  ;;  %v6443_v12 = vcombine.high %v2823_v5, %v2830_v6  ;;  %v2935_v13 = vcombine.low %v2839_v9, %v2846_v10  ;;  %v6444_v17 = vcombine.high %v2839_v9, %v2846_v10  ;;  %v7204_v6 = vld [vmem:[#allocation2 + $0x8] sm:$0xff] }
 0x786   : > { %v2926_v38 = vrot.slane %v2919_v11, %v8269_v20  ;;  %v2934_v21 = vrot.slane %v6443_v12, %v8269_v20  ;;  %v2942_v61 = vrot.slane %v2935_v13, %v8269_v20  ;;  %v2950_v22 = vrot.slane %v6444_v17, %v8269_v20  ;;  %v7110_v12 = vld [vmem:[%s8178_s5 + $0x50] sm:$0xff]   ;;  %v7111_v13 = vld [vmem:[%s8178_s5 + $0x58] sm:$0xff]   ;;  %v8611_v17 = vld [vmem:[#allocation6] sm:$0xff]  }
 0x787   : > { %6776 = vmatprep.subr.bf16.mxu1 %v7110_v12 }
 0x788   : > { %v2952_v40 = vcombine.high %v2926_v38, %v2934_v21  ;;  %v2968_v62 = vcombine.high %v2942_v61, %v2950_v22  ;;  %v2951_v49 = vcombine.low %v2926_v38, %v2934_v21  ;;  %v2967_v25 = vcombine.low %v2942_v61, %v2950_v22 }
 0x78a   : > { %v2966_v24 = vrot.slane %v2952_v40, %v8273_v31  ;;  %v2982_v26 = vrot.slane %v2968_v62, %v8273_v31  ;;  %v2959_v23 = vrot.slane %v2951_v49, %v8273_v31  ;;  %v2975_v27 = vrot.slane %v2967_v25, %v8273_v31 }
 0x78c   : > { %v2985_v30 = vcombine.low %v2966_v24, %v2982_v26  ;;  %v2984_v32 = vcombine.high %v2959_v23, %v2975_v27  ;;  %v2983_v4 = vcombine.low %v2959_v23, %v2975_v27  ;;  %v2986_v35 = vcombine.high %v2966_v24, %v2982_v26  ;;  %v7114_v23 = vld [vmem:[%s8178_s5 + $0x40] sm:$0xff]   ;;  %v7115_v27 = vld [vmem:[%s8178_s5 + $0x48] sm:$0xff]  }
 0x78d   : > { %6769 = vmatpush3.bf16.msra.mxu0 %v7114_v23 }
 0x78e   : > { %v7077_v0 = vpack.i.bf16 %v2985_v30, %v2917_v43  ;;  %v7072_v7 = vpack.i.bf16 %v2984_v32, %v2916_v52  ;;  %v7082_v36 = vpack.i.bf16 %v2986_v35, %v2918_v53  ;;  %6770 = vmatprep.subr.bf16.mxu0 %v7674_v18  ;;  %v3203_v30 = vsub.s32 5, %v8219_v28 }
 0x790   : > { %7078 = vrot.lane.b32.xlu0 %v7077_v0, %s7682_s22  ;;  %7073 = vrot.lane.b32.xlu1 %v7072_v7, %s7683_s16  ;;  %v3204_v32 = vrot.slane %v8598_v54, %v3203_v30 }
 0x791   : > { %6771 = vmatpush3.bf16.msra.mxu0 %v7115_v27 }
 0x792   : > { %6784 = vmatprep.subr.bf16.mxu0 %v7116_v19 }
 0x794   : > { %7083 = vrot.lane.b32.xlu1 %v7082_v36, %s7684_s24 }
 0x802   : > { %v7079_v37 = vpop.permute.xlu0 %7078  ;;  %v7074_v8 = vpop.permute.xlu1 %7073 }
 0x803   : > { %v7076_v39 = vunpack.i.h.bf16 %v7074_v8  ;;  %v7075_v41 = vunpack.i.l.bf16 %v7074_v8  ;;  %v7081_v42 = vunpack.i.h.bf16 %v7079_v37  ;;  %v7080_v33 = vunpack.i.l.bf16 %v7079_v37 }
 0x805   : > { %v3011_v2 = vsel %vm1871_vm3, %v2915_v50, %v7075_v41  ;;  %v3012_v34 = vsel %vm1871_vm3, %v2983_v4, %v7076_v39  ;;  %v3022_v50 = vsub.s32 3, %v8219_v28 }
 0x806   : > { %v7084_v44 = vpop.permute.xlu1 %7083  ;;  %v3014_v48 = vsel %vm3013_vm5, %v3011_v2, %v7080_v33  ;;  %v3015_v43 = vsel %vm3013_vm5, %v3012_v34, %v7081_v42 }
 0x807   : > { %v7086_v46 = vunpack.i.h.bf16 %v7084_v44  ;;  %v7085_v47 = vunpack.i.l.bf16 %v7084_v44  ;;  %v3023_v57 = vrot.slane %v8598_v54, %v3022_v50  ;;  %v7206_v50 = vld [vmem:[%s8192_s7] sm:$0x7] }
 0x809   : > { %v3017_v51 = vsel %vm3016_vm6, %v3014_v48, %v7085_v47  ;;  %v3018_v52 = vsel %vm3016_vm6, %v3015_v43, %v7086_v46  ;;  %v7205_v48 = vld [vmem:[%s8190_s1] sm:$0x7] }
 0x80a   : > { %v3019_v53 = vpack.c.bf16 %v3018_v52, %v3017_v51  ;;  %v3111_v43 = vrot.slane %v7205_v48, %v8242_v45 }
 0x80c   : > { %6765 = vmatmul.mubr.msk.bf16.vlgmr.msra.gmra.mrb[36].mxu1 %vm791_vm1, %v3019_v53 }
 0x80d   : > { %6780 = vmatprep.mubr.msk.bf16.mxu1 %vm791_vm1, %v8611_v17  ;;  %6777 = vmatpush3.bf16.msra.mxu1 %v7110_v12 }
 0x80e   : > { %6778 = vmatprep.subr.bf16.mxu1 %v7111_v13 }
 0x811   : > { %6779 = vmatpush3.bf16.msra.mxu1 %v7111_v13 }
 0x812   : > { %6792 = vmatprep.subr.bf16.mxu1 %v7674_v18 }
 0x814   : > { %6781 = vmatmul.mubr.msk.bf16.vlgmr.msra.gmra.mrb[40].mxu1 %vm791_vm1, %v8615_v16 }
 0x815   : > { %6794 = vmatprep.mubr.msk.bf16.mxu1 %vm7675_vm2, %v7674_v18 }
 0x8df   : > { %v3073_v58 = vpop.f32.mrb[36].mxu1 }
 0x8e0   : > { %v3074_v59 = vadd.f32 %v3073_v58, %v3023_v57  ;;  %v6766_v60 = vpop.f32.mrb[37].mxu1 }
 0x8e1   : > { %v3076_v56 = vpop.f32.mrb[38].mxu1 }
 0x8e2   : > { %v8601_v1 = vadd.f32 %v7203_v63, %v3074_v59  ;;  %v3077_v3 = vadd.f32 %v3076_v56, %v3023_v57  ;;  %v6767_v5 = vpop.f32.mrb[39].mxu1  ;;  %v3117_v57 = vrot.slane %v7206_v50, %v8242_v45 }
 0x8e3   : > { %v7117_v5 = vld [vmem:[%s8178_s5 + $0x68] sm:$0xff]  }
 0x8e4   : > { %v8603_v9 = vadd.f32 %v7204_v6, %v3077_v3  ;;  %v3082_v10 = vsel %vm791_vm1, %v8601_v1, 0.0 }
 0x8e5   : > { %3083 = vadd.xlane.f32.xlu1 %v3082_v10 }
 0x8e6   : > { %v3085_v11 = vsel %vm791_vm1, %v8603_v9, 0.0 }
 0x8e7   : > { %3086 = vadd.xlane.f32.xlu0 %v3085_v11  ;;  %v6782_v4 = vpop.f32.mrb[40].mxu1 }
 0x8e8   : > { %v3276_v35 = vadd.f32 %v6782_v4, %v3204_v32  ;;  %v3267_v0 = vpop.f32.mrb[41].mxu1 }
 0x8e9   : > { %v3268_v7 = vadd.f32 %v3267_v0, %v3204_v32  ;;  %v6783_v36 = vpop.f32.mrb[42].mxu1 }
 0x8ea   : > { %v3279_v37 = vadd.f32 %v6783_v36, %v3204_v32  ;;  %v3270_v8 = vpop.f32.mrb[43].mxu1 }
 0x8eb   : > { %v3271_v39 = vadd.f32 %v3270_v8, %v3204_v32 }
 0x8ec   : > { %v8632_v41 = vpack.c.bf16 %v3279_v37, %v3276_v35 }
 0x8ed   : > { %v3627_v42 = vpack.c.bf16 %v3271_v39, %v3268_v7 }
 0x8ef   : > { %v3647_v13 = vshrl.u32 %v3627_v42, 16 }
 0x972   : > { %v3084_v38 = vpop.xlane.xlu1 %3083 }
 0x973   : > { %v3088_v21 = vmul.f32 0.03125, %v3084_v38 }
 0x974   : > { %v3087_v61 = vpop.xlane.xlu0 %3086 }
 0x975   : > { %v3090_v22 = vsub.f32 %v8601_v1, %v3088_v21  ;;  %v3089_v40 = vmul.f32 0.03125, %v3087_v61 }
 0x977   : > { %v3091_v62 = vsub.f32 %v8603_v9, %v3089_v40  ;;  %v3092_v49 = vmul.f32 %v3090_v22, %v3090_v22 }
 0x979   : > { %v3094_v25 = vsel %vm791_vm1, %v3092_v49, 0.0  ;;  %v3093_v24 = vmul.f32 %v3091_v62, %v3091_v62 }
 0x97a   : > { %3095 = vadd.xlane.f32.xlu0 %v3094_v25 }
 0x97b   : > { %v3097_v26 = vsel %vm791_vm1, %v3093_v24, 0.0 }
 0x97c   : > { %3098 = vadd.xlane.f32.xlu1 %v3097_v26 }
 0x98d   : > { %3635 = vrot.lane.b32.xlu1 %v3627_v42, %s7676_s20 }
 0x990   : > { %3631 = vrot.lane.b32.xlu0 %v3627_v42, %s7677_s23 }
 0x991   : > { %3639 = vrot.lane.b32.xlu1 %v3627_v42, %s7678_s4 }
 0x994   : > { %3633 = vrot.lane.b32.xlu0 %v8632_v41, %s7677_s23 }
 0xa07   : > { %v3096_v33 = vpop.xlane.xlu0 %3095 }
 0xa08   : > { %v3100_v2 = vmul.f32 0.03125, %v3096_v33 }
 0xa09   : > { %v3099_v34 = vpop.xlane.xlu1 %3098 }
 0xa0a   : > { %v3102_v44 = vadd.f32 1e-05, %v3100_v2  ;;  %v3101_v46 = vmul.f32 0.03125, %v3099_v34 }
 0xa0b   : > { %v3632_v10 = vpop.permute.xlu0 %3631 }
 0xa0c   : > { %7162 = vrsqrt.f32 %v3102_v44  ;;  %v3103_v47 = vadd.f32 1e-05, %v3101_v46  ;;  %v3648_v38 = vshrl.u32 %v3632_v10, 16  ;;  %v3645_v61 = vpack.i.b16 %v3632_v10, %v3627_v42 }
 0xa0d   : > { %v3636_v45 = vpop.permute.xlu1 %3635 }
 0xa0e   : > { %7164 = vrsqrt.f32 %v3103_v47  ;;  %v3655_v11 = vshrl.u32 %v3636_v45, 16  ;;  %v3682_v49 = vrot.slane %v3645_v61, %v8269_v20 }
 0xa11   : > { %v3640_v6 = vpop.permute.xlu1 %3639 }
 0xa12   : > { %v3656_v12 = vshrl.u32 %v3640_v6, 16  ;;  %v3653_v21 = vpack.i.b16 %v3640_v6, %v3636_v45 }
 0xa14   : > { %v3690_v40 = vcombine.high %v3653_v21, %v8266_v15 }
 0xa16   : > { %v7163_v51 = vpop.eup %7162  ;;  %v3704_v26 = vrot.slane %v3690_v40, %v8269_v20 }
 0xa17   : > { %v3106_v52 = vmul.f32 %v7163_v51, %v3090_v22  ;;  %v3649_v22 = vpack.i.b16 %v3648_v38, %v3647_v13 }
 0xa18   : > { %v7165_v53 = vpop.eup %7164 }
 0xa19   : > { %v3112_v58 = vmul.f32 %v3111_v43, %v3106_v52  ;;  %v3107_v59 = vmul.f32 %v7165_v53, %v3091_v62  ;;  %v3675_v62 = vcombine.high %v3645_v61, %v8266_v15  ;;  %v3741_v24 = vcombine.high %v3649_v22, %v8266_v15 }
 0xa1a   : > { %v3748_v32 = vrot.slane %v3649_v22, %v8269_v20 }
 0xa1b   : > { %v3113_v60 = vmul.f32 %v3111_v43, %v3107_v59  ;;  %v3118_v56 = vadd.f32 %v3117_v57, %v3112_v58  ;;  %v3689_v23 = vrot.slane %v3675_v62, %v8269_v20  ;;  %v3755_v35 = vrot.slane %v3741_v24, %v8269_v20 }
 0xa1d   : > { %v3119_v63 = vadd.f32 %v3117_v57, %v3113_v60  ;;  %v3721_v0 = vcombine.low %v3689_v23, %v3704_v26  ;;  %v3722_v7 = vcombine.high %v3689_v23, %v3704_v26 }
 0xa1f   : > { %v3120_v3 = vpack.c.bf16 %v3119_v63, %v3118_v56  ;;  %v3729_v2 = vrot.slane %v3721_v0, %v8273_v31  ;;  %v3736_v34 = vrot.slane %v3722_v7, %v8273_v31  ;;  %v3143_v0 = vsub.s32 4, %v8219_v28 }
 0xa21   : > { %6773 = vmatmul.mubr.msk.bf16.vlgmr.msra.gmra.mrb[40].mxu0 %vm791_vm1, %v3120_v3  ;;  %v3955_v52 = vcombine.low %v3729_v2, %v3736_v34  ;;  %v6482_v57 = vcombine.high %v3729_v2, %v3736_v34  ;;  %v3144_v7 = vrot.slane %v8598_v54, %v3143_v0  ;;  %v3284_v34 = vsub.s32 6, %v8219_v28 }
 0xa22   : > { %6785 = vmatpush3.bf16.msra.mxu0 %v7116_v19  ;;  %6788 = vmatprep.mubr.msk.bf16.mxu0 %vm791_vm1, %v8611_v17  ;;  %v3657_v17 = vpack.i.b16 %v3656_v12, %v3655_v11 }
 0xa23   : > { %6786 = vmatprep.subr.bf16.mxu0 %v7117_v5  ;;  %v3962_v63 = vrot.slane %v3955_v52, %v8269_v20  ;;  %v3970_v3 = vrot.slane %v6482_v57, %v8269_v20 }
 0xa24   : > { %v3756_v25 = vcombine.high %v3657_v17, %v8266_v15  ;;  %v3763_v27 = vrot.slane %v3657_v17, %v8269_v20 }
 0xa25   : > { %v3979_v13 = vcombine.low %v3962_v63, %v3970_v3 }
 0xa26   : > { %6787 = vmatpush3.bf16.msra.mxu0 %v7117_v5  ;;  %v3770_v4 = vrot.slane %v3756_v25, %v8269_v20  ;;  %v3771_v8 = vcombine.low %v3748_v32, %v3763_v27  ;;  %v3772_v39 = vcombine.high %v3748_v32, %v3763_v27 }
 0xa27   : > { %6798 = vmatprep.subr.bf16.mxu0 %v7674_v18  ;;  %v3986_v61 = vrot.slane %v3979_v13, %v8273_v31 }
 0xa28   : > { %v3787_v42 = vcombine.low %v3755_v35, %v3770_v4  ;;  %v3788_v33 = vcombine.high %v3755_v35, %v3770_v4  ;;  %v3779_v44 = vrot.slane %v3771_v8, %v8273_v31  ;;  %v3786_v46 = vrot.slane %v3772_v39, %v8273_v31 }
 0xa29   : > { %6789 = vmatmul.mubr.msk.bf16.vlgmr.msra.gmra.mrb[44].mxu0 %vm791_vm1, %v8615_v16  ;;  %v3697_v16 = vrot.slane %v3653_v21, %v8269_v20 }
 0xa2a   : > { %6800 = vmatprep.mubr.msk.bf16.mxu0 %vm7675_vm2, %v7674_v18  ;;  %v3795_v43 = vrot.slane %v3787_v42, %v8273_v31  ;;  %v3802_v51 = vrot.slane %v3788_v33, %v8273_v31  ;;  %v3989_v58 = vcombine.low %v3779_v44, %v3786_v46  ;;  %v6483_v59 = vcombine.high %v3779_v44, %v3786_v46 }
 0xa2b   : > { %v3705_v19 = vcombine.low %v3682_v49, %v3697_v16  ;;  %v3706_v30 = vcombine.high %v3682_v49, %v3697_v16 }
 0xa2c   : > { %v4005_v60 = vcombine.low %v3795_v43, %v3802_v51  ;;  %v6484_v56 = vcombine.high %v3795_v43, %v3802_v51  ;;  %v3996_v45 = vrot.slane %v3989_v58, %v8269_v20  ;;  %v4004_v6 = vrot.slane %v6483_v59, %v8269_v20  ;;  %v3634_v59 = vpop.permute.xlu0 %3633 }
 0xa2d   : > { %v3713_v36 = vrot.slane %v3705_v19, %v8273_v31  ;;  %v3720_v37 = vrot.slane %v3706_v30, %v8273_v31 }
 0xa2e   : > { %v4012_v10 = vrot.slane %v4005_v60, %v8269_v20  ;;  %v4020_v11 = vrot.slane %v6484_v56, %v8269_v20  ;;  %v4021_v38 = vcombine.low %v3996_v45, %v4004_v6  ;;  %v3663_v60 = vshrl.u32 %v8632_v41, 16 }
 0xa2f   : > { %v3939_v47 = vcombine.low %v3713_v36, %v3720_v37  ;;  %v6481_v48 = vcombine.high %v3713_v36, %v3720_v37  ;;  %v3661_v56 = vpack.i.b16 %v3634_v59, %v8632_v41 }
 0xa30   : > { %v4029_v21 = vcombine.low %v4012_v10, %v4020_v11  ;;  %v4028_v17 = vrot.slane %v4021_v38, %v8273_v31 }
 0xa31   : > { %v3946_v53 = vrot.slane %v3939_v47, %v8269_v20  ;;  %v3954_v50 = vrot.slane %v6481_v48, %v8269_v20  ;;  %v3285_v47 = vrot.slane %v8598_v54, %v3284_v34  ;;  %v3664_v54 = vshrl.u32 %v3634_v59, 16 }
 0xa32   : > { %v4036_v22 = vrot.slane %v4029_v21, %v8273_v31  ;;  %v3807_v13 = vcombine.high %v3661_v56, %v8266_v15 }
 0xa33   : > { %v3971_v5 = vcombine.low %v3946_v53, %v3954_v50 }
 0xa34   : > { %v4037_v16 = vcombine.low %v4028_v17, %v4036_v22  ;;  %v8686_v49 = vcombine.high %v4028_v17, %v4036_v22  ;;  %v3814_v22 = vrot.slane %v3661_v56, %v8269_v20 }
 0xa35   : > { %v3978_v12 = vrot.slane %v3971_v5, %v8273_v31 }
 0xa36   : > { %v4143_v23 = vshrl.u32 %v4037_v16, 16  ;;  %v4149_v19 = vshrl.u32 %v8686_v49, 16 }
 0xa37   : > { %v3987_v40 = vcombine.low %v3978_v12, %v3986_v61  ;;  %v8684_v62 = vcombine.high %v3978_v12, %v3986_v61  ;;  %v3665_v12 = vpack.i.b16 %v3664_v54, %v3663_v60 }
 0xa39   : > { %v4142_v25 = vshrl.u32 %v3987_v40, 16  ;;  %v4148_v24 = vshrl.u32 %v8684_v62, 16  ;;  %v4141_v26 = vpack.i.b16 %v4037_v16, %v3987_v40  ;;  %v4147_v27 = vpack.i.b16 %v8686_v49, %v8684_v62 }
 0xa3b   : > { %v4711_v30 = vsel %vm1871_vm3, %v4141_v26, 0  ;;  %v4144_v32 = vpack.i.b16 %v4143_v23, %v4142_v25  ;;  %v8693_v4 = vpack.i.b16 %v4149_v19, %v4148_v24  ;;  %v3821_v19 = vrot.slane %v3807_v13, %v8269_v20 }
 0xa3c   : > { %6793 = vmatpush3.bf16.xpose.msra.mxu1 %v4711_v30  ;;  %v3873_v30 = vcombine.high %v3665_v12, %v8266_v15 }
 0xa3d   : > { %v4757_v35 = vsel %vm1871_vm3, %v4144_v32, 0  ;;  %6804 = vmatprep.subr.bf16.mxu1 %v7674_v18 }
 0xa3e   : > { %6799 = vmatpush3.bf16.xpose.msra.mxu0 %v4757_v35 }
 0xa3f   : > { %6810 = vmatprep.subr.bf16.mxu0 %v7674_v18 }
 0xaf4   : > { %v3194_v36 = vpop.f32.mrb[40].mxu0 }
 0xaf5   : > { %v6774_v37 = vpop.f32.mrb[41].mxu0  ;;  %v3195_v39 = vadd.f32 %v3194_v36, %v3144_v7 }
 0xaf6   : > { %v3197_v8 = vpop.f32.mrb[42].mxu0 }
 0xaf7   : > { %v3198_v42 = vadd.f32 %v3197_v8, %v3144_v7  ;;  %v6775_v33 = vpop.f32.mrb[43].mxu0 }
 0xaf9   : > { %v3347_v2 = vpack.c.bf16 %v3198_v42, %v3195_v39 }
 0xafb   : > { %3351 = vrot.lane.b32.xlu0 %v3347_v2, %s7676_s20  ;;  %3349 = vrot.lane.b32.xlu1 %v3347_v2, %s7677_s23  ;;  %v3359_v5 = vshrl.u32 %v3347_v2, 16 }
 0xafc   : > { %v6790_v44 = vpop.f32.mrb[44].mxu0 }
 0xafd   : > { %v3332_v46 = vpop.f32.mrb[45].mxu0  ;;  %v3341_v51 = vadd.f32 %v6790_v44, %v3285_v47 }
 0xafe   : > { %v6791_v48 = vpop.f32.mrb[46].mxu0  ;;  %v3333_v52 = vadd.f32 %v3332_v46, %v3285_v47 }
 0xaff   : > { %3641 = vrot.lane.b32.xlu0 %v8632_v41, %s7678_s4  ;;  %3353 = vrot.lane.b32.xlu1 %v3347_v2, %s7678_s4  ;;  %v3335_v43 = vpop.f32.mrb[47].mxu0  ;;  %v3344_v53 = vadd.f32 %v6791_v48, %v3285_v47 }
 0xb00   : > { %v3336_v50 = vadd.f32 %v3335_v43, %v3285_v47 }
 0xb01   : > { %v8709_v57 = vpack.c.bf16 %v3344_v53, %v3341_v51 }
 0xb02   : > { %v8711_v58 = vpack.c.bf16 %v3336_v50, %v3333_v52 }
 0xb03   : > { %3637 = vrot.lane.b32.xlu1 %v8632_v41, %s7676_s20 }
 0xb07   : > { %4167 = vrot.lane.b32.xlu1 %v8711_v58, %s7677_s23 }
 0xb6d   : > { %v3350_v63 = vpop.permute.xlu1 %3349  ;;  %v3352_v6 = vpop.permute.xlu0 %3351 }
 0xb6e   : > { %v3357_v3 = vpack.i.b16 %v3350_v63, %v3347_v2  ;;  %v3360_v45 = vshrl.u32 %v3350_v63, 16  ;;  %v3367_v21 = vshrl.u32 %v3352_v6, 16 }
 0xb70   : > { %v3361_v10 = vpack.i.b16 %v3360_v45, %v3359_v5  ;;  %v3371_v38 = vcombine.high %v3357_v3, %v8266_v15  ;;  %v3378_v40 = vrot.slane %v3357_v3, %v8269_v20 }
 0xb71   : > { %v3354_v11 = vpop.permute.xlu1 %3353  ;;  %v3642_v16 = vpop.permute.xlu0 %3641 }
 0xb72   : > { %v3365_v61 = vpack.i.b16 %v3354_v11, %v3352_v6  ;;  %v3368_v17 = vshrl.u32 %v3354_v11, 16  ;;  %v3437_v41 = vcombine.high %v3361_v10, %v8266_v15  ;;  %v3385_v32 = vrot.slane %v3371_v38, %v8269_v20 }
 0xb73   : > { %v3444_v8 = vrot.slane %v3361_v10, %v8269_v20  ;;  %v3672_v42 = vshrl.u32 %v3642_v16, 16  ;;  %v3880_v10 = vrot.slane %v3665_v12, %v8269_v20 }
 0xb74   : > { %v3369_v25 = vpack.i.b16 %v3368_v17, %v3367_v21  ;;  %v3386_v24 = vcombine.high %v3365_v61, %v8266_v15  ;;  %v3393_v26 = vrot.slane %v3365_v61, %v8269_v20  ;;  %v3451_v39 = vrot.slane %v3437_v41, %v8269_v20 }
 0xb75   : > { %v3638_v23 = vpop.permute.xlu1 %3637  ;;  %v3887_v21 = vrot.slane %v3873_v30, %v8269_v20  ;;  %v4803_v30 = vsel %vm1871_vm3, %v4147_v27, 0 }
 0xb76   : > { %v3669_v35 = vpack.i.b16 %v3642_v16, %v3638_v23  ;;  %v3400_v0 = vrot.slane %v3386_v24, %v8269_v20  ;;  %v3401_v7 = vcombine.low %v3378_v40, %v3393_v26  ;;  %v3402_v36 = vcombine.high %v3378_v40, %v3393_v26 }
 0xb77   : > { %v3452_v37 = vcombine.high %v3369_v25, %v8266_v15  ;;  %v3459_v33 = vrot.slane %v3369_v25, %v8269_v20  ;;  %v3671_v50 = vshrl.u32 %v3638_v23, 16 }
 0xb78   : > { %v3409_v2 = vrot.slane %v3401_v7, %v8273_v31  ;;  %v3416_v34 = vrot.slane %v3402_v36, %v8273_v31  ;;  %v3417_v44 = vcombine.low %v3385_v32, %v3400_v0  ;;  %v3418_v46 = vcombine.high %v3385_v32, %v3400_v0 }
 0xb79   : > { %v3466_v47 = vrot.slane %v3452_v37, %v8269_v20  ;;  %v3467_v48 = vcombine.low %v3444_v8, %v3459_v33  ;;  %v3468_v43 = vcombine.high %v3444_v8, %v3459_v33  ;;  %v3822_v51 = vcombine.high %v3669_v35, %v8266_v15 }
 0xb7a   : > { %v3503_v52 = vcombine.low %v3409_v2, %v3416_v34  ;;  %v6477_v53 = vcombine.high %v3409_v2, %v3416_v34  ;;  %v3829_v59 = vrot.slane %v3669_v35, %v8269_v20  ;;  %v8740_v3 = vrot.slane %v3417_v44, %v8273_v31 }
 0xb7b   : > { %v3475_v60 = vrot.slane %v3467_v48, %v8273_v31  ;;  %v3482_v56 = vrot.slane %v3468_v43, %v8273_v31  ;;  %v3483_v63 = vcombine.low %v3451_v39, %v3466_v47  ;;  %v3484_v54 = vcombine.high %v3451_v39, %v3466_v47 }
 0xb7c   : > { %v8743_v5 = vrot.slane %v3418_v46, %v8273_v31  ;;  %v3510_v45 = vrot.slane %v3503_v52, %v8269_v20  ;;  %v3518_v6 = vrot.slane %v6477_v53, %v8269_v20  ;;  %v3836_v38 = vrot.slane %v3822_v51, %v8269_v20 }
 0xb7d   : > { %v3528_v11 = vcombine.low %v3475_v60, %v3482_v56  ;;  %v6478_v13 = vcombine.high %v3475_v60, %v3482_v56  ;;  %v3673_v17 = vpack.i.b16 %v3672_v42, %v3671_v50  ;;  %v3837_v41 = vcombine.low %v3814_v22, %v3829_v59 }
 0xb7e   : > { %v3519_v61 = vcombine.low %v3510_v45, %v3518_v6  ;;  %v8751_v40 = vrot.slane %v3483_v63, %v8273_v31  ;;  %v8754_v16 = vrot.slane %v3484_v54, %v8273_v31  ;;  %v3553_v26 = vcombine.low %v8740_v3, %v8743_v5 }
 0xb7f   : > { %v3535_v25 = vrot.slane %v3528_v11, %v8269_v20  ;;  %v3543_v24 = vrot.slane %v6478_v13, %v8269_v20  ;;  %v3838_v23 = vcombine.high %v3814_v22, %v3829_v59  ;;  %v6479_v35 = vcombine.high %v8740_v3, %v8743_v5 }
 0xb80   : > { %v3526_v12 = vrot.slane %v3519_v61, %v8273_v31  ;;  %v3845_v0 = vrot.slane %v3837_v41, %v8273_v31  ;;  %v3853_v7 = vcombine.low %v3821_v19, %v3836_v38  ;;  %v3854_v37 = vcombine.high %v3821_v19, %v3836_v38 }
 0xb81   : > { %v3544_v32 = vcombine.low %v3535_v25, %v3543_v24  ;;  %v3852_v36 = vrot.slane %v3838_v23, %v8273_v31  ;;  %v3888_v8 = vcombine.high %v3673_v17, %v8266_v15  ;;  %v3895_v39 = vrot.slane %v3673_v17, %v8269_v20 }
 0xb82   : > { %v3578_v22 = vcombine.low %v8751_v40, %v8754_v16  ;;  %v3861_v62 = vrot.slane %v3853_v7, %v8273_v31  ;;  %v3606_v27 = vshrl.u32 %v3526_v12, 16  ;;  %v3868_v42 = vrot.slane %v3854_v37, %v8273_v31 }
 0xb83   : > { %v3551_v49 = vrot.slane %v3544_v32, %v8273_v31  ;;  %v3902_v33 = vrot.slane %v3888_v8, %v8269_v20  ;;  %v3903_v2 = vcombine.low %v3880_v10, %v3895_v39  ;;  %v3904_v34 = vcombine.high %v3880_v10, %v3895_v39 }
 0xb84   : > { %v4039_v44 = vcombine.low %v3845_v0, %v3852_v36  ;;  %v6485_v19 = vcombine.high %v3845_v0, %v3852_v36  ;;  %v4055_v59 = vcombine.low %v3861_v62, %v3868_v42  ;;  %v6486_v60 = vcombine.high %v3861_v62, %v3868_v42 }
 0xb85   : > { %v3605_v46 = vpack.i.b16 %v3551_v49, %v3526_v12  ;;  %v3607_v47 = vshrl.u32 %v3551_v49, 16  ;;  %v3911_v48 = vrot.slane %v3903_v2, %v8273_v31  ;;  %v3918_v43 = vrot.slane %v3904_v34, %v8273_v31 }
 0xb86   : > { %v3919_v51 = vcombine.low %v3887_v21, %v3902_v33  ;;  %v3920_v52 = vcombine.high %v3887_v21, %v3902_v33  ;;  %v4046_v53 = vrot.slane %v4039_v44, %v8269_v20  ;;  %v4054_v50 = vrot.slane %v6485_v19, %v8269_v20 }
 0xb87   : > { %6795 = vmatmul.mubr.msk.bf16.vlgmr.msra.gmra.mrb[44].mxu1 %vm1871_vm3, %v3605_v46  ;;  %v4089_v54 = vcombine.low %v3911_v48, %v3918_v43  ;;  %v6487_v45 = vcombine.high %v3911_v48, %v3918_v43  ;;  %v6480_v6 = vcombine.high %v8751_v40, %v8754_v16  ;;  %v3608_v10 = vpack.i.b16 %v3607_v47, %v3606_v27 }
 0xb88   : > { %v3927_v56 = vrot.slane %v3919_v51, %v8273_v31  ;;  %v3934_v63 = vrot.slane %v3920_v52, %v8273_v31  ;;  %6805 = vmatpush3.bf16.xpose.msra.mxu1 %v4803_v30  ;;  %v4849_v11 = vsel %vm1871_vm3, %v8693_v4, 0  ;;  %6806 = vmatprep.mubr.msk.bf16.mxu1 %vm7675_vm2, %v7674_v18  ;;  %v3552_v13 = vcombine.high %v3551_v49, %v7681_v14 }
 0xb89   : > { %6816 = vmatprep.subr.bf16.mxu1 %v7674_v18  ;;  %v4062_v61 = vrot.slane %v4055_v59, %v8269_v20  ;;  %v4070_v17 = vrot.slane %v6486_v60, %v8269_v20  ;;  %6801 = vmatmul.mubr.msk.bf16.vlgmr.msra.gmra.mrb[48].mxu0 %vm1871_vm3, %v3608_v10  ;;  %v3527_v41 = vcombine.high %v3526_v12, %v7681_v14 }
 0xb8a   : > { %v4105_v38 = vcombine.low %v3927_v56, %v3934_v63  ;;  %v6488_v21 = vcombine.high %v3927_v56, %v3934_v63  ;;  %v4071_v40 = vcombine.low %v4046_v53, %v4054_v50  ;;  %v4096_v4 = vrot.slane %v4089_v54, %v8269_v20  ;;  %6811 = vmatpush3.bf16.xpose.msra.mxu0 %v4849_v11 }
 0xb8b   : > { %v4104_v16 = vrot.slane %v6487_v45, %v8269_v20  ;;  %6812 = vmatprep.mubr.msk.bf16.mxu0 %vm7675_vm2, %v7674_v18  ;;  %v4079_v25 = vcombine.low %v4062_v61, %v4070_v17  ;;  %v3585_v30 = vrot.slane %v3578_v22, %v8269_v20  ;;  %v3611_v32 = vpack.i.b16 %v3552_v13, %v3527_v41 }
 0xb8c   : > { %v4112_v24 = vrot.slane %v4105_v38, %v8269_v20  ;;  %v4120_v23 = vrot.slane %v6488_v21, %v8269_v20  ;;  %v3613_v7 = vshrl.u32 %v3552_v13, 16  ;;  %6822 = vmatprep.subr.bf16.mxu0 %v7674_v18  ;;  %v3593_v12 = vrot.slane %v6480_v6, %v8269_v20 }
 0xb8d   : > { %v4121_v0 = vcombine.low %v4096_v4, %v4104_v16  ;;  %v4078_v36 = vrot.slane %v4071_v40, %v8273_v31  ;;  %v4086_v37 = vrot.slane %v4079_v25, %v8273_v31  ;;  %v3560_v39 = vrot.slane %v3553_v26, %v8269_v20 }
 0xb8e   : > { %v4129_v8 = vcombine.low %v4112_v24, %v4120_v23  ;;  %v3568_v22 = vrot.slane %v6479_v35, %v8269_v20  ;;  %v3612_v62 = vshrl.u32 %v3527_v41, 16  ;;  %v3594_v2 = vcombine.low %v3585_v30, %v3593_v12 }
 0xb8f   : > { %6807 = vmatmul.mubr.msk.bf16.vlgmr.msra.gmra.mrb[48].mxu1 %vm1871_vm3, %v3611_v32  ;;  %v4087_v49 = vcombine.low %v4078_v36, %v4086_v37  ;;  %v4128_v27 = vrot.slane %v4121_v0, %v8273_v31  ;;  %v4088_v48 = vcombine.high %v4078_v36, %v4086_v37 }
 0xb90   : > { %v4136_v42 = vrot.slane %v4129_v8, %v8273_v31  ;;  %6818 = vmatprep.mubr.msk.bf16.mxu1 %vm7675_vm2, %v7674_v18  ;;  %v3614_v33 = vpack.i.b16 %v3613_v7, %v3612_v62  ;;  %v3569_v26 = vcombine.low %v3560_v39, %v3568_v22  ;;  %v3601_v47 = vrot.slane %v3594_v2, %v8273_v31  ;;  %v785_v2 = vld [vmem:[#allocation8 + $0x1] sm:$0x1] }
 0xb91   : > { %v4154_v3 = vshrl.u32 %v4087_v49, 16  ;;  %v4160_v59 = vshrl.u32 %v4088_v48, 16 }
 0xb92   : > { %v4137_v34 = vcombine.low %v4128_v27, %v4136_v42  ;;  %6813 = vmatmul.mubr.msk.bf16.vlgmr.msra.gmra.mrb[52].mxu0 %vm1871_vm3, %v3614_v33  ;;  %v4138_v35 = vcombine.high %v4128_v27, %v4136_v42  ;;  %v3576_v51 = vrot.slane %v3569_v26, %v8273_v31  ;;  %v3619_v50 = vshrl.u32 %v3601_v47, 16 }
 0xb93   : > { %6824 = vmatprep.mubr.msk.bf16.mxu0 %vm7675_vm2, %v7674_v18  ;;  %v3602_v6 = vcombine.high %v3601_v47, %v7681_v14 }
 0xb94   : > { %v4153_v44 = vpack.i.b16 %v4137_v34, %v4087_v49  ;;  %v4155_v5 = vshrl.u32 %v4137_v34, 16  ;;  %v4161_v52 = vshrl.u32 %v4138_v35, 16  ;;  %v4159_v53 = vpack.i.b16 %v4138_v35, %v4088_v48 }
 0xb95   : > { %v3617_v60 = vpack.i.b16 %v3601_v47, %v3576_v51  ;;  %v3618_v56 = vshrl.u32 %v3576_v51, 16  ;;  %v3577_v11 = vcombine.high %v3576_v51, %v7681_v14  ;;  %v3625_v13 = vshrl.u32 %v3602_v6, 16  ;;  %v784_v14 = vld [vmem:[#allocation8] sm:$0x1] }
 0xb96   : > { %v4895_v19 = vsel %vm1871_vm3, %v4153_v44, 0  ;;  %v4156_v46 = vpack.i.b16 %v4155_v5, %v4154_v3  ;;  %v4162_v63 = vpack.i.b16 %v4161_v52, %v4160_v59  ;;  %v4987_v54 = vsel %vm1871_vm3, %v4159_v53, 0 }
 0xb97   : > { %6817 = vmatpush3.bf16.xpose.msra.mxu1 %v4895_v19  ;;  %v3620_v45 = vpack.i.b16 %v3619_v50, %v3618_v56  ;;  %v3623_v38 = vpack.i.b16 %v3602_v6, %v3577_v11  ;;  %v3624_v21 = vshrl.u32 %v3577_v11, 16  ;;  %v5075_v17 = vunpack.c.l.bf16 %v784_v14  ;;  %v4168_v14 = vpop.permute.xlu1 %4167 }
 0xb98   : > { %v4941_v43 = vsel %vm1871_vm3, %v4156_v46, 0  ;;  %6828 = vmatprep.subr.bf16.mxu1 %v7674_v18  ;;  %v5033_v10 = vsel %vm1871_vm3, %v4162_v63, 0  ;;  %v5076_v3 = vunpack.c.l.bf16 %v785_v2 }
 0xb99   : > { %6823 = vmatpush3.bf16.xpose.msra.mxu0 %v4941_v43  ;;  %v3626_v61 = vpack.i.b16 %v3625_v13, %v3624_v21  ;;  %v5080_v41 = vrot.slane %v5075_v17, %v8222_v29 }
 0xb9a   : > { %6834 = vmatprep.subr.bf16.mxu0 %v7674_v18  ;;  %v5084_v5 = vrot.slane %v5076_v3, %v8222_v29 }
 0xb9e   : > { %6819 = vmatmul.mubr.msk.bf16.vlgmr.msra.gmra.mrb[52].mxu1 %vm1871_vm3, %v3617_v60 }
 0xb9f   : > { %6829 = vmatpush3.bf16.xpose.msra.mxu1 %v4987_v54  ;;  %6830 = vmatprep.mubr.msk.bf16.mxu1 %vm7675_vm2, %v7674_v18 }
 0xba0   : > { %6825 = vmatmul.mubr.msk.bf16.vlgmr.msra.gmra.mrb[56].mxu0 %vm1871_vm3, %v3620_v45  ;;  %6840 = vmatprep.subr.bf16.mxu1 %v7674_v18 }
 0xba1   : > { %6835 = vmatpush3.bf16.xpose.msra.mxu0 %v5033_v10  ;;  %6836 = vmatprep.mubr.msk.bf16.mxu0 %vm7675_vm2, %v7674_v18 }
 0xba2   : > { %6846 = vmatprep.subr.bf16.mxu0 %v7674_v18 }
 0xba6   : > { %6831 = vmatmul.mubr.msk.bf16.vlgmr.msra.gmra.mrb[56].mxu1 %vm1871_vm3, %v3623_v38 }
 0xba7   : > { %6842 = vmatprep.mubr.msk.bf16.mxu1 %vm7675_vm2, %v7674_v18 }
 0xba8   : > { %6837 = vmatmul.mubr.msk.bf16.vlgmr.msra.gmra.mrb[60].mxu0 %vm1871_vm3, %v3626_v61 }
 0xba9   : > { %6848 = vmatprep.mubr.msk.bf16.mxu0 %vm7675_vm2, %v7674_v18 }
 0xc5a   : > { %v4747_v40 = vpop.f32.mrb[44].mxu1 }
 0xc5b   : > { %v8848_v4 = vadd.f32 %v5080_v41, %v4747_v40  ;;  %v6796_v16 = vpop.f32.mrb[45].mxu1 }
 0xc5c   : > { %v4750_v25 = vpop.f32.mrb[46].mxu1  ;;  %v4793_v30 = vpop.f32.mrb[48].mxu0 }
 0xc5d   : > { %v6797_v24 = vpop.f32.mrb[47].mxu1  ;;  %v5093_v23 = vsel %vm3013_vm5, %v8848_v4, -inf  ;;  %v5086_v32 = vadd.f32 %v5080_v41, %v4793_v30  ;;  %v6802_v0 = vpop.f32.mrb[49].mxu0 }
 0xc5e   : > { %5094 = vmax.xlane.f32.xlu1 %v5093_v23  ;;  %v4796_v7 = vpop.f32.mrb[50].mxu0 }
 0xc5f   : > { %v6803_v12 = vpop.f32.mrb[51].mxu0  ;;  %v5096_v36 = vsel %vm3013_vm5, %v5086_v32, -inf }
 0xc60   : > { %5097 = vmax.xlane.f32.xlu0 %v5096_v36 }
 0xc62   : > { %v4839_v37 = vpop.f32.mrb[48].mxu1 }
 0xc63   : > { %v5087_v8 = vadd.f32 %v5080_v41, %v4839_v37  ;;  %v6808_v39 = vpop.f32.mrb[49].mxu1 }
 0xc64   : > { %v4842_v22 = vpop.f32.mrb[50].mxu1 }
 0xc65   : > { %v6809_v62 = vpop.f32.mrb[51].mxu1  ;;  %v5099_v49 = vsel %vm3013_vm5, %v5087_v8, -inf  ;;  %v4885_v27 = vpop.f32.mrb[52].mxu0 }
 0xc66   : > { %5100 = vmax.xlane.f32.xlu0 %v5099_v49  ;;  %v8854_v42 = vadd.f32 %v5080_v41, %v4885_v27  ;;  %v6814_v33 = vpop.f32.mrb[53].mxu0  ;;  %v4183_v62 = vshrl.u32 %v8711_v58, 16  ;;  %v4184_v49 = vshrl.u32 %v4168_v14, 16 }
 0xc67   : > { %v4888_v34 = vpop.f32.mrb[54].mxu0  ;;  %v4181_v33 = vpack.i.b16 %v4168_v14, %v8711_v58 }
 0xc68   : > { %v6815_v26 = vpop.f32.mrb[55].mxu0  ;;  %v5102_v44 = vsel %vm3013_vm5, %v8854_v42, -inf  ;;  %v4185_v34 = vpack.i.b16 %v4184_v49, %v4183_v62 }
 0xc6a   : > { %5103 = vmax.xlane.f32.xlu0 %v5102_v44  ;;  %v4211_v44 = vcombine.high %v4181_v33, %v8266_v15 }
 0xc71   : > { %v4931_v35 = vpop.f32.mrb[52].mxu1 }
 0xc72   : > { %v8859_v19 = vadd.f32 %v5084_v5, %v4931_v35  ;;  %v6820_v46 = vpop.f32.mrb[53].mxu1 }
 0xc73   : > { %v4934_v47 = vpop.f32.mrb[54].mxu1  ;;  %v4977_v48 = vpop.f32.mrb[56].mxu0 }
 0xc74   : > { %v8861_v43 = vadd.f32 %v5084_v5, %v4977_v48  ;;  %v6821_v51 = vpop.f32.mrb[55].mxu1  ;;  %v6826_v52 = vpop.f32.mrb[57].mxu0  ;;  %v5105_v53 = vsel %vm3013_vm5, %v8859_v19, -inf  ;;  %v4277_v47 = vcombine.high %v4185_v34, %v8266_v15  ;;  %v4218_v48 = vrot.slane %v4181_v33, %v8269_v20 }
 0xc75   : > { %v4980_v50 = vpop.f32.mrb[58].mxu0  ;;  %5106 = vmax.xlane.f32.xlu1 %v5105_v53  ;;  %v4225_v53 = vrot.slane %v4211_v44, %v8269_v20 }
 0xc76   : > { %v6827_v59 = vpop.f32.mrb[59].mxu0  ;;  %v5108_v60 = vsel %vm3013_vm5, %v8861_v43, -inf }
 0xc77   : > { %5109 = vmax.xlane.f32.xlu0 %v5108_v60 }
 0xc79   : > { %v5023_v29 = vpop.f32.mrb[56].mxu1 }
 0xc7a   : > { %v8867_v56 = vadd.f32 %v5084_v5, %v5023_v29  ;;  %v6832_v63 = vpop.f32.mrb[57].mxu1 }
 0xc7b   : > { %v5026_v54 = vpop.f32.mrb[58].mxu1  ;;  %v5069_v45 = vpop.f32.mrb[60].mxu0  ;;  %v4284_v63 = vrot.slane %v4185_v34, %v8269_v20 }
 0xc7c   : > { %v8869_v6 = vadd.f32 %v5084_v5, %v5069_v45  ;;  %v6833_v10 = vpop.f32.mrb[59].mxu1  ;;  %v6838_v11 = vpop.f32.mrb[61].mxu0  ;;  %v5111_v13 = vsel %vm3013_vm5, %v8867_v56, -inf  ;;  %v4291_v54 = vrot.slane %v4277_v47, %v8269_v20 }
 0xc7d   : > { %v5072_v38 = vpop.f32.mrb[62].mxu0  ;;  %5112 = vmax.xlane.f32.xlu1 %v5111_v13 }
 0xc7e   : > { %v6839_v21 = vpop.f32.mrb[63].mxu0  ;;  %v5114_v61 = vsel %vm3013_vm5, %v8869_v6, -inf }
 0xc7f   : > { %5115 = vmax.xlane.f32.xlu0 %v5114_v61 }
 0xc8e   : > { %4175 = vrot.lane.b32.xlu1 %v8711_v58, %s7678_s4 }
 0xc95   : > { %4171 = vrot.lane.b32.xlu0 %v8711_v58, %s7676_s20 }
 0xceb   : > { %v5095_v17 = vpop.xlane.xlu1 %5094 }
 0xcec   : > { %v5117_v41 = vsub.f32 %v8848_v4, %v5095_v17 }
 0xced   : > { %v5098_v16 = vpop.xlane.xlu0 %5097 }
 0xcee   : > { %v5125_v40 = vmul.f32 1.442695, %v5117_v41  ;;  %v5118_v25 = vsub.f32 %v5086_v32, %v5098_v16 }
 0xcf0   : > { %7166 = vpow2.f32 %v5125_v40  ;;  %v5127_v24 = vmul.f32 1.442695, %v5118_v25 }
 0xcf2   : > { %7168 = vpow2.f32 %v5127_v24 }
 0xcf3   : > { %v5101_v23 = vpop.xlane.xlu0 %5100 }
 0xcf4   : > { %v5119_v30 = vsub.f32 %v5087_v8, %v5101_v23 }
 0xcf6   : > { %v5129_v0 = vmul.f32 1.442695, %v5119_v30 }
 0xcf7   : > { %v5104_v8 = vpop.xlane.xlu0 %5103 }
 0xcf8   : > { %7170 = vpow2.f32 %v5129_v0  ;;  %v5120_v21 = vsub.f32 %v8854_v42, %v5104_v8 }
 0xcfa   : > { %v8880_v7 = vpop.eup %7166  ;;  %v5131_v47 = vmul.f32 1.442695, %v5120_v21 }
 0xcfb   : > { %v5141_v12 = vsel %vm3013_vm5, %v8880_v7, 0.0 }
 0xcfc   : > { %5142 = vadd.xlane.f32.xlu1 %v5141_v12  ;;  %v8884_v36 = vpop.eup %7168  ;;  %7172 = vpow2.f32 %v5131_v47 }
 0xcfd   : > { %v5144_v4 = vsel %vm3013_vm5, %v8884_v36, 0.0 }
 0xcfe   : > { %5145 = vadd.xlane.f32.xlu0 %v5144_v4 }
 0xd02   : > { %v8888_v37 = vpop.eup %7170  ;;  %v8892_v39 = vpop.xlane.xlu1 %5106 }
 0xd03   : > { %v5147_v32 = vsel %vm3013_vm5, %v8888_v37, 0.0 }
 0xd04   : > { %5148 = vadd.xlane.f32.xlu0 %v5147_v32  ;;  %v8894_v22 = vpop.xlane.xlu0 %5109 }
 0xd0a   : > { %v8897_v27 = vpop.xlane.xlu1 %5112 }
 0xd0c   : > { %v8900_v2 = vpop.xlane.xlu0 %5115 }
 0xd0d   : > { %4173 = vrot.lane.b32.xlu1 %v8709_v57, %s7676_s20 }
 0xd0e   : > { %v4176_v26 = vpop.permute.xlu1 %4175 }
 0xd0f   : > { %v4192_v5 = vshrl.u32 %v4176_v26, 16 }
 0xd10   : > { %v4172_v3 = vpop.permute.xlu0 %4171 }
 0xd11   : > { %v4189_v35 = vpack.i.b16 %v4176_v26, %v4172_v3  ;;  %v4191_v46 = vshrl.u32 %v4172_v3, 16 }
 0xd13   : > { %v4193_v51 = vpack.i.b16 %v4192_v5, %v4191_v46  ;;  %v4226_v58 = vcombine.high %v4189_v35, %v8266_v15  ;;  %v4233_v52 = vrot.slane %v4189_v35, %v8269_v20 }
 0xd15   : > { %v4240_v50 = vrot.slane %v4226_v58, %v8269_v20  ;;  %v4241_v59 = vcombine.low %v4218_v48, %v4233_v52  ;;  %v4242_v60 = vcombine.high %v4218_v48, %v4233_v52  ;;  %v4292_v29 = vcombine.high %v4193_v51, %v8266_v15 }
 0xd16   : > { %v4299_v45 = vrot.slane %v4193_v51, %v8269_v20 }
 0xd17   : > { %v4249_v10 = vrot.slane %v4241_v59, %v8273_v31  ;;  %v4256_v11 = vrot.slane %v4242_v60, %v8273_v31  ;;  %v4257_v13 = vcombine.low %v4225_v53, %v4240_v50  ;;  %v4258_v38 = vcombine.high %v4225_v53, %v4240_v50 }
 0xd18   : > { %v4306_v61 = vrot.slane %v4292_v29, %v8269_v20  ;;  %v4307_v14 = vcombine.low %v4284_v63, %v4299_v45  ;;  %v4308_v17 = vcombine.high %v4284_v63, %v4299_v45  ;;  %v5122_v60 = vsub.f32 %v8861_v43, %v8894_v22 }
 0xd19   : > { %v4265_v41 = vrot.slane %v4257_v13, %v8273_v31  ;;  %v4272_v40 = vrot.slane %v4258_v38, %v8273_v31  ;;  %v4475_v16 = vcombine.low %v4249_v10, %v4256_v11  ;;  %v6489_v25 = vcombine.high %v4249_v10, %v4256_v11 }
 0xd1a   : > { %v4315_v24 = vrot.slane %v4307_v14, %v8273_v31  ;;  %v4322_v23 = vrot.slane %v4308_v17, %v8273_v31  ;;  %v4323_v30 = vcombine.low %v4291_v54, %v4306_v61  ;;  %v4324_v0 = vcombine.high %v4291_v54, %v4306_v61  ;;  %4169 = vrot.lane.b32.xlu0 %v8709_v57, %s7677_s23 }
 0xd1b   : > { %v4482_v42 = vrot.slane %v4475_v16, %v8269_v20  ;;  %v4490_v12 = vrot.slane %v6489_v25, %v8269_v20  ;;  %v4491_v4 = vcombine.low %v4265_v41, %v4272_v40  ;;  %v6490_v32 = vcombine.high %v4265_v41, %v4272_v40 }
 0xd1c   : > { %v4331_v8 = vrot.slane %v4323_v30, %v8273_v31  ;;  %v4338_v62 = vrot.slane %v4324_v0, %v8273_v31  ;;  %v4525_v49 = vcombine.low %v4315_v24, %v4322_v23  ;;  %v6491_v33 = vcombine.high %v4315_v24, %v4322_v23  ;;  %v8946_v24 = vpop.eup %7172 }
 0xd1d   : > { %v4498_v34 = vrot.slane %v4491_v4, %v8269_v20  ;;  %v4506_v26 = vrot.slane %v6490_v32, %v8269_v20  ;;  %v4507_v44 = vcombine.low %v4482_v42, %v4490_v12  ;;  %v5135_v13 = vmul.f32 1.442695, %v5122_v60 }
 0xd1e   : > { %v4532_v3 = vrot.slane %v4525_v49, %v8269_v20  ;;  %v4540_v5 = vrot.slane %v6491_v33, %v8269_v20  ;;  %v4541_v35 = vcombine.low %v4331_v8, %v4338_v62  ;;  %v6492_v46 = vcombine.high %v4331_v8, %v4338_v62 }
 0xd1f   : > { %v4515_v48 = vcombine.low %v4498_v34, %v4506_v26  ;;  %v4514_v53 = vrot.slane %v4507_v44, %v8273_v31  ;;  %v5123_v38 = vsub.f32 %v8867_v56, %v8897_v27  ;;  %7174 = vpow2.f32 %v5135_v13 }
 0xd20   : > { %v4548_v51 = vrot.slane %v4541_v35, %v8269_v20  ;;  %v4556_v58 = vrot.slane %v6492_v46, %v8269_v20  ;;  %v4557_v52 = vcombine.low %v4532_v3, %v4540_v5  ;;  %v5124_v25 = vsub.f32 %v8869_v6, %v8900_v2 }
 0xd21   : > { %v4522_v50 = vrot.slane %v4515_v48, %v8273_v31  ;;  %v5137_v16 = vmul.f32 1.442695, %v5123_v38  ;;  %v5150_v27 = vsel %vm3013_vm5, %v8946_v24, 0.0  ;;  %v5121_v12 = vsub.f32 %v8859_v19, %v8892_v39 }
 0xd22   : > { %v4565_v59 = vcombine.low %v4548_v51, %v4556_v58  ;;  %v4564_v54 = vrot.slane %v4557_v52, %v8273_v31  ;;  %v5139_v56 = vmul.f32 1.442695, %v5124_v25  ;;  %v4199_v48 = vshrl.u32 %v8709_v57, 16 }
 0xd23   : > { %v4523_v29 = vcombine.low %v4514_v53, %v4522_v50  ;;  %v4524_v63 = vcombine.high %v4514_v53, %v4522_v50  ;;  %7176 = vpow2.f32 %v5137_v16  ;;  %v5133_v4 = vmul.f32 1.442695, %v5121_v12 }
 0xd24   : > { %v4572_v45 = vrot.slane %v4565_v59, %v8273_v31  ;;  %7178 = vpow2.f32 %v5139_v56 }
 0xd25   : > { %v4679_v21 = vshrl.u32 %v4523_v29, 16  ;;  %v4687_v61 = vshrl.u32 %v4524_v63, 16  ;;  %7180 = vpow2.f32 %v5133_v4 }
 0xd26   : > { %v4573_v10 = vcombine.low %v4564_v54, %v4572_v45  ;;  %v4574_v11 = vcombine.high %v4564_v54, %v4572_v45 }
 0xd28   : > { %v4677_v14 = vpack.i.b16 %v4573_v10, %v4523_v29  ;;  %v4680_v17 = vshrl.u32 %v4573_v10, 16  ;;  %v4685_v41 = vpack.i.b16 %v4574_v11, %v4524_v63  ;;  %v4688_v40 = vshrl.u32 %v4574_v11, 16 }
 0xd29   : > { %v8951_v23 = vpop.eup %7174 }
 0xd2a   : > { %6841 = vmatpush3.bf16.msra.mxu1 %v4677_v14  ;;  %v4681_v43 = vpack.i.b16 %v4680_v17, %v4679_v21  ;;  %v4689_v22 = vpack.i.b16 %v4688_v40, %v4687_v61  ;;  %v5156_v30 = vsel %vm3013_vm5, %v8951_v23, 0.0 }
 0xd2b   : > { %6852 = vmatprep.subr.bf16.mxu1 %v7674_v18 }
 0xd2c   : > { %6847 = vmatpush3.bf16.msra.mxu0 %v4681_v43 }
 0xd2d   : > { %6858 = vmatprep.subr.bf16.mxu0 %v7674_v18  ;;  %v8955_v6 = vpop.eup %7176 }
 0xd2e   : > { %v5159_v2 = vsel %vm3013_vm5, %v8955_v6, 0.0  ;;  %v8959_v0 = vpop.eup %7178 }
 0xd2f   : > { %v5162_v42 = vsel %vm3013_vm5, %v8959_v0, 0.0  ;;  %v8967_v32 = vpop.eup %7180 }
 0xd30   : > { %v5153_v8 = vsel %vm3013_vm5, %v8967_v32, 0.0 }
 0xd31   : > { %5151 = vadd.xlane.f32.xlu1 %v5150_v27 }
 0xd39   : > { %5157 = vadd.xlane.f32.xlu0 %v5156_v30 }
 0xd3d   : > { %5160 = vadd.xlane.f32.xlu0 %v5159_v2 }
 0xd41   : > { %5163 = vadd.xlane.f32.xlu0 %v5162_v42 }
 0xd42   : > { %4177 = vrot.lane.b32.xlu1 %v8709_v57, %s7678_s4 }
 0xd66   : > { %5154 = vadd.xlane.f32.xlu1 %v5153_v8 }
 0xd89   : > { %v5143_v62 = vpop.xlane.xlu1 %5142 }
 0xd8a   : > { %7182 = vrcp.f32 %v5143_v62 }
 0xd8b   : > { %v5146_v49 = vpop.xlane.xlu0 %5145 }
 0xd8c   : > { %7184 = vrcp.f32 %v5146_v49 }
 0xd8d   : > { %v4174_v46 = vpop.permute.xlu1 %4173 }
 0xd8e   : > { %v4207_v50 = vshrl.u32 %v4174_v46, 16 }
 0xd91   : > { %v5149_v33 = vpop.xlane.xlu0 %5148 }
 0xd92   : > { %7186 = vrcp.f32 %v5149_v33 }
 0xd94   : > { %v7183_v34 = vpop.eup %7182 }
 0xd95   : > { %v5173_v26 = vmul.f32 %v7183_v34, %v8880_v7 }
 0xd96   : > { %v7185_v3 = vpop.eup %7184 }
 0xd97   : > { %v5181_v44 = vpack.c.bf16 %v5173_v26, %v5173_v26  ;;  %v5174_v19 = vmul.f32 %v7185_v3, %v8884_v36  ;;  %v4170_v36 = vpop.permute.xlu0 %4169 }
 0xd98   : > { %v4200_v47 = vshrl.u32 %v4170_v36, 16 }
 0xd99   : > { %6843 = vmatmul.mubr.msk.bf16.vlgmr.msra.gmra.mrb[60].mxu1 %vm3013_vm5, %v5181_v44  ;;  %v5182_v39 = vpack.c.bf16 %v5174_v19, %v5174_v19 }
 0xd9a   : > { %6853 = vmatpush3.bf16.msra.mxu1 %v4685_v41  ;;  %6854 = vmatprep.mubr.msk.bf16.mxu1 %vm7675_vm2, %v7674_v18  ;;  %v4201_v58 = vpack.i.b16 %v4200_v47, %v4199_v48 }
 0xd9b   : > { %6864 = vmatprep.subr.bf16.mxu1 %v7674_v18  ;;  %6849 = vmatmul.mubr.msk.bf16.vlgmr.msra.gmra.mrb[64].mxu0 %vm3013_vm5, %v5182_v39 }
 0xd9c   : > { %v7187_v5 = vpop.eup %7186  ;;  %6859 = vmatpush3.bf16.msra.mxu0 %v4689_v22  ;;  %6860 = vmatprep.mubr.msk.bf16.mxu0 %vm7675_vm2, %v7674_v18  ;;  %v4409_v29 = vcombine.high %v4201_v58, %v8266_v15  ;;  %v4416_v14 = vrot.slane %v4201_v58, %v8269_v20 }
 0xd9d   : > { %v5175_v35 = vmul.f32 %v7187_v5, %v8888_v37  ;;  %6870 = vmatprep.subr.bf16.mxu0 %v7674_v18  ;;  %v4197_v37 = vpack.i.b16 %v4170_v36, %v8709_v57 }
 0xd9e   : > { %v4423_v17 = vrot.slane %v4409_v29, %v8269_v20 }
 0xd9f   : > { %v5183_v7 = vpack.c.bf16 %v5175_v35, %v5175_v35  ;;  %v4343_v52 = vcombine.high %v4197_v37, %v8266_v15  ;;  %v4350_v63 = vrot.slane %v4197_v37, %v8269_v20 }
 0xda1   : > { %6855 = vmatmul.mubr.msk.bf16.vlgmr.msra.gmra.mrb[64].mxu1 %vm3013_vm5, %v5183_v7  ;;  %v4357_v57 = vrot.slane %v4343_v52, %v8269_v20 }
 0xda2   : > { %6866 = vmatprep.mubr.msk.bf16.mxu1 %vm7675_vm2, %v7674_v18 }
 0xdbe   : > { %v5152_v51 = vpop.xlane.xlu1 %5151 }
 0xdbf   : > { %7188 = vrcp.f32 %v5152_v51 }
 0xdc2   : > { %v4178_v53 = vpop.permute.xlu1 %4177 }
 0xdc3   : > { %v4205_v59 = vpack.i.b16 %v4178_v53, %v4174_v46  ;;  %v4208_v60 = vshrl.u32 %v4178_v53, 16 }
 0xdc5   : > { %v4209_v54 = vpack.i.b16 %v4208_v60, %v4207_v50  ;;  %v4358_v45 = vcombine.high %v4205_v59, %v8266_v15  ;;  %v4365_v10 = vrot.slane %v4205_v59, %v8269_v20 }
 0xdc6   : > { %v5158_v11 = vpop.xlane.xlu0 %5157 }
 0xdc7   : > { %v4372_v13 = vrot.slane %v4358_v45, %v8269_v20  ;;  %v4373_v38 = vcombine.low %v4350_v63, %v4365_v10  ;;  %v4374_v21 = vcombine.high %v4350_v63, %v4365_v10  ;;  %v4424_v61 = vcombine.high %v4209_v54, %v8266_v15 }
 0xdc8   : > { %v4431_v41 = vrot.slane %v4209_v54, %v8269_v20  ;;  %7190 = vrcp.f32 %v5158_v11 }
 0xdc9   : > { %v7189_v40 = vpop.eup %7188  ;;  %v4381_v43 = vrot.slane %v4373_v38, %v8273_v31  ;;  %v4388_v22 = vrot.slane %v4374_v21, %v8273_v31  ;;  %v4389_v16 = vcombine.low %v4357_v57, %v4372_v13  ;;  %v4390_v25 = vcombine.high %v4357_v57, %v4372_v13 }
 0xdca   : > { %v5176_v56 = vmul.f32 %v7189_v40, %v8946_v24  ;;  %v4438_v27 = vrot.slane %v4424_v61, %v8269_v20  ;;  %v4439_v30 = vcombine.low %v4416_v14, %v4431_v41  ;;  %v4440_v15 = vcombine.high %v4416_v14, %v4431_v41  ;;  %v5161_v3 = vpop.xlane.xlu0 %5160 }
 0xdcb   : > { %v4397_v2 = vrot.slane %v4389_v16, %v8273_v31  ;;  %v4404_v42 = vrot.slane %v4390_v25, %v8273_v31  ;;  %v4575_v12 = vcombine.low %v4381_v43, %v4388_v22  ;;  %v6493_v4 = vcombine.high %v4381_v43, %v4388_v22 }
 0xdcc   : > { %v4447_v8 = vrot.slane %v4439_v30, %v8273_v31  ;;  %v4454_v62 = vrot.slane %v4440_v15, %v8273_v31  ;;  %v4455_v49 = vcombine.low %v4423_v17, %v4438_v27  ;;  %v4456_v33 = vcombine.high %v4423_v17, %v4438_v27 }
 0xdcd   : > { %v4582_v34 = vrot.slane %v4575_v12, %v8269_v20  ;;  %v4590_v24 = vrot.slane %v6493_v4, %v8269_v20  ;;  %v4591_v26 = vcombine.low %v4397_v2, %v4404_v42  ;;  %v6494_v44 = vcombine.high %v4397_v2, %v4404_v42 }
 0xdce   : > { %v4463_v19 = vrot.slane %v4455_v49, %v8273_v31  ;;  %v4470_v39 = vrot.slane %v4456_v33, %v8273_v31  ;;  %v4625_v5 = vcombine.low %v4447_v8, %v4454_v62  ;;  %v6495_v35 = vcombine.high %v4447_v8, %v4454_v62  ;;  %v5164_v29 = vpop.xlane.xlu0 %5163 }
 0xdcf   : > { %v4598_v7 = vrot.slane %v4591_v26, %v8269_v20  ;;  %v4606_v36 = vrot.slane %v6494_v44, %v8269_v20  ;;  %v5184_v46 = vpack.c.bf16 %v5176_v56, %v5176_v56  ;;  %v4607_v58 = vcombine.low %v4582_v34, %v4590_v24 }
 0xdd0   : > { %v4632_v47 = vrot.slane %v4625_v5, %v8269_v20  ;;  %v4640_v48 = vrot.slane %v6495_v35, %v8269_v20  ;;  %v4641_v37 = vcombine.low %v4463_v19, %v4470_v39  ;;  %v6496_v51 = vcombine.high %v4463_v19, %v4470_v39 }
 0xdd1   : > { %6861 = vmatmul.mubr.msk.bf16.vlgmr.msra.gmra.mrb[68].mxu0 %vm3013_vm5, %v5184_v46  ;;  %v4615_v52 = vcombine.low %v4598_v7, %v4606_v36  ;;  %v4614_v54 = vrot.slane %v4607_v58, %v8273_v31  ;;  %7192 = vrcp.f32 %v5164_v29 }
 0xdd2   : > { %v7191_v53 = vpop.eup %7190  ;;  %v4648_v50 = vrot.slane %v4641_v37, %v8269_v20  ;;  %v4656_v59 = vrot.slane %v6496_v51, %v8269_v20  ;;  %v4657_v60 = vcombine.low %v4632_v47, %v4640_v48  ;;  %6872 = vmatprep.mubr.msk.bf16.mxu0 %vm7675_vm2, %v7674_v18 }
 0xdd3   : > { %v4622_v63 = vrot.slane %v4615_v52, %v8273_v31  ;;  %v5178_v41 = vmul.f32 %v7191_v53, %v8951_v23 }
 0xdd4   : > { %v4665_v45 = vcombine.low %v4648_v50, %v4656_v59  ;;  %v4664_v57 = vrot.slane %v4657_v60, %v8273_v31 }
 0xdd5   : > { %v4623_v10 = vcombine.low %v4614_v54, %v4622_v63  ;;  %v4624_v17 = vcombine.high %v4614_v54, %v4622_v63  ;;  %v5186_v16 = vpack.c.bf16 %v5178_v41, %v5178_v41 }
 0xdd6   : > { %v4672_v11 = vrot.slane %v4665_v45, %v8273_v31 }
 0xdd7   : > { %v4695_v61 = vshrl.u32 %v4623_v10, 16  ;;  %v4703_v22 = vshrl.u32 %v4624_v17, 16 }
 0xdd8   : > { %v4673_v13 = vcombine.low %v4664_v57, %v4672_v11  ;;  %v4674_v38 = vcombine.high %v4664_v57, %v4672_v11 }
 0xdda   : > { %v4693_v21 = vpack.i.b16 %v4673_v13, %v4623_v10  ;;  %v4696_v14 = vshrl.u32 %v4673_v13, 16  ;;  %v4704_v43 = vshrl.u32 %v4674_v38, 16  ;;  %v4701_v4 = vpack.i.b16 %v4674_v38, %v4624_v17 }
 0xddb   : > { %v7193_v25 = vpop.eup %7192 }
 0xddc   : > { %6865 = vmatpush3.bf16.msra.mxu1 %v4693_v21  ;;  %v4697_v40 = vpack.i.b16 %v4696_v14, %v4695_v61  ;;  %v4705_v56 = vpack.i.b16 %v4704_v43, %v4703_v22  ;;  %v5180_v23 = vmul.f32 %v7193_v25, %v8959_v0 }
 0xddd   : > { %6876 = vmatprep.subr.bf16.mxu1 %v7674_v18 }
 0xdde   : > { %6871 = vmatpush3.bf16.msra.mxu0 %v4697_v40  ;;  %v5188_v27 = vpack.c.bf16 %v5180_v23, %v5180_v23 }
 0xddf   : > { %6882 = vmatprep.subr.bf16.mxu0 %v7674_v18 }
 0xde1   : > { %6873 = vmatmul.mubr.msk.bf16.vlgmr.msra.gmra.mrb[72].mxu0 %vm3013_vm5, %v5186_v16 }
 0xde2   : > { %6883 = vmatpush3.bf16.msra.mxu0 %v4705_v56  ;;  %6884 = vmatprep.mubr.msk.bf16.mxu0 %vm7675_vm2, %v7674_v18 }
 0xde3   : > { %6896 = vmatprep.subr.bf16.mxu0 %v7674_v18 }
 0xde9   : > { %6885 = vmatmul.mubr.msk.bf16.vlgmr.msra.gmra.mrb[76].mxu0 %vm3013_vm5, %v5188_v27 }
 0xdea   : > { %6900 = vmatprep.mubr.msk.bf16.mxu0 %vm7675_vm2, %v7674_v18 }
 0xdf3   : > { %v5155_v30 = vpop.xlane.xlu1 %5154 }
 0xdf4   : > { %7194 = vrcp.f32 %v5155_v30 }
 0xdf5   : > { %7196 = vrcp.f32 %v5161_v3 }
 0xdfe   : > { %v7195_v15 = vpop.eup %7194 }
 0xdff   : > { %v5177_v2 = vmul.f32 %v7195_v15, %v8967_v32  ;;  %v7197_v12 = vpop.eup %7196 }
 0xe00   : > { %v5179_v0 = vmul.f32 %v7197_v12, %v8955_v6 }
 0xe01   : > { %v5185_v42 = vpack.c.bf16 %v5177_v2, %v5177_v2 }
 0xe02   : > { %v5187_v8 = vpack.c.bf16 %v5179_v0, %v5179_v0 }
 0xe03   : > { %6867 = vmatmul.mubr.msk.bf16.vlgmr.msra.gmra.mrb[68].mxu1 %vm3013_vm5, %v5185_v42 }
 0xe04   : > { %6877 = vmatpush3.bf16.msra.mxu1 %v4701_v4  ;;  %6878 = vmatprep.mubr.msk.bf16.mxu1 %vm7675_vm2, %v7674_v18 }
 0xe05   : > { %6888 = vmatprep.subr.bf16.mxu1 %v7674_v18 }
 0xe0b   : > { %6879 = vmatmul.mubr.msk.bf16.vlgmr.msra.gmra.mrb[72].mxu1 %vm3013_vm5, %v5187_v8 }
 0xe0c   : > { %6892 = vmatprep.mubr.msk.bf16.mxu1 %vm7675_vm2, %v7674_v18 }
 0xe6c   : > { %v5226_v32 = vpop.f32.mrb[60].mxu1 }
 0xe6d   : > { %v6844_v62 = vpop.f32.mrb[61].mxu1 }
 0xe6e   : > { %v5229_v49 = vpop.f32.mrb[62].mxu1  ;;  %v5269_v34 = vpop.f32.mrb[64].mxu0 }
 0xe6f   : > { %v6845_v33 = vpop.f32.mrb[63].mxu1  ;;  %v6850_v24 = vpop.f32.mrb[65].mxu0 }
 0xe70   : > { %v5272_v26 = vpop.f32.mrb[66].mxu0 }
 0xe71   : > { %v6851_v44 = vpop.f32.mrb[67].mxu0 }
 0xe74   : > { %v5312_v3 = vpop.f32.mrb[64].mxu1 }
 0xe75   : > { %v5533_v19 = vcombine.low %v5226_v32, %v5312_v3  ;;  %v5534_v39 = vcombine.high %v5226_v32, %v5312_v3  ;;  %v6856_v6 = vpop.f32.mrb[65].mxu1 }
 0xe76   : > { %v5315_v5 = vpop.f32.mrb[66].mxu1 }
 0xe77   : > { %v6857_v35 = vpop.f32.mrb[67].mxu1  ;;  %v5541_v37 = vrot.slane %v5533_v19, %v8269_v20  ;;  %v5548_v51 = vrot.slane %v5534_v39, %v8269_v20 }
 0xea4   : > { %v5355_v7 = vpop.f32.mrb[68].mxu0 }
 0xea5   : > { %v5549_v36 = vcombine.low %v5269_v34, %v5355_v7  ;;  %v5550_v46 = vcombine.high %v5269_v34, %v5355_v7  ;;  %v6862_v47 = vpop.f32.mrb[69].mxu0 }
 0xea6   : > { %v5358_v48 = vpop.f32.mrb[70].mxu0 }
 0xea7   : > { %v5557_v58 = vrot.slane %v5549_v36, %v8269_v20  ;;  %v5564_v52 = vrot.slane %v5550_v46, %v8269_v20  ;;  %v6863_v53 = vpop.f32.mrb[71].mxu0 }
 0xea9   : > { %v5565_v50 = vcombine.low %v5541_v37, %v5557_v58  ;;  %v5566_v59 = vcombine.high %v5541_v37, %v5557_v58  ;;  %v5581_v60 = vcombine.low %v5548_v51, %v5564_v52  ;;  %v5582_v29 = vcombine.high %v5548_v51, %v5564_v52 }
 0xeab   : > { %v5573_v63 = vrot.slane %v5565_v50, %v8273_v31  ;;  %v5580_v54 = vrot.slane %v5566_v59, %v8273_v31  ;;  %v5589_v45 = vrot.slane %v5581_v60, %v8273_v31  ;;  %v5596_v10 = vrot.slane %v5582_v29, %v8273_v31 }
 0xead   : > { %v5669_v57 = vcombine.low %v5573_v63, %v5580_v54  ;;  %v6513_v11 = vcombine.high %v5573_v63, %v5580_v54  ;;  %v5685_v13 = vcombine.low %v5589_v45, %v5596_v10  ;;  %v6514_v38 = vcombine.high %v5589_v45, %v5596_v10  ;;  %v7118_v10 = vld [vmem:[%s8178_s5 + $0x70] sm:$0xff]  }
 0xeae   : > { %6889 = vmatpush3.bf16.msra.mxu1 %v7118_v10  ;;  %v7122_v10 = vld [vmem:[%s8197_s10] sm:$0xff]  }
 0xeaf   : > { %v5676_v21 = vrot.slane %v5669_v57, %v8269_v20  ;;  %v5684_v61 = vrot.slane %v6513_v11, %v8269_v20  ;;  %v5692_v14 = vrot.slane %v5685_v13, %v8269_v20  ;;  %v5700_v17 = vrot.slane %v6514_v38, %v8269_v20  ;;  %6890 = vmatprep.subr.bf16.mxu1 %v7674_v18 }
 0xeb1   : > { %v5702_v41 = vcombine.high %v5676_v21, %v5684_v61  ;;  %v5718_v40 = vcombine.high %v5692_v14, %v5700_v17  ;;  %v5701_v43 = vcombine.low %v5676_v21, %v5684_v61  ;;  %v5717_v22 = vcombine.low %v5692_v14, %v5700_v17 }
 0xeb3   : > { %v9056_v16 = vrot.slane %v5702_v41, %v8273_v31  ;;  %v9059_v25 = vrot.slane %v5718_v40, %v8273_v31  ;;  %v9062_v56 = vrot.slane %v5701_v43, %v8273_v31  ;;  %v9065_v23 = vrot.slane %v5717_v22, %v8273_v31 }
 0xeb4   : > { %v5441_v27 = vpop.f32.mrb[72].mxu0 }
 0xeb5   : > { %v6874_v30 = vpop.f32.mrb[73].mxu0  ;;  %v5735_v15 = vcombine.low %v9056_v16, %v9059_v25  ;;  %v5733_v2 = vcombine.low %v9062_v56, %v9065_v23  ;;  %v5734_v42 = vcombine.high %v9062_v56, %v9065_v23  ;;  %v5736_v12 = vcombine.high %v9056_v16, %v9059_v25  ;;  %v7119_v16 = vld [vmem:[%s8178_s5 + $0x78] sm:$0xff]   ;;  %v7207_v23 = vld [vmem:[%s8188_s6] sm:$0xff] }
 0xeb6   : > { %v5444_v4 = vpop.f32.mrb[74].mxu0  ;;  %6891 = vmatpush3.bf16.msra.mxu1 %v7119_v16  ;;  %v5838_v56 = vsub.s32 7, %v8219_v28  ;;  %v7209_v16 = vld [vmem:[%s8192_s7] sm:$0x7] }
 0xeb7   : > { %v6875_v0 = vpop.f32.mrb[75].mxu0  ;;  %6904 = vmatprep.subr.bf16.mxu1 %v7674_v18 }
 0xebc   : > { %v5527_v8 = vpop.f32.mrb[76].mxu0 }
 0xebd   : > { %v5617_v32 = vcombine.low %v5441_v27, %v5527_v8  ;;  %v5618_v62 = vcombine.high %v5441_v27, %v5527_v8  ;;  %v6886_v49 = vpop.f32.mrb[77].mxu0 }
 0xebe   : > { %v5530_v33 = vpop.f32.mrb[78].mxu0 }
 0xebf   : > { %v6887_v34 = vpop.f32.mrb[79].mxu0  ;;  %v5625_v7 = vrot.slane %v5617_v32, %v8269_v20  ;;  %v5632_v36 = vrot.slane %v5618_v62, %v8269_v20 }
 0xed6   : > { %v5398_v24 = vpop.f32.mrb[68].mxu1 }
 0xed7   : > { %v6868_v26 = vpop.f32.mrb[69].mxu1 }
 0xed8   : > { %v5401_v44 = vpop.f32.mrb[70].mxu1 }
 0xed9   : > { %v6869_v3 = vpop.f32.mrb[71].mxu1 }
 0xede   : > { %v5484_v19 = vpop.f32.mrb[72].mxu1 }
 0xedf   : > { %v5601_v39 = vcombine.low %v5398_v24, %v5484_v19  ;;  %v5602_v6 = vcombine.high %v5398_v24, %v5484_v19  ;;  %v6880_v5 = vpop.f32.mrb[73].mxu1 }
 0xee0   : > { %v5487_v35 = vpop.f32.mrb[74].mxu1 }
 0xee1   : > { %v5609_v46 = vrot.slane %v5601_v39, %v8269_v20  ;;  %v5616_v47 = vrot.slane %v5602_v6, %v8269_v20  ;;  %v6881_v48 = vpop.f32.mrb[75].mxu1 }
 0xee3   : > { %v5633_v37 = vcombine.low %v5609_v46, %v5625_v7  ;;  %v5634_v51 = vcombine.high %v5609_v46, %v5625_v7  ;;  %v5649_v58 = vcombine.low %v5616_v47, %v5632_v36  ;;  %v5650_v52 = vcombine.high %v5616_v47, %v5632_v36 }
 0xee5   : > { %v5641_v53 = vrot.slane %v5633_v37, %v8273_v31  ;;  %v5648_v50 = vrot.slane %v5634_v51, %v8273_v31  ;;  %v5657_v59 = vrot.slane %v5649_v58, %v8273_v31  ;;  %v5664_v60 = vrot.slane %v5650_v52, %v8273_v31 }
 0xee7   : > { %v5737_v29 = vcombine.low %v5641_v53, %v5648_v50  ;;  %v6515_v63 = vcombine.high %v5641_v53, %v5648_v50  ;;  %v5753_v54 = vcombine.low %v5657_v59, %v5664_v60  ;;  %v6516_v45 = vcombine.high %v5657_v59, %v5664_v60 }
 0xee9   : > { %v5744_v57 = vrot.slane %v5737_v29, %v8269_v20  ;;  %v5752_v11 = vrot.slane %v6515_v63, %v8269_v20  ;;  %v5760_v13 = vrot.slane %v5753_v54, %v8269_v20  ;;  %v5768_v38 = vrot.slane %v6516_v45, %v8269_v20  ;;  %v7120_v54 = vld [vmem:[%s8194_s8] sm:$0xff]   ;;  %v7121_v45 = vld [vmem:[%s8194_s8 + $0x8] sm:$0xff]  }
 0xeea   : > { %6897 = vmatpush3.bf16.msra.mxu0 %v7120_v54 }
 0xeeb   : > { %v5770_v21 = vcombine.high %v5744_v57, %v5752_v11  ;;  %v5786_v61 = vcombine.high %v5760_v13, %v5768_v38  ;;  %v5769_v14 = vcombine.low %v5744_v57, %v5752_v11  ;;  %v5785_v17 = vcombine.low %v5760_v13, %v5768_v38  ;;  %6898 = vmatprep.subr.bf16.mxu0 %v7674_v18  ;;  %v7123_v57 = vld [vmem:[%s8197_s10 + $0x8] sm:$0xff]  }
 0xeed   : > { %v5784_v41 = vrot.slane %v5770_v21, %v8273_v31  ;;  %v5800_v40 = vrot.slane %v5786_v61, %v8273_v31  ;;  %v5777_v43 = vrot.slane %v5769_v14, %v8273_v31  ;;  %v5793_v22 = vrot.slane %v5785_v17, %v8273_v31  ;;  %v7208_v17 = vld [vmem:[%s8190_s1] sm:$0x7] }
 0xeee   : > { %6899 = vmatpush3.bf16.msra.mxu0 %v7121_v45 }
 0xeef   : > { %v5803_v25 = vcombine.low %v5784_v41, %v5800_v40  ;;  %v5802_v27 = vcombine.high %v5777_v43, %v5793_v22  ;;  %v5801_v30 = vcombine.low %v5777_v43, %v5793_v22  ;;  %v5804_v20 = vcombine.high %v5784_v41, %v5800_v40 }
 0xef0   : > { %v5927_v41 = vrot.slane %v7208_v17, %v8248_v55 }
 0xef1   : > { %v7092_v4 = vpack.i.bf16 %v5803_v25, %v5735_v15  ;;  %v7087_v0 = vpack.i.bf16 %v5802_v27, %v5734_v42  ;;  %v7097_v8 = vpack.i.bf16 %v5804_v20, %v5736_v12  ;;  %v5933_v25 = vrot.slane %v7209_v16, %v8248_v55 }
 0xef3   : > { %7093 = vrot.lane.b32.xlu0 %v7092_v4, %s7682_s22  ;;  %7088 = vrot.lane.b32.xlu1 %v7087_v0, %s7683_s16 }
 0xef7   : > { %7098 = vrot.lane.b32.xlu1 %v7097_v8, %s7684_s24 }
 0xf65   : > { %v7094_v32 = vpop.permute.xlu0 %7093  ;;  %v7089_v62 = vpop.permute.xlu1 %7088 }
 0xf66   : > { %v7091_v31 = vunpack.i.h.bf16 %v7089_v62  ;;  %v7090_v49 = vunpack.i.l.bf16 %v7089_v62  ;;  %v7096_v33 = vunpack.i.h.bf16 %v7094_v32  ;;  %v7095_v34 = vunpack.i.l.bf16 %v7094_v32  ;;  %v7124_v32 = vld [vmem:[%s8197_s10 + $0x10] sm:$0xff]   ;;  %v7125_v62 = vld [vmem:[%s8197_s10 + $0x18] sm:$0xff]  }
 0xf68   : > { %v5829_v15 = vsel %vm1871_vm3, %v5733_v2, %v7090_v49  ;;  %v5830_v42 = vsel %vm1871_vm3, %v5801_v30, %v7091_v31  ;;  %v5839_v2 = vrot.slane %v7207_v23, %v5838_v56  ;;  %v6520_v31 = vld [vmem:[%s677_s9] ss:$0 sm:$0xff] }
 0xf69   : > { %v7099_v12 = vpop.permute.xlu1 %7098  ;;  %v5831_v44 = vsel %vm3013_vm5, %v5829_v15, %v7095_v34  ;;  %v5832_v3 = vsel %vm3013_vm5, %v5830_v42, %v7096_v33 }
 0xf6a   : > { %v7101_v24 = vunpack.i.h.bf16 %v7099_v12  ;;  %v7100_v26 = vunpack.i.l.bf16 %v7099_v12 }
 0xf6c   : > { %v5833_v19 = vsel %vm3016_vm6, %v5831_v44, %v7100_v26  ;;  %v5834_v39 = vsel %vm3016_vm6, %v5832_v3, %v7101_v24  ;;  %v6529_v3 = vld [vmem:[%s694_s15] ss:$0 sm:$0xff] }
 0xf6d   : > { %v5835_v6 = vpack.c.bf16 %v5834_v39, %v5833_v19 }
 0xf6f   : > { %6893 = vmatmul.mubr.msk.bf16.vlgmr.msra.gmra.mrb[76].mxu1 %vm791_vm1, %v5835_v6 }
 0xf70   : > { %6912 = vmatprep.mubr.msk.bf16.mxu1 %vm7675_vm2, %v7674_v18  ;;  %6905 = vmatpush3.bf16.msra.mxu1 %v7122_v10 }
 0xf71   : > { %6906 = vmatprep.subr.bf16.mxu1 %v7674_v18 }
 0xf74   : > { %6907 = vmatpush3.bf16.msra.mxu1 %v7123_v57 }
 0xf75   : > { %6908 = vmatprep.subr.bf16.mxu1 %v7674_v18 }
 0xf78   : > { %6909 = vmatpush3.bf16.msra.mxu1 %v7124_v32 }
 0xf79   : > { %6910 = vmatprep.subr.bf16.mxu1 %v7674_v18 }
 0xf7c   : > { %6911 = vmatpush3.bf16.msra.mxu1 %v7125_v62 }
0x1042   : > { %v5889_v5 = vpop.f32.mrb[76].mxu1 }
0x1043   : > { %v5890_v35 = vadd.f32 %v5889_v5, %v5839_v2  ;;  %v6894_v7 = vpop.f32.mrb[77].mxu1 }
0x1044   : > { %v5892_v36 = vpop.f32.mrb[78].mxu1 }
0x1045   : > { %v9113_v46 = vadd.f32 %v5890_v35, %v8601_v1  ;;  %v5893_v47 = vadd.f32 %v5892_v36, %v5839_v2  ;;  %v6895_v48 = vpop.f32.mrb[79].mxu1 }
0x1047   : > { %v9116_v37 = vadd.f32 %v5893_v47, %v8603_v9  ;;  %v5898_v51 = vsel %vm791_vm1, %v9113_v46, 0.0 }
0x1048   : > { %5899 = vadd.xlane.f32.xlu1 %v5898_v51 }
0x1049   : > { %v5901_v28 = vsel %vm791_vm1, %v9116_v37, 0.0 }
0x104a   : > { %5902 = vadd.xlane.f32.xlu0 %v5901_v28 }
0x10d5   : > { %v5900_v58 = vpop.xlane.xlu1 %5899 }
0x10d6   : > { %v5904_v52 = vmul.f32 0.03125, %v5900_v58 }
0x10d7   : > { %v5903_v1 = vpop.xlane.xlu0 %5902 }
0x10d8   : > { %v5906_v53 = vsub.f32 %v9113_v46, %v5904_v52  ;;  %v5905_v50 = vmul.f32 0.03125, %v5903_v1 }
0x10da   : > { %v5907_v9 = vsub.f32 %v9116_v37, %v5905_v50  ;;  %v5908_v59 = vmul.f32 %v5906_v53, %v5906_v53 }
0x10dc   : > { %v5910_v60 = vsel %vm791_vm1, %v5908_v59, 0.0  ;;  %v5909_v29 = vmul.f32 %v5907_v9, %v5907_v9 }
0x10dd   : > { %5911 = vadd.xlane.f32.xlu0 %v5910_v60 }
0x10de   : > { %v5913_v63 = vsel %vm791_vm1, %v5909_v29, 0.0 }
0x10df   : > { %5914 = vadd.xlane.f32.xlu1 %v5913_v63 }
0x116a   : > { %v5912_v11 = vpop.xlane.xlu0 %5911 }
0x116b   : > { %v5916_v13 = vmul.f32 0.03125, %v5912_v11 }
0x116c   : > { %v5915_v38 = vpop.xlane.xlu1 %5914 }
0x116d   : > { %v5918_v21 = vadd.f32 1e-05, %v5916_v13  ;;  %v5917_v61 = vmul.f32 0.03125, %v5915_v38 }
0x116f   : > { %7198 = vrsqrt.f32 %v5918_v21  ;;  %v5919_v14 = vadd.f32 1e-05, %v5917_v61 }
0x1171   : > { %7200 = vrsqrt.f32 %v5919_v14 }
0x1179   : > { %v7199_v40 = vpop.eup %7198 }
0x117a   : > { %v5922_v43 = vmul.f32 %v7199_v40, %v5906_v53 }
0x117b   : > { %v7201_v22 = vpop.eup %7200 }
0x117c   : > { %v5928_v27 = vmul.f32 %v5927_v41, %v5922_v43  ;;  %v5923_v30 = vmul.f32 %v7201_v22, %v5907_v9 }
0x117e   : > { %v5929_v20 = vmul.f32 %v5927_v41, %v5923_v30  ;;  %v5934_v4 = vadd.f32 %v5933_v25, %v5928_v27 }
0x1180   : > { %v5935_v0 = vadd.f32 %v5933_v25, %v5929_v20 }
0x1182   : > { %v5936_v8 = vpack.c.bf16 %v5935_v0, %v5934_v4 }
0x1184   : > { %6901 = vmatmul.mubr.msk.bf16.vlgmr.msra.gmra.mrb[80].mxu0 %vm791_vm1, %v5936_v8 }
0x1257   : > { %v5997_v49 = vpop.f32.mrb[80].mxu0 }
0x1258   : > { %v5998_v33 = vadd.f32 %v6520_v31, %v5997_v49  ;;  %v6902_v55 = vpop.f32.mrb[81].mxu0 }
0x1259   : > { %v6000_v34 = vpop.f32.mrb[82].mxu0 }
0x125a   : > { %v6001_v15 = vadd.f32 %v6520_v31, %v6000_v34  ;;  %v6903_v42 = vpop.f32.mrb[83].mxu0  ;;  %v6004_v12 = vmax.f32 %v5998_v33, 0.0 }
0x125c   : > { %v6005_v24 = vmax.f32 %v6001_v15, 0.0 }
0x125e   : > { %v6006_v26 = vpack.c.bf16 %v6005_v24, %v6004_v12 }
0x1260   : > { %6913 = vmatmul.mubr.msk.bf16.vlgmr.msra.gmra.mrb[80].mxu1 %vm6039_vm7, %v6006_v26 }
0x1333   : > { %v6077_v44 = vpop.f32.mrb[80].mxu1 }
0x1334   : > { %v6084_v19 = vadd.f32 %v6077_v44, %v9113_v46  ;;  %v6914_v18 = vpop.f32.mrb[81].mxu1  ;;  %6100 = sbr.rel (%p6530_p2) target bundleno = 4923 (0x133b), region = 124 }
0x1335   : > { %v6080_v39 = vpop.f32.mrb[82].mxu1 }
0x1336   : > { %v6093_v6 = vadd.f32 %v6529_v3, %v6084_v19  ;;  %v6085_v56 = vadd.f32 %v6080_v39, %v9116_v37  ;;  %v6915_v23 = vpop.f32.mrb[83].mxu1 }
0x1338   : > { %6095 = vst.msk [vmem:[#allocation2] sm:$0xff] %vm791_vm1, %v6093_v6  ;;  %v6094_v2 = vadd.f32 %v6529_v3, %v6085_v56  ;;  %6101 = vst.msk [vmem:[#allocation19] sm:$0xff] (!%p6530_p2), %vm791_vm1, %v6093_v6 }
0x133a   : > { %6096 = vst.msk [vmem:[#allocation2 + $0x8] sm:$0xff] %vm791_vm1, %v6094_v2  ;;  %6102 = vst.msk [vmem:[#allocation19 + $0x8] sm:$0xff] (!%p6530_p2), %vm791_vm1, %v6094_v2 }
0x133b PF: > { %s9297_s13 = sld [smem:[#allocation28_spill]]  ;;  %s7685_s12 = smov [#allocation19]  }
0x133c   : > { %s6112_s17 = sshll.u32 %s7685_s12, 4  ;;  %s6113_s17 = int_to_ptr.vmem [resolvable:$true] %s6112_s17 }
0x133d   : > { %s7562_s28 = scalar_lea.vmem %s6113_s17, 256  ;;  %p7569_p5 = scmp.lt.s32.totalorder %s6113_s17, %s6113_s17 }
0x133e   : > { %p7563_p3 = scmp.ne.s32.totalorder %s6113_s17, %s7562_s28  ;;  %p7570_p11 = scmp.lt.s32.totalorder %s7562_s28, %s7562_s28 }
0x1340   : > { %p7571_p6 = por %p7570_p11, %p7569_p5 }
0x1341   : > { %p6999_p4 = scmp.eq.s32.totalorder %s9297_s13, 1 }
0x1343   : > { %p7564_p1 = pnand %p7563_p3, %p6999_p4 }
0x1345   : > { %p7565_p12 = pneg %p7564_p1 }
0x1347   : > { %p7572_p7 = pnand %p7571_p6, %p7565_p12 }
0x1349   : > { %7575 = shalt.err (!%p7572_p7)
}
0x134a   : > { %s9298_s5 = sld [smem:[#allocation42_spill]] }
0x1350   : > { %s7576_s18 = scalar_lea.hbm %s9298_s5, 256 }
0x1351   : > { %p7577_p0 = scmp.ne.s32.totalorder %s9298_s5, %s7576_s18  ;;  %p7582_p9 = scmp.lt.u32.totalorder %s7576_s18, %s9298_s5 }
0x1353   : > { %p7578_p10 = pnand %p7577_p0, %p6999_p4 }
0x1355   : > { %p7579_p13 = pneg %p7578_p10 }
0x1357   : > { %p7584_p8 = pnand %p7582_p9, %p7579_p13 }
0x1359   : > { %7587 = shalt.err (!%p7584_p8)
}
0x135a   : > { %s7686_s1 = smov 128  }
0x135b   : > { %6949 = dma.vmem_to_hbm [thread:$0]  (%p6999_p4), %s6113_s17, 256, %s9298_s5, [#allocation5], %s7686_s1, %s7686_s1, %s7683_s16  }
0x135c   : > { %7629 = dma.done.wait (%p6999_p4), [#allocation5], 256  }
0x135d   : > { %7631 = vsyncadd (%p6999_p4), [#allocation5], 4294967040 }
0x135e PF: > { %s26_s26 = sadd.s32 1, %s7654_s26   ;;  %s9299_s21 = sld [smem:[#allocation25_spill]] }
0x135f   : > { %p23_p2 = scmp.ge.s32.totalorder %s26_s26, 4   ;;  %s9300_s22 = sld [smem:[#allocation26_spill]] }
0x1360   : > { %s9301_s23 = sld [smem:[#allocation31_spill]]  ;;  %s9302_s9 = sld [smem:[#allocation29_spill]] }
0x1361   : > { %s9303_s24 = smov %s7650_s25  ;;  %25 = sbr.rel (!%p23_p2) target bundleno = 17 (0x11), region = 217 }
0x1366   : > { %s9304_s25 = smov %s9302_s9 }
0x1368   :  { %6128 = vsyncpa [#allocation4], 1 }
0x1369   :  { %6130 = vsyncpa [#allocation4 + $0x1], 1 }
0x136a   :  { %6131 = vsyncpa [#allocation7], 1 }
0x136b   :  { %6132 = vsyncpa [#allocation10], 1 }
0x136c   :  { %6133 = vsyncpa [#allocation5], 1 }
0x136d   :  { %6135 = vsyncpa [#allocation5 + $0x1], 1 }

</bundles_post_ra>
